<compile_context>
chip_gen: v6e
topology: v6e:2x2x1
jax: 0.10.0
libtpu: 0.0.40
codegen_flags: <defaults>
</compile_context>

<pallas_src>
import functools
import math

import jax
import jax.numpy as jnp
import numpy as np
from jax import lax
from jax.experimental import pallas as pl
from jax.experimental.pallas import tpu as pltpu


# ----------------------------------------------------------------------------
# Fused kernel: ReWeight aggregation + residual multi-head self-attention.
# ----------------------------------------------------------------------------
def _fused_agg_attn_kernel(q2d_ref, cmat_ref, tmat_ref, q3d_ref, pos3d_ref,
                           w1a_ref, w1b_ref, b1_ref, w2_ref, b2_ref,
                           wqk_ref, bqk_ref, wv_ref, bv_ref, wo_ref, bo_ref,
                           o_ref, *, num_heads):
    f32 = jnp.float32
    bf16 = jnp.bfloat16

    q2d = q2d_ref[0]                     # [N2d, C]   bf16 (streamed in bf16)
    cmat = cmat_ref[0].astype(f32)       # [N2d, Nc]  f32 for the reduction
    tmat = tmat_ref[0].astype(f32)       # [N2d, N3d]
    q3d = q3d_ref[0]                     # [N3d, C]   f32 (residual term)
    pos = pos3d_ref[0]                   # [N3d, C]   f32

    def recip(d):
        # EUP approximate reciprocal + one Newton-Raphson step (near-exact f32; VPU slack).
        r = pl.reciprocal(d, approx=True)
        return r * (2.0 - d * r)

    # ---------------- ReWeight (trans=True) + "query3d + query3d_from2d" ----------------
    csum = jnp.sum(cmat, axis=-1, keepdims=True)                          # [N2d, 1] f32
    h = jnp.dot(q2d, w1a_ref[...], preferred_element_type=f32)            # bf16 x bf16 -> f32
    h = jnp.maximum(h + csum * w1b_ref[...] + b1_ref[...], 0.0)           # [N2d, F]
    # Linear(F -> 1) + Sigmoid as VPU mul + lane reduce (avoids a 1-column MXU matmul).
    logit = jnp.sum(h * w2_ref[...], axis=-1, keepdims=True) + b2_ref[...]  # [N2d, 1]
    alpha = jax.nn.sigmoid(logit)

    w = tmat * alpha                                                      # [N2d, N3d]
    den = jnp.maximum(jnp.sum(w, axis=0, keepdims=True), 1e-5)            # [1, N3d]
    w_n = w * recip(den)                                                  # divisor folded in
    # Transpose the SMALL operand (XLU; keeps the large q2d tile un-transposed).
    w_t = w_n.T.astype(bf16)                                              # [N3d, N2d]
    q_from2d = jnp.dot(w_t, q2d, preferred_element_type=f32)              # [N3d, C] f32
    x = q3d + q_from2d            # updated query3d; never written back to HBM

    # ---------------- graph_model(self_attn): residual MHA ----------------
    N, C = x.shape
    H = num_heads
    dh = C // H

    xp = (x + pos).astype(bf16)   # bf16 matmul operands, f32 accumulation
    x_bf = x.astype(bf16)

    # Full-width, lane-dense projections (softmax scale already folded into the Q half).
    qk = jnp.dot(xp, wqk_ref[...], preferred_element_type=f32) + bqk_ref[...]   # [N, 2C]
    q_all = qk[:, :C]             # 256-lane-aligned (vreg-granular) slices
    k_all = qk[:, C:]
    v_all = jnp.dot(x_bf, wv_ref[...], preferred_element_type=f32) + bv_ref[...]  # [N, C]

    # Tiny per-head score / softmax / PV stage (filler once MXU/DMA dominate).
    o_heads = []
    for hh in range(H):
        sl = slice(hh * dh, (hh + 1) * dh)
        qh = q_all[:, sl].astype(bf16)
        kh = k_all[:, sl].astype(bf16)
        vh = v_all[:, sl].astype(bf16)
        s = lax.dot_general(qh, kh, (((1,), (1,)), ((), ())),
                            preferred_element_type=f32)                  # [N, N]
        s = s - jnp.max(s, axis=-1, keepdims=True)
        p = jnp.exp(s)
        p = p * recip(jnp.sum(p, axis=-1, keepdims=True))
        o_heads.append(jnp.dot(p.astype(bf16), vh, preferred_element_type=f32))  # [N, dh]

    # Pack heads lane-contiguously (head h at lanes h*dh) and do ONE output projection
    # against the unsplit Wo — no [H, N, C] pre-sum intermediate, no head-sum.
    o_packed = jnp.concatenate(o_heads, axis=-1).astype(bf16)             # [N, C]
    attn = jnp.dot(o_packed, wo_ref[...], preferred_element_type=f32) + bo_ref[...]

    o_ref[0] = x + attn


# ----------------------------------------------------------------------------
# Wrapper (host-side layout plumbing + pallas_call)
# ----------------------------------------------------------------------------
def adaptive_query_aggregation(query2d, query_pos2d, anchor2d,
                               query3d, query_pos3d, anchor3d,
                               trans_matrix, center_matrix,
                               reweight_params, attn_params, num_heads=8):
    """Forward of AdaptiveQueryAggregation (reweight!=None, self_attn!=None, with_pos=False)."""
    del query_pos2d, anchor2d  # unused in this configuration
    B, N2d, C = query2d.shape
    N3d = query3d.shape[1]
    Nc = center_matrix.shape[-1]
    rp, ap = reweight_params, attn_params
    F = rp["w1a"].shape[-1]
    H = num_heads
    dh = C // H
    scale = 1.0 / math.sqrt(dh)
    bf16 = jnp.bfloat16

    # Full-width merged Q|K projection; fold the softmax scale into Wq/bq BEFORE the bf16
    # cast; keep every bias (and matmul accumulation) in f32.
    wqk = jnp.concatenate([ap["wq"] * scale, ap["wk"]], axis=-1).astype(bf16)   # [C, 2C]
    bqk = jnp.concatenate([ap["bq"] * scale, ap["bk"]], axis=-1)                # [1, 2C] f32
    wv = ap["wv"].astype(bf16)                                                  # [C, C]
    wo = ap["wo"].astype(bf16)                                                  # [C, C] unsplit
    w1a = rp["w1a"].astype(bf16)                                                # [C, F]
    w2_row = rp["w2"].reshape(1, F)                                             # [1, F] f32

    # Streamed activations in bf16 (halves HBM bytes on the per-batch tiles).
    q2d_bf = query2d.astype(bf16)
    tmat_bf = trans_matrix.astype(bf16)
    cmat_bf = center_matrix.astype(bf16)

    def _full(shape):
        nd = len(shape)
        return pl.BlockSpec(shape, lambda b, _nd=nd: (0,) * _nd)

    grid_spec = pltpu.PrefetchScalarGridSpec(
        num_scalar_prefetch=0,
        grid=(B,),
        in_specs=[
            pl.BlockSpec((1, N2d, C), lambda b: (b, 0, 0)),
            pl.BlockSpec((1, N2d, Nc), lambda b: (b, 0, 0)),
            pl.BlockSpec((1, N2d, N3d), lambda b: (b, 0, 0)),
            pl.BlockSpec((1, N3d, C), lambda b: (b, 0, 0)),
            pl.BlockSpec((1, N3d, C), lambda b: (b, 0, 0)),
            _full((C, F)), _full((1, F)), _full((1, F)), _full((1, F)), _full((1, 1)),
            _full((C, 2 * C)), _full((1, 2 * C)),
            _full((C, C)), _full((1, C)),
            _full((C, C)), _full((1, C)),
        ],
        out_specs=pl.BlockSpec((1, N3d, C), lambda b: (b, 0, 0)),
    )

    aggregated_query3d = pl.pallas_call(
        functools.partial(_fused_agg_attn_kernel, num_heads=H),
        out_shape=jax.ShapeDtypeStruct((B, N3d, C), jnp.float32),
        grid_spec=grid_spec,
        # On v7x, verify this B-axis splits across the two TensorCores; if not, switch
        # this axis to pltpu.CORE_PARALLEL (or pl.core_map) for the ~2x at B=2.
        compiler_params=pltpu.CompilerParams(dimension_semantics=("parallel",)),
    )(q2d_bf, cmat_bf, tmat_bf, query3d, query_pos3d,
      w1a, rp["w1b"], rp["b1"], w2_row, rp["b2"],
      wqk, bqk, wv, ap["bv"], wo, ap["bo"])

    # with_pos=False -> query_pos3d unchanged; anchor3d passed through.
    return aggregated_query3d, query_pos3d, anchor3d


# ----------------------------------------------------------------------------
# Pure-JAX (f32) reference for correctness checking
# ----------------------------------------------------------------------------
def reference_forward(query2d, query3d, query_pos3d, anchor3d,
                      trans_matrix, center_matrix, rp, ap, num_heads):
    B, N2d, C = query2d.shape
    N3d = query3d.shape[1]
    dh = C // num_heads

    csum = center_matrix.sum(-1, keepdims=True)
    h = jnp.maximum(query2d @ rp["w1a"] + csum * rp["w1b"] + rp["b1"], 0.0)
    alpha = jax.nn.sigmoid(h @ rp["w2"] + rp["b2"])
    rw_t = jnp.swapaxes(trans_matrix * alpha, 1, 2)
    div = jnp.maximum(rw_t.sum(-1, keepdims=True), 1e-5)
    q3 = query3d + jnp.matmul(rw_t, query2d) / div

    xp = q3 + query_pos3d
    q = xp @ ap["wq"] + ap["bq"]
    k = xp @ ap["wk"] + ap["bk"]
    v = q3 @ ap["wv"] + ap["bv"]

    def split(t):
        return t.reshape(B, N3d, num_heads, dh).transpose(0, 2, 1, 3)

    qh, kh, vh = split(q), split(k), split(v)
    s = jnp.einsum("bhnd,bhmd->bhnm", qh, kh) / math.sqrt(dh)
    p = jax.nn.softmax(s, axis=-1)
    o = jnp.einsum("bhnm,bhmd->bhnd", p, vh).transpose(0, 2, 1, 3).reshape(B, N3d, C)
    out = q3 + o @ ap["wo"] + ap["bo"]
    return out, query_pos3d, anchor3d


# ----------------------------------------------------------------------------
# Deterministic parameter / input construction
# ----------------------------------------------------------------------------
def _init_params(key, C, F):
    ks = jax.random.split(key, 12)
    n = lambda k, s, sc=0.02: (sc * jax.random.normal(k, s)).astype(jnp.float32)
    reweight = {
        "w1a": n(ks[0], (C, F)),      # Linear(257->F): first 256 input columns
        "w1b": n(ks[1], (1, F)),      # Linear(257->F): 257-th input column (center sum)
        "b1":  n(ks[2], (1, F)),
        "w2":  n(ks[3], (F, 1)),
        "b2":  n(ks[4], (1, 1)),
    }
    attn = {
        "wq": n(ks[5], (C, C)), "bq": n(ks[6], (1, C)),
        "wk": n(ks[7], (C, C)), "bk": n(ks[8], (1, C)),
        "wv": n(ks[9], (C, C)), "bv": n(ks[10], (1, C)),
        "wo": n(ks[11], (C, C)), "bo": jnp.zeros((1, C), jnp.float32),
    }
    return reweight, attn


if __name__ == "__main__":
    B, N2d, N3d, C, F, H = 2, 64, 32, 256, 256, 8

    key = jax.random.PRNGKey(0)
    k_in, k_par = jax.random.split(key)
    kq2, kp2, ka2, kq3, kp3, ka3, kt, kc = jax.random.split(k_in, 8)

    query2d = jax.random.normal(kq2, (B, N2d, C), jnp.float32)
    query_pos2d = jax.random.normal(kp2, (B, N2d, C), jnp.float32)
    anchor2d = jax.random.normal(ka2, (B, N2d, 4), jnp.float32)
    query3d = jax.random.normal(kq3, (B, N3d, C), jnp.float32)
    query_pos3d = jax.random.normal(kp3, (B, N3d, C), jnp.float32)
    anchor3d = jax.random.normal(ka3, (B, N3d, 11), jnp.float32)
    trans_matrix = jax.nn.sigmoid(jax.random.normal(kt, (B, N2d, N3d), jnp.float32))
    center_matrix = jax.nn.sigmoid(jax.random.normal(kc, (B, N2d, N3d), jnp.float32))

    reweight_params, attn_params = _init_params(k_par, C, F)

    agg_q3d, out_pos3d, out_anchor3d = adaptive_query_aggregation(
        query2d, query_pos2d, anchor2d, query3d, query_pos3d, anchor3d,
        trans_matrix, center_matrix, reweight_params, attn_params, num_heads=H)
    jax.block_until_ready(agg_q3d)

    ref_q3d, ref_pos3d, ref_anchor3d = reference_forward(
        query2d, query3d, query_pos3d, anchor3d, trans_matrix, center_matrix,
        reweight_params, attn_params, H)

    # Tolerance is set by the bf16 weight/activation quantization of the matmul operands
    # (the approximate reciprocals are Newton-refined and no longer contribute).
    np.testing.assert_allclose(np.asarray(agg_q3d), np.asarray(ref_q3d), rtol=2e-2, atol=2e-2)
    np.testing.assert_allclose(np.asarray(out_pos3d), np.asarray(ref_pos3d))
    np.testing.assert_allclose(np.asarray(out_anchor3d), np.asarray(ref_anchor3d))

    print("KERNEL_OK")
</pallas_src>

<mosaic_0001>
module attributes {stable_mosaic.version = 11 : i64} {
  func.func @_fused_agg_attn_kernel(%arg0: i32, %arg1: memref<1x64x256xbf16, #tpu.memory_space<vmem>>, %arg2: memref<1x64x32xbf16, #tpu.memory_space<vmem>>, %arg3: memref<1x64x32xbf16, #tpu.memory_space<vmem>>, %arg4: memref<1x32x256xf32, #tpu.memory_space<vmem>>, %arg5: memref<1x32x256xf32, #tpu.memory_space<vmem>>, %arg6: memref<256x256xbf16, #tpu.memory_space<vmem>>, %arg7: memref<1x256xf32, #tpu.memory_space<vmem>>, %arg8: memref<1x256xf32, #tpu.memory_space<vmem>>, %arg9: memref<1x256xf32, #tpu.memory_space<vmem>>, %arg10: memref<1x1xf32, #tpu.memory_space<vmem>>, %arg11: memref<256x512xbf16, #tpu.memory_space<vmem>>, %arg12: memref<1x512xf32, #tpu.memory_space<vmem>>, %arg13: memref<256x256xbf16, #tpu.memory_space<vmem>>, %arg14: memref<1x256xf32, #tpu.memory_space<vmem>>, %arg15: memref<256x256xbf16, #tpu.memory_space<vmem>>, %arg16: memref<1x256xf32, #tpu.memory_space<vmem>>, %arg17: memref<1x32x256xf32, #tpu.memory_space<vmem>>) attributes {dimension_semantics = [#tpu.dimension_semantics<parallel>], iteration_bounds = array<i64: 2>, scalar_prefetch = 0 : i64, scratch_operands = 0 : i64, tpu.core_type = #tpu.core_type<tc>, window_params = [{transform_indices = @transform_0, window_bounds = array<i64: 1, 64, 256>}, {transform_indices = @transform_1, window_bounds = array<i64: 1, 64, 32>}, {transform_indices = @transform_2, window_bounds = array<i64: 1, 64, 32>}, {transform_indices = @transform_3, window_bounds = array<i64: 1, 32, 256>}, {transform_indices = @transform_4, window_bounds = array<i64: 1, 32, 256>}, {pipeline_mode = #tpu.pipeline_mode<synchronous>, transform_indices = @transform_5, window_bounds = array<i64: 256, 256>}, {pipeline_mode = #tpu.pipeline_mode<synchronous>, transform_indices = @transform_6, window_bounds = array<i64: 1, 256>}, {pipeline_mode = #tpu.pipeline_mode<synchronous>, transform_indices = @transform_7, window_bounds = array<i64: 1, 256>}, {pipeline_mode = #tpu.pipeline_mode<synchronous>, transform_indices = @transform_8, window_bounds = array<i64: 1, 256>}, {pipeline_mode = #tpu.pipeline_mode<synchronous>, transform_indices = @transform_9, window_bounds = array<i64: 1, 1>}, {pipeline_mode = #tpu.pipeline_mode<synchronous>, transform_indices = @transform_10, window_bounds = array<i64: 256, 512>}, {pipeline_mode = #tpu.pipeline_mode<synchronous>, transform_indices = @transform_11, window_bounds = array<i64: 1, 512>}, {pipeline_mode = #tpu.pipeline_mode<synchronous>, transform_indices = @transform_12, window_bounds = array<i64: 256, 256>}, {pipeline_mode = #tpu.pipeline_mode<synchronous>, transform_indices = @transform_13, window_bounds = array<i64: 1, 256>}, {pipeline_mode = #tpu.pipeline_mode<synchronous>, transform_indices = @transform_14, window_bounds = array<i64: 256, 256>}, {pipeline_mode = #tpu.pipeline_mode<synchronous>, transform_indices = @transform_15, window_bounds = array<i64: 1, 256>}, {transform_indices = @transform_16, window_bounds = array<i64: 1, 32, 256>}]} {
    %c0 = arith.constant 0 : index
    %c0_0 = arith.constant 0 : index
    %c0_1 = arith.constant 0 : index
    %0 = vector.load %arg1[%c0, %c0_0, %c0_1] : memref<1x64x256xbf16, #tpu.memory_space<vmem>>, vector<1x64x256xbf16>
    %1 = vector.shape_cast %0 : vector<1x64x256xbf16> to vector<64x256xbf16>
    %c0_2 = arith.constant 0 : index
    %c0_3 = arith.constant 0 : index
    %c0_4 = arith.constant 0 : index
    %2 = vector.load %arg2[%c0_2, %c0_3, %c0_4] : memref<1x64x32xbf16, #tpu.memory_space<vmem>>, vector<1x64x32xbf16>
    %3 = vector.shape_cast %2 : vector<1x64x32xbf16> to vector<64x32xbf16>
    %4 = arith.extf %3 : vector<64x32xbf16> to vector<64x32xf32>
    %c0_5 = arith.constant 0 : index
    %c0_6 = arith.constant 0 : index
    %c0_7 = arith.constant 0 : index
    %5 = vector.load %arg3[%c0_5, %c0_6, %c0_7] : memref<1x64x32xbf16, #tpu.memory_space<vmem>>, vector<1x64x32xbf16>
    %6 = vector.shape_cast %5 : vector<1x64x32xbf16> to vector<64x32xbf16>
    %7 = arith.extf %6 : vector<64x32xbf16> to vector<64x32xf32>
    %c0_8 = arith.constant 0 : index
    %c0_9 = arith.constant 0 : index
    %c0_10 = arith.constant 0 : index
    %8 = vector.load %arg4[%c0_8, %c0_9, %c0_10] : memref<1x32x256xf32, #tpu.memory_space<vmem>>, vector<1x32x256xf32>
    %9 = vector.shape_cast %8 : vector<1x32x256xf32> to vector<32x256xf32>
    %c0_11 = arith.constant 0 : index
    %c0_12 = arith.constant 0 : index
    %c0_13 = arith.constant 0 : index
    %10 = vector.load %arg5[%c0_11, %c0_12, %c0_13] : memref<1x32x256xf32, #tpu.memory_space<vmem>>, vector<1x32x256xf32>
    %11 = vector.shape_cast %10 : vector<1x32x256xf32> to vector<32x256xf32>
    %cst = arith.constant dense<0.000000e+00> : vector<64xf32>
    %12 = vector.multi_reduction <add>, %4, %cst [1] : vector<64x32xf32> to vector<64xf32>
    %13 = vector.shape_cast %12 : vector<64xf32> to vector<64x1xf32>
    %c0_14 = arith.constant 0 : index
    %c0_15 = arith.constant 0 : index
    %14 = vector.load %arg6[%c0_14, %c0_15] : memref<256x256xbf16, #tpu.memory_space<vmem>>, vector<256x256xbf16>
    %cst_16 = arith.constant dense<0.000000e+00> : vector<64x256xf32>
    %15 = tpu.matmul %1, %14, %cst_16 {dimension_numbers = #tpu.dot_dimension_numbers<[1], [0], [0], [1], [0, 0, 1, 1], [], []>} : vector<64x256xbf16>, vector<256x256xbf16>, vector<64x256xf32> -> vector<64x256xf32>
    %c0_17 = arith.constant 0 : index
    %c0_18 = arith.constant 0 : index
    %16 = vector.load %arg7[%c0_17, %c0_18] : memref<1x256xf32, #tpu.memory_space<vmem>>, vector<1x256xf32>
    %17 = vector.broadcast %13 : vector<64x1xf32> to vector<64x256xf32>
    %18 = vector.broadcast %16 : vector<1x256xf32> to vector<64x256xf32>
    %19 = arith.mulf %17, %18 : vector<64x256xf32>
    %20 = arith.addf %15, %19 : vector<64x256xf32>
    %c0_19 = arith.constant 0 : index
    %c0_20 = arith.constant 0 : index
    %21 = vector.load %arg8[%c0_19, %c0_20] : memref<1x256xf32, #tpu.memory_space<vmem>>, vector<1x256xf32>
    %22 = vector.broadcast %21 : vector<1x256xf32> to vector<64x256xf32>
    %23 = arith.addf %20, %22 : vector<64x256xf32>
    %cst_21 = arith.constant 0.000000e+00 : f32
    %24 = vector.broadcast %cst_21 : f32 to vector<64x256xf32>
    %25 = arith.maximumf %23, %24 : vector<64x256xf32>
    %c0_22 = arith.constant 0 : index
    %c0_23 = arith.constant 0 : index
    %26 = vector.load %arg9[%c0_22, %c0_23] : memref<1x256xf32, #tpu.memory_space<vmem>>, vector<1x256xf32>
    %27 = vector.broadcast %26 : vector<1x256xf32> to vector<64x256xf32>
    %28 = arith.mulf %25, %27 : vector<64x256xf32>
    %cst_24 = arith.constant dense<0.000000e+00> : vector<64xf32>
    %29 = vector.multi_reduction <add>, %28, %cst_24 [1] : vector<64x256xf32> to vector<64xf32>
    %30 = vector.shape_cast %29 : vector<64xf32> to vector<64x1xf32>
    %c0_25 = arith.constant 0 : index
    %c0_26 = arith.constant 0 : index
    %31 = vector.load %arg10[%c0_25, %c0_26] : memref<1x1xf32, #tpu.memory_space<vmem>>, vector<1x1xf32>
    %32 = vector.broadcast %31 : vector<1x1xf32> to vector<64x1xf32>
    %33 = arith.addf %30, %32 : vector<64x1xf32>
    %34 = arith.negf %33 : vector<64x1xf32>
    %35 = math.exp %34 : vector<64x1xf32>
    %cst_27 = arith.constant 1.000000e+00 : f32
    %36 = vector.broadcast %cst_27 : f32 to vector<64x1xf32>
    %37 = arith.addf %36, %35 : vector<64x1xf32>
    %38 = arith.divf %36, %37 : vector<64x1xf32>
    %39 = vector.broadcast %38 : vector<64x1xf32> to vector<64x32xf32>
    %40 = arith.mulf %7, %39 : vector<64x32xf32>
    %cst_28 = arith.constant dense<0.000000e+00> : vector<32xf32>
    %41 = vector.multi_reduction <add>, %40, %cst_28 [0] : vector<64x32xf32> to vector<32xf32>
    %42 = vector.shape_cast %41 : vector<32xf32> to vector<1x32xf32>
    %cst_29 = arith.constant 9.99999974E-6 : f32
    %43 = vector.broadcast %cst_29 : f32 to vector<1x32xf32>
    %44 = arith.maximumf %42, %43 : vector<1x32xf32>
    %45 = tpu.reciprocal %44 {approx = true} : vector<1x32xf32> -> vector<1x32xf32>
    %46 = arith.mulf %44, %45 : vector<1x32xf32>
    %cst_30 = arith.constant 2.000000e+00 : f32
    %47 = vector.broadcast %cst_30 : f32 to vector<1x32xf32>
    %48 = arith.subf %47, %46 : vector<1x32xf32>
    %49 = arith.mulf %45, %48 : vector<1x32xf32>
    %50 = vector.broadcast %49 : vector<1x32xf32> to vector<64x32xf32>
    %51 = arith.mulf %40, %50 : vector<64x32xf32>
    %52 = tpu.transpose %51, [1, 0] : vector<64x32xf32> -> vector<32x64xf32>
    %53 = arith.truncf %52 : vector<32x64xf32> to vector<32x64xbf16>
    %cst_31 = arith.constant dense<0.000000e+00> : vector<32x256xf32>
    %54 = tpu.matmul %53, %1, %cst_31 {dimension_numbers = #tpu.dot_dimension_numbers<[1], [0], [0], [1], [0, 0, 1, 1], [], []>} : vector<32x64xbf16>, vector<64x256xbf16>, vector<32x256xf32> -> vector<32x256xf32>
    %55 = arith.addf %9, %54 : vector<32x256xf32>
    %56 = arith.addf %55, %11 : vector<32x256xf32>
    %57 = arith.truncf %56 : vector<32x256xf32> to vector<32x256xbf16>
    %58 = arith.truncf %55 : vector<32x256xf32> to vector<32x256xbf16>
    %c0_32 = arith.constant 0 : index
    %c0_33 = arith.constant 0 : index
    %59 = vector.load %arg11[%c0_32, %c0_33] : memref<256x512xbf16, #tpu.memory_space<vmem>>, vector<256x512xbf16>
    %cst_34 = arith.constant dense<0.000000e+00> : vector<32x512xf32>
    %60 = tpu.matmul %57, %59, %cst_34 {dimension_numbers = #tpu.dot_dimension_numbers<[1], [0], [0], [1], [0, 0, 1, 1], [], []>} : vector<32x256xbf16>, vector<256x512xbf16>, vector<32x512xf32> -> vector<32x512xf32>
    %c0_35 = arith.constant 0 : index
    %c0_36 = arith.constant 0 : index
    %61 = vector.load %arg12[%c0_35, %c0_36] : memref<1x512xf32, #tpu.memory_space<vmem>>, vector<1x512xf32>
    %62 = vector.broadcast %61 : vector<1x512xf32> to vector<32x512xf32>
    %63 = arith.addf %60, %62 : vector<32x512xf32>
    %64 = vector.extract_strided_slice %63 {offsets = [0, 0], sizes = [32, 256], strides = [1, 1]} : vector<32x512xf32> to vector<32x256xf32>
    %65 = vector.extract_strided_slice %63 {offsets = [0, 256], sizes = [32, 256], strides = [1, 1]} : vector<32x512xf32> to vector<32x256xf32>
    %c0_37 = arith.constant 0 : index
    %c0_38 = arith.constant 0 : index
    %66 = vector.load %arg13[%c0_37, %c0_38] : memref<256x256xbf16, #tpu.memory_space<vmem>>, vector<256x256xbf16>
    %cst_39 = arith.constant dense<0.000000e+00> : vector<32x256xf32>
    %67 = tpu.matmul %58, %66, %cst_39 {dimension_numbers = #tpu.dot_dimension_numbers<[1], [0], [0], [1], [0, 0, 1, 1], [], []>} : vector<32x256xbf16>, vector<256x256xbf16>, vector<32x256xf32> -> vector<32x256xf32>
    %c0_40 = arith.constant 0 : index
    %c0_41 = arith.constant 0 : index
    %68 = vector.load %arg14[%c0_40, %c0_41] : memref<1x256xf32, #tpu.memory_space<vmem>>, vector<1x256xf32>
    %69 = vector.broadcast %68 : vector<1x256xf32> to vector<32x256xf32>
    %70 = arith.addf %67, %69 : vector<32x256xf32>
    %71 = vector.extract_strided_slice %64 {offsets = [0, 0], sizes = [32, 32], strides = [1, 1]} : vector<32x256xf32> to vector<32x32xf32>
    %72 = arith.truncf %71 : vector<32x32xf32> to vector<32x32xbf16>
    %73 = vector.extract_strided_slice %65 {offsets = [0, 0], sizes = [32, 32], strides = [1, 1]} : vector<32x256xf32> to vector<32x32xf32>
    %74 = arith.truncf %73 : vector<32x32xf32> to vector<32x32xbf16>
    %75 = vector.extract_strided_slice %70 {offsets = [0, 0], sizes = [32, 32], strides = [1, 1]} : vector<32x256xf32> to vector<32x32xf32>
    %76 = arith.truncf %75 : vector<32x32xf32> to vector<32x32xbf16>
    %cst_42 = arith.constant dense<0.000000e+00> : vector<32x32xf32>
    %77 = tpu.matmul %72, %74, %cst_42 {dimension_numbers = #tpu.dot_dimension_numbers<[1], [1], [0], [0], [0, 0, 1, 0], [], []>} : vector<32x32xbf16>, vector<32x32xbf16>, vector<32x32xf32> -> vector<32x32xf32>
    %cst_43 = arith.constant dense<0xFF800000> : vector<32xf32>
    %78 = vector.multi_reduction <maximumf>, %77, %cst_43 [1] : vector<32x32xf32> to vector<32xf32>
    %79 = vector.shape_cast %78 : vector<32xf32> to vector<32x1xf32>
    %80 = vector.broadcast %79 : vector<32x1xf32> to vector<32x32xf32>
    %81 = arith.subf %77, %80 : vector<32x32xf32>
    %82 = math.exp %81 : vector<32x32xf32>
    %cst_44 = arith.constant dense<0.000000e+00> : vector<32xf32>
    %83 = vector.multi_reduction <add>, %82, %cst_44 [1] : vector<32x32xf32> to vector<32xf32>
    %84 = vector.shape_cast %83 : vector<32xf32> to vector<32x1xf32>
    %85 = tpu.reciprocal %84 {approx = true} : vector<32x1xf32> -> vector<32x1xf32>
    %86 = arith.mulf %84, %85 : vector<32x1xf32>
    %cst_45 = arith.constant 2.000000e+00 : f32
    %87 = vector.broadcast %cst_45 : f32 to vector<32x1xf32>
    %88 = arith.subf %87, %86 : vector<32x1xf32>
    %89 = arith.mulf %85, %88 : vector<32x1xf32>
    %90 = vector.broadcast %89 : vector<32x1xf32> to vector<32x32xf32>
    %91 = arith.mulf %82, %90 : vector<32x32xf32>
    %92 = arith.truncf %91 : vector<32x32xf32> to vector<32x32xbf16>
    %cst_46 = arith.constant dense<0.000000e+00> : vector<32x32xf32>
    %93 = tpu.matmul %92, %76, %cst_46 {dimension_numbers = #tpu.dot_dimension_numbers<[1], [0], [0], [1], [0, 0, 1, 1], [], []>} : vector<32x32xbf16>, vector<32x32xbf16>, vector<32x32xf32> -> vector<32x32xf32>
    %94 = vector.extract_strided_slice %64 {offsets = [0, 32], sizes = [32, 32], strides = [1, 1]} : vector<32x256xf32> to vector<32x32xf32>
    %95 = arith.truncf %94 : vector<32x32xf32> to vector<32x32xbf16>
    %96 = vector.extract_strided_slice %65 {offsets = [0, 32], sizes = [32, 32], strides = [1, 1]} : vector<32x256xf32> to vector<32x32xf32>
    %97 = arith.truncf %96 : vector<32x32xf32> to vector<32x32xbf16>
    %98 = vector.extract_strided_slice %70 {offsets = [0, 32], sizes = [32, 32], strides = [1, 1]} : vector<32x256xf32> to vector<32x32xf32>
    %99 = arith.truncf %98 : vector<32x32xf32> to vector<32x32xbf16>
    %cst_47 = arith.constant dense<0.000000e+00> : vector<32x32xf32>
    %100 = tpu.matmul %95, %97, %cst_47 {dimension_numbers = #tpu.dot_dimension_numbers<[1], [1], [0], [0], [0, 0, 1, 0], [], []>} : vector<32x32xbf16>, vector<32x32xbf16>, vector<32x32xf32> -> vector<32x32xf32>
    %cst_48 = arith.constant dense<0xFF800000> : vector<32xf32>
    %101 = vector.multi_reduction <maximumf>, %100, %cst_48 [1] : vector<32x32xf32> to vector<32xf32>
    %102 = vector.shape_cast %101 : vector<32xf32> to vector<32x1xf32>
    %103 = vector.broadcast %102 : vector<32x1xf32> to vector<32x32xf32>
    %104 = arith.subf %100, %103 : vector<32x32xf32>
    %105 = math.exp %104 : vector<32x32xf32>
    %cst_49 = arith.constant dense<0.000000e+00> : vector<32xf32>
    %106 = vector.multi_reduction <add>, %105, %cst_49 [1] : vector<32x32xf32> to vector<32xf32>
    %107 = vector.shape_cast %106 : vector<32xf32> to vector<32x1xf32>
    %108 = tpu.reciprocal %107 {approx = true} : vector<32x1xf32> -> vector<32x1xf32>
    %109 = arith.mulf %107, %108 : vector<32x1xf32>
    %cst_50 = arith.constant 2.000000e+00 : f32
    %110 = vector.broadcast %cst_50 : f32 to vector<32x1xf32>
    %111 = arith.subf %110, %109 : vector<32x1xf32>
    %112 = arith.mulf %108, %111 : vector<32x1xf32>
    %113 = vector.broadcast %112 : vector<32x1xf32> to vector<32x32xf32>
    %114 = arith.mulf %105, %113 : vector<32x32xf32>
    %115 = arith.truncf %114 : vector<32x32xf32> to vector<32x32xbf16>
    %cst_51 = arith.constant dense<0.000000e+00> : vector<32x32xf32>
    %116 = tpu.matmul %115, %99, %cst_51 {dimension_numbers = #tpu.dot_dimension_numbers<[1], [0], [0], [1], [0, 0, 1, 1], [], []>} : vector<32x32xbf16>, vector<32x32xbf16>, vector<32x32xf32> -> vector<32x32xf32>
    %117 = vector.extract_strided_slice %64 {offsets = [0, 64], sizes = [32, 32], strides = [1, 1]} : vector<32x256xf32> to vector<32x32xf32>
    %118 = arith.truncf %117 : vector<32x32xf32> to vector<32x32xbf16>
    %119 = vector.extract_strided_slice %65 {offsets = [0, 64], sizes = [32, 32], strides = [1, 1]} : vector<32x256xf32> to vector<32x32xf32>
    %120 = arith.truncf %119 : vector<32x32xf32> to vector<32x32xbf16>
    %121 = vector.extract_strided_slice %70 {offsets = [0, 64], sizes = [32, 32], strides = [1, 1]} : vector<32x256xf32> to vector<32x32xf32>
    %122 = arith.truncf %121 : vector<32x32xf32> to vector<32x32xbf16>
    %cst_52 = arith.constant dense<0.000000e+00> : vector<32x32xf32>
    %123 = tpu.matmul %118, %120, %cst_52 {dimension_numbers = #tpu.dot_dimension_numbers<[1], [1], [0], [0], [0, 0, 1, 0], [], []>} : vector<32x32xbf16>, vector<32x32xbf16>, vector<32x32xf32> -> vector<32x32xf32>
    %cst_53 = arith.constant dense<0xFF800000> : vector<32xf32>
    %124 = vector.multi_reduction <maximumf>, %123, %cst_53 [1] : vector<32x32xf32> to vector<32xf32>
    %125 = vector.shape_cast %124 : vector<32xf32> to vector<32x1xf32>
    %126 = vector.broadcast %125 : vector<32x1xf32> to vector<32x32xf32>
    %127 = arith.subf %123, %126 : vector<32x32xf32>
    %128 = math.exp %127 : vector<32x32xf32>
    %cst_54 = arith.constant dense<0.000000e+00> : vector<32xf32>
    %129 = vector.multi_reduction <add>, %128, %cst_54 [1] : vector<32x32xf32> to vector<32xf32>
    %130 = vector.shape_cast %129 : vector<32xf32> to vector<32x1xf32>
    %131 = tpu.reciprocal %130 {approx = true} : vector<32x1xf32> -> vector<32x1xf32>
    %132 = arith.mulf %130, %131 : vector<32x1xf32>
    %cst_55 = arith.constant 2.000000e+00 : f32
    %133 = vector.broadcast %cst_55 : f32 to vector<32x1xf32>
    %134 = arith.subf %133, %132 : vector<32x1xf32>
    %135 = arith.mulf %131, %134 : vector<32x1xf32>
    %136 = vector.broadcast %135 : vector<32x1xf32> to vector<32x32xf32>
    %137 = arith.mulf %128, %136 : vector<32x32xf32>
    %138 = arith.truncf %137 : vector<32x32xf32> to vector<32x32xbf16>
    %cst_56 = arith.constant dense<0.000000e+00> : vector<32x32xf32>
    %139 = tpu.matmul %138, %122, %cst_56 {dimension_numbers = #tpu.dot_dimension_numbers<[1], [0], [0], [1], [0, 0, 1, 1], [], []>} : vector<32x32xbf16>, vector<32x32xbf16>, vector<32x32xf32> -> vector<32x32xf32>
    %140 = vector.extract_strided_slice %64 {offsets = [0, 96], sizes = [32, 32], strides = [1, 1]} : vector<32x256xf32> to vector<32x32xf32>
    %141 = arith.truncf %140 : vector<32x32xf32> to vector<32x32xbf16>
    %142 = vector.extract_strided_slice %65 {offsets = [0, 96], sizes = [32, 32], strides = [1, 1]} : vector<32x256xf32> to vector<32x32xf32>
    %143 = arith.truncf %142 : vector<32x32xf32> to vector<32x32xbf16>
    %144 = vector.extract_strided_slice %70 {offsets = [0, 96], sizes = [32, 32], strides = [1, 1]} : vector<32x256xf32> to vector<32x32xf32>
    %145 = arith.truncf %144 : vector<32x32xf32> to vector<32x32xbf16>
    %cst_57 = arith.constant dense<0.000000e+00> : vector<32x32xf32>
    %146 = tpu.matmul %141, %143, %cst_57 {dimension_numbers = #tpu.dot_dimension_numbers<[1], [1], [0], [0], [0, 0, 1, 0], [], []>} : vector<32x32xbf16>, vector<32x32xbf16>, vector<32x32xf32> -> vector<32x32xf32>
    %cst_58 = arith.constant dense<0xFF800000> : vector<32xf32>
    %147 = vector.multi_reduction <maximumf>, %146, %cst_58 [1] : vector<32x32xf32> to vector<32xf32>
    %148 = vector.shape_cast %147 : vector<32xf32> to vector<32x1xf32>
    %149 = vector.broadcast %148 : vector<32x1xf32> to vector<32x32xf32>
    %150 = arith.subf %146, %149 : vector<32x32xf32>
    %151 = math.exp %150 : vector<32x32xf32>
    %cst_59 = arith.constant dense<0.000000e+00> : vector<32xf32>
    %152 = vector.multi_reduction <add>, %151, %cst_59 [1] : vector<32x32xf32> to vector<32xf32>
    %153 = vector.shape_cast %152 : vector<32xf32> to vector<32x1xf32>
    %154 = tpu.reciprocal %153 {approx = true} : vector<32x1xf32> -> vector<32x1xf32>
    %155 = arith.mulf %153, %154 : vector<32x1xf32>
    %cst_60 = arith.constant 2.000000e+00 : f32
    %156 = vector.broadcast %cst_60 : f32 to vector<32x1xf32>
    %157 = arith.subf %156, %155 : vector<32x1xf32>
    %158 = arith.mulf %154, %157 : vector<32x1xf32>
    %159 = vector.broadcast %158 : vector<32x1xf32> to vector<32x32xf32>
    %160 = arith.mulf %151, %159 : vector<32x32xf32>
    %161 = arith.truncf %160 : vector<32x32xf32> to vector<32x32xbf16>
    %cst_61 = arith.constant dense<0.000000e+00> : vector<32x32xf32>
    %162 = tpu.matmul %161, %145, %cst_61 {dimension_numbers = #tpu.dot_dimension_numbers<[1], [0], [0], [1], [0, 0, 1, 1], [], []>} : vector<32x32xbf16>, vector<32x32xbf16>, vector<32x32xf32> -> vector<32x32xf32>
    %163 = vector.extract_strided_slice %64 {offsets = [0, 128], sizes = [32, 32], strides = [1, 1]} : vector<32x256xf32> to vector<32x32xf32>
    %164 = arith.truncf %163 : vector<32x32xf32> to vector<32x32xbf16>
    %165 = vector.extract_strided_slice %65 {offsets = [0, 128], sizes = [32, 32], strides = [1, 1]} : vector<32x256xf32> to vector<32x32xf32>
    %166 = arith.truncf %165 : vector<32x32xf32> to vector<32x32xbf16>
    %167 = vector.extract_strided_slice %70 {offsets = [0, 128], sizes = [32, 32], strides = [1, 1]} : vector<32x256xf32> to vector<32x32xf32>
    %168 = arith.truncf %167 : vector<32x32xf32> to vector<32x32xbf16>
    %cst_62 = arith.constant dense<0.000000e+00> : vector<32x32xf32>
    %169 = tpu.matmul %164, %166, %cst_62 {dimension_numbers = #tpu.dot_dimension_numbers<[1], [1], [0], [0], [0, 0, 1, 0], [], []>} : vector<32x32xbf16>, vector<32x32xbf16>, vector<32x32xf32> -> vector<32x32xf32>
    %cst_63 = arith.constant dense<0xFF800000> : vector<32xf32>
    %170 = vector.multi_reduction <maximumf>, %169, %cst_63 [1] : vector<32x32xf32> to vector<32xf32>
    %171 = vector.shape_cast %170 : vector<32xf32> to vector<32x1xf32>
    %172 = vector.broadcast %171 : vector<32x1xf32> to vector<32x32xf32>
    %173 = arith.subf %169, %172 : vector<32x32xf32>
    %174 = math.exp %173 : vector<32x32xf32>
    %cst_64 = arith.constant dense<0.000000e+00> : vector<32xf32>
    %175 = vector.multi_reduction <add>, %174, %cst_64 [1] : vector<32x32xf32> to vector<32xf32>
    %176 = vector.shape_cast %175 : vector<32xf32> to vector<32x1xf32>
    %177 = tpu.reciprocal %176 {approx = true} : vector<32x1xf32> -> vector<32x1xf32>
    %178 = arith.mulf %176, %177 : vector<32x1xf32>
    %cst_65 = arith.constant 2.000000e+00 : f32
    %179 = vector.broadcast %cst_65 : f32 to vector<32x1xf32>
    %180 = arith.subf %179, %178 : vector<32x1xf32>
    %181 = arith.mulf %177, %180 : vector<32x1xf32>
    %182 = vector.broadcast %181 : vector<32x1xf32> to vector<32x32xf32>
    %183 = arith.mulf %174, %182 : vector<32x32xf32>
    %184 = arith.truncf %183 : vector<32x32xf32> to vector<32x32xbf16>
    %cst_66 = arith.constant dense<0.000000e+00> : vector<32x32xf32>
    %185 = tpu.matmul %184, %168, %cst_66 {dimension_numbers = #tpu.dot_dimension_numbers<[1], [0], [0], [1], [0, 0, 1, 1], [], []>} : vector<32x32xbf16>, vector<32x32xbf16>, vector<32x32xf32> -> vector<32x32xf32>
    %186 = vector.extract_strided_slice %64 {offsets = [0, 160], sizes = [32, 32], strides = [1, 1]} : vector<32x256xf32> to vector<32x32xf32>
    %187 = arith.truncf %186 : vector<32x32xf32> to vector<32x32xbf16>
    %188 = vector.extract_strided_slice %65 {offsets = [0, 160], sizes = [32, 32], strides = [1, 1]} : vector<32x256xf32> to vector<32x32xf32>
    %189 = arith.truncf %188 : vector<32x32xf32> to vector<32x32xbf16>
    %190 = vector.extract_strided_slice %70 {offsets = [0, 160], sizes = [32, 32], strides = [1, 1]} : vector<32x256xf32> to vector<32x32xf32>
    %191 = arith.truncf %190 : vector<32x32xf32> to vector<32x32xbf16>
    %cst_67 = arith.constant dense<0.000000e+00> : vector<32x32xf32>
    %192 = tpu.matmul %187, %189, %cst_67 {dimension_numbers = #tpu.dot_dimension_numbers<[1], [1], [0], [0], [0, 0, 1, 0], [], []>} : vector<32x32xbf16>, vector<32x32xbf16>, vector<32x32xf32> -> vector<32x32xf32>
    %cst_68 = arith.constant dense<0xFF800000> : vector<32xf32>
    %193 = vector.multi_reduction <maximumf>, %192, %cst_68 [1] : vector<32x32xf32> to vector<32xf32>
    %194 = vector.shape_cast %193 : vector<32xf32> to vector<32x1xf32>
    %195 = vector.broadcast %194 : vector<32x1xf32> to vector<32x32xf32>
    %196 = arith.subf %192, %195 : vector<32x32xf32>
    %197 = math.exp %196 : vector<32x32xf32>
    %cst_69 = arith.constant dense<0.000000e+00> : vector<32xf32>
    %198 = vector.multi_reduction <add>, %197, %cst_69 [1] : vector<32x32xf32> to vector<32xf32>
    %199 = vector.shape_cast %198 : vector<32xf32> to vector<32x1xf32>
    %200 = tpu.reciprocal %199 {approx = true} : vector<32x1xf32> -> vector<32x1xf32>
    %201 = arith.mulf %199, %200 : vector<32x1xf32>
    %cst_70 = arith.constant 2.000000e+00 : f32
    %202 = vector.broadcast %cst_70 : f32 to vector<32x1xf32>
    %203 = arith.subf %202, %201 : vector<32x1xf32>
    %204 = arith.mulf %200, %203 : vector<32x1xf32>
    %205 = vector.broadcast %204 : vector<32x1xf32> to vector<32x32xf32>
    %206 = arith.mulf %197, %205 : vector<32x32xf32>
    %207 = arith.truncf %206 : vector<32x32xf32> to vector<32x32xbf16>
    %cst_71 = arith.constant dense<0.000000e+00> : vector<32x32xf32>
    %208 = tpu.matmul %207, %191, %cst_71 {dimension_numbers = #tpu.dot_dimension_numbers<[1], [0], [0], [1], [0, 0, 1, 1], [], []>} : vector<32x32xbf16>, vector<32x32xbf16>, vector<32x32xf32> -> vector<32x32xf32>
    %209 = vector.extract_strided_slice %64 {offsets = [0, 192], sizes = [32, 32], strides = [1, 1]} : vector<32x256xf32> to vector<32x32xf32>
    %210 = arith.truncf %209 : vector<32x32xf32> to vector<32x32xbf16>
    %211 = vector.extract_strided_slice %65 {offsets = [0, 192], sizes = [32, 32], strides = [1, 1]} : vector<32x256xf32> to vector<32x32xf32>
    %212 = arith.truncf %211 : vector<32x32xf32> to vector<32x32xbf16>
    %213 = vector.extract_strided_slice %70 {offsets = [0, 192], sizes = [32, 32], strides = [1, 1]} : vector<32x256xf32> to vector<32x32xf32>
    %214 = arith.truncf %213 : vector<32x32xf32> to vector<32x32xbf16>
    %cst_72 = arith.constant dense<0.000000e+00> : vector<32x32xf32>
    %215 = tpu.matmul %210, %212, %cst_72 {dimension_numbers = #tpu.dot_dimension_numbers<[1], [1], [0], [0], [0, 0, 1, 0], [], []>} : vector<32x32xbf16>, vector<32x32xbf16>, vector<32x32xf32> -> vector<32x32xf32>
    %cst_73 = arith.constant dense<0xFF800000> : vector<32xf32>
    %216 = vector.multi_reduction <maximumf>, %215, %cst_73 [1] : vector<32x32xf32> to vector<32xf32>
    %217 = vector.shape_cast %216 : vector<32xf32> to vector<32x1xf32>
    %218 = vector.broadcast %217 : vector<32x1xf32> to vector<32x32xf32>
    %219 = arith.subf %215, %218 : vector<32x32xf32>
    %220 = math.exp %219 : vector<32x32xf32>
    %cst_74 = arith.constant dense<0.000000e+00> : vector<32xf32>
    %221 = vector.multi_reduction <add>, %220, %cst_74 [1] : vector<32x32xf32> to vector<32xf32>
    %222 = vector.shape_cast %221 : vector<32xf32> to vector<32x1xf32>
    %223 = tpu.reciprocal %222 {approx = true} : vector<32x1xf32> -> vector<32x1xf32>
    %224 = arith.mulf %222, %223 : vector<32x1xf32>
    %cst_75 = arith.constant 2.000000e+00 : f32
    %225 = vector.broadcast %cst_75 : f32 to vector<32x1xf32>
    %226 = arith.subf %225, %224 : vector<32x1xf32>
    %227 = arith.mulf %223, %226 : vector<32x1xf32>
    %228 = vector.broadcast %227 : vector<32x1xf32> to vector<32x32xf32>
    %229 = arith.mulf %220, %228 : vector<32x32xf32>
    %230 = arith.truncf %229 : vector<32x32xf32> to vector<32x32xbf16>
    %cst_76 = arith.constant dense<0.000000e+00> : vector<32x32xf32>
    %231 = tpu.matmul %230, %214, %cst_76 {dimension_numbers = #tpu.dot_dimension_numbers<[1], [0], [0], [1], [0, 0, 1, 1], [], []>} : vector<32x32xbf16>, vector<32x32xbf16>, vector<32x32xf32> -> vector<32x32xf32>
    %232 = vector.extract_strided_slice %64 {offsets = [0, 224], sizes = [32, 32], strides = [1, 1]} : vector<32x256xf32> to vector<32x32xf32>
    %233 = arith.truncf %232 : vector<32x32xf32> to vector<32x32xbf16>
    %234 = vector.extract_strided_slice %65 {offsets = [0, 224], sizes = [32, 32], strides = [1, 1]} : vector<32x256xf32> to vector<32x32xf32>
    %235 = arith.truncf %234 : vector<32x32xf32> to vector<32x32xbf16>
    %236 = vector.extract_strided_slice %70 {offsets = [0, 224], sizes = [32, 32], strides = [1, 1]} : vector<32x256xf32> to vector<32x32xf32>
    %237 = arith.truncf %236 : vector<32x32xf32> to vector<32x32xbf16>
    %cst_77 = arith.constant dense<0.000000e+00> : vector<32x32xf32>
    %238 = tpu.matmul %233, %235, %cst_77 {dimension_numbers = #tpu.dot_dimension_numbers<[1], [1], [0], [0], [0, 0, 1, 0], [], []>} : vector<32x32xbf16>, vector<32x32xbf16>, vector<32x32xf32> -> vector<32x32xf32>
    %cst_78 = arith.constant dense<0xFF800000> : vector<32xf32>
    %239 = vector.multi_reduction <maximumf>, %238, %cst_78 [1] : vector<32x32xf32> to vector<32xf32>
    %240 = vector.shape_cast %239 : vector<32xf32> to vector<32x1xf32>
    %241 = vector.broadcast %240 : vector<32x1xf32> to vector<32x32xf32>
    %242 = arith.subf %238, %241 : vector<32x32xf32>
    %243 = math.exp %242 : vector<32x32xf32>
    %cst_79 = arith.constant dense<0.000000e+00> : vector<32xf32>
    %244 = vector.multi_reduction <add>, %243, %cst_79 [1] : vector<32x32xf32> to vector<32xf32>
    %245 = vector.shape_cast %244 : vector<32xf32> to vector<32x1xf32>
    %246 = tpu.reciprocal %245 {approx = true} : vector<32x1xf32> -> vector<32x1xf32>
    %247 = arith.mulf %245, %246 : vector<32x1xf32>
    %cst_80 = arith.constant 2.000000e+00 : f32
    %248 = vector.broadcast %cst_80 : f32 to vector<32x1xf32>
    %249 = arith.subf %248, %247 : vector<32x1xf32>
    %250 = arith.mulf %246, %249 : vector<32x1xf32>
    %251 = vector.broadcast %250 : vector<32x1xf32> to vector<32x32xf32>
    %252 = arith.mulf %243, %251 : vector<32x32xf32>
    %253 = arith.truncf %252 : vector<32x32xf32> to vector<32x32xbf16>
    %cst_81 = arith.constant dense<0.000000e+00> : vector<32x32xf32>
    %254 = tpu.matmul %253, %237, %cst_81 {dimension_numbers = #tpu.dot_dimension_numbers<[1], [0], [0], [1], [0, 0, 1, 1], [], []>} : vector<32x32xbf16>, vector<32x32xbf16>, vector<32x32xf32> -> vector<32x32xf32>
    %255 = tpu.concatenate %93, %116, %139, %162, %185, %208, %231, %254 in 1 : vector<32x32xf32>, vector<32x32xf32>, vector<32x32xf32>, vector<32x32xf32>, vector<32x32xf32>, vector<32x32xf32>, vector<32x32xf32>, vector<32x32xf32> -> vector<32x256xf32>
    %256 = arith.truncf %255 : vector<32x256xf32> to vector<32x256xbf16>
    %c0_82 = arith.constant 0 : index
    %c0_83 = arith.constant 0 : index
    %257 = vector.load %arg15[%c0_82, %c0_83] : memref<256x256xbf16, #tpu.memory_space<vmem>>, vector<256x256xbf16>
    %cst_84 = arith.constant dense<0.000000e+00> : vector<32x256xf32>
    %258 = tpu.matmul %256, %257, %cst_84 {dimension_numbers = #tpu.dot_dimension_numbers<[1], [0], [0], [1], [0, 0, 1, 1], [], []>} : vector<32x256xbf16>, vector<256x256xbf16>, vector<32x256xf32> -> vector<32x256xf32>
    %c0_85 = arith.constant 0 : index
    %c0_86 = arith.constant 0 : index
    %259 = vector.load %arg16[%c0_85, %c0_86] : memref<1x256xf32, #tpu.memory_space<vmem>>, vector<1x256xf32>
    %260 = vector.broadcast %259 : vector<1x256xf32> to vector<32x256xf32>
    %261 = arith.addf %258, %260 : vector<32x256xf32>
    %262 = arith.addf %55, %261 : vector<32x256xf32>
    %c0_87 = arith.constant 0 : index
    %c0_88 = arith.constant 0 : index
    %c0_89 = arith.constant 0 : index
    %263 = vector.load %arg17[%c0_87, %c0_88, %c0_89] : memref<1x32x256xf32, #tpu.memory_space<vmem>>, vector<1x32x256xf32>
    %264 = vector.shape_cast %263 : vector<1x32x256xf32> to vector<32x256xf32>
    %265 = vector.shape_cast %262 : vector<32x256xf32> to vector<1x32x256xf32>
    tpu.vector_store %arg17[%c0_87, %c0_88, %c0_89], %265 {strides = array<i32>} : memref<1x32x256xf32, #tpu.memory_space<vmem>>, vector<1x32x256xf32>,
    return
  }
  func.func @transform_0(%arg0: i32) -> (i32, i32, i32) {
    %c0_i32 = arith.constant 0 : i32
    %c0_i32_0 = arith.constant 0 : i32
    %c0_i32_1 = arith.constant 0 : i32
    return %arg0, %c0_i32, %c0_i32_0 : i32, i32, i32
  }
  func.func @transform_1(%arg0: i32) -> (i32, i32, i32) {
    %c0_i32 = arith.constant 0 : i32
    %c0_i32_0 = arith.constant 0 : i32
    %c0_i32_1 = arith.constant 0 : i32
    return %arg0, %c0_i32, %c0_i32_0 : i32, i32, i32
  }
  func.func @transform_2(%arg0: i32) -> (i32, i32, i32) {
    %c0_i32 = arith.constant 0 : i32
    %c0_i32_0 = arith.constant 0 : i32
    %c0_i32_1 = arith.constant 0 : i32
    return %arg0, %c0_i32, %c0_i32_0 : i32, i32, i32
  }
  func.func @transform_3(%arg0: i32) -> (i32, i32, i32) {
    %c0_i32 = arith.constant 0 : i32
    %c0_i32_0 = arith.constant 0 : i32
    %c0_i32_1 = arith.constant 0 : i32
    return %arg0, %c0_i32, %c0_i32_0 : i32, i32, i32
  }
  func.func @transform_4(%arg0: i32) -> (i32, i32, i32) {
    %c0_i32 = arith.constant 0 : i32
    %c0_i32_0 = arith.constant 0 : i32
    %c0_i32_1 = arith.constant 0 : i32
    return %arg0, %c0_i32, %c0_i32_0 : i32, i32, i32
  }
  func.func @transform_5(%arg0: i32) -> (i32, i32) {
    %c0_i32 = arith.constant 0 : i32
    %c0_i32_0 = arith.constant 0 : i32
    %c0_i32_1 = arith.constant 0 : i32
    return %c0_i32, %c0_i32_0 : i32, i32
  }
  func.func @transform_6(%arg0: i32) -> (i32, i32) {
    %c0_i32 = arith.constant 0 : i32
    %c0_i32_0 = arith.constant 0 : i32
    %c0_i32_1 = arith.constant 0 : i32
    return %c0_i32, %c0_i32_0 : i32, i32
  }
  func.func @transform_7(%arg0: i32) -> (i32, i32) {
    %c0_i32 = arith.constant 0 : i32
    %c0_i32_0 = arith.constant 0 : i32
    %c0_i32_1 = arith.constant 0 : i32
    return %c0_i32, %c0_i32_0 : i32, i32
  }
  func.func @transform_8(%arg0: i32) -> (i32, i32) {
    %c0_i32 = arith.constant 0 : i32
    %c0_i32_0 = arith.constant 0 : i32
    %c0_i32_1 = arith.constant 0 : i32
    return %c0_i32, %c0_i32_0 : i32, i32
  }
  func.func @transform_9(%arg0: i32) -> (i32, i32) {
    %c0_i32 = arith.constant 0 : i32
    %c0_i32_0 = arith.constant 0 : i32
    %c0_i32_1 = arith.constant 0 : i32
    return %c0_i32, %c0_i32_0 : i32, i32
  }
  func.func @transform_10(%arg0: i32) -> (i32, i32) {
    %c0_i32 = arith.constant 0 : i32
    %c0_i32_0 = arith.constant 0 : i32
    %c0_i32_1 = arith.constant 0 : i32
    return %c0_i32, %c0_i32_0 : i32, i32
  }
  func.func @transform_11(%arg0: i32) -> (i32, i32) {
    %c0_i32 = arith.constant 0 : i32
    %c0_i32_0 = arith.constant 0 : i32
    %c0_i32_1 = arith.constant 0 : i32
    return %c0_i32, %c0_i32_0 : i32, i32
  }
  func.func @transform_12(%arg0: i32) -> (i32, i32) {
    %c0_i32 = arith.constant 0 : i32
    %c0_i32_0 = arith.constant 0 : i32
    %c0_i32_1 = arith.constant 0 : i32
    return %c0_i32, %c0_i32_0 : i32, i32
  }
  func.func @transform_13(%arg0: i32) -> (i32, i32) {
    %c0_i32 = arith.constant 0 : i32
    %c0_i32_0 = arith.constant 0 : i32
    %c0_i32_1 = arith.constant 0 : i32
    return %c0_i32, %c0_i32_0 : i32, i32
  }
  func.func @transform_14(%arg0: i32) -> (i32, i32) {
    %c0_i32 = arith.constant 0 : i32
    %c0_i32_0 = arith.constant 0 : i32
    %c0_i32_1 = arith.constant 0 : i32
    return %c0_i32, %c0_i32_0 : i32, i32
  }
  func.func @transform_15(%arg0: i32) -> (i32, i32) {
    %c0_i32 = arith.constant 0 : i32
    %c0_i32_0 = arith.constant 0 : i32
    %c0_i32_1 = arith.constant 0 : i32
    return %c0_i32, %c0_i32_0 : i32, i32
  }
  func.func @transform_16(%arg0: i32) -> (i32, i32, i32) {
    %c0_i32 = arith.constant 0 : i32
    %c0_i32_0 = arith.constant 0 : i32
    %c0_i32_1 = arith.constant 0 : i32
    return %arg0, %c0_i32, %c0_i32_0 : i32, i32, i32
  }
}

</mosaic_0001>

<bundles_post_ra>
// kernel: tpu_custom_call.1
= control target key start
LH: loop header
LB: loop body
LE: loop exit
PB: predicated region body
PF: predicated region fallthrough
CT: control target
= control target key end

     0   :  { %s6787_s0 = inlined_call_operand.vmem [shape: bf16[2,64,256], index: 0, kind: input, shape index: {}]   ;;  %s6788_s1 = inlined_call_operand.vmem [shape: bf16[2,64,32], index: 1, kind: input, shape index: {}]   ;;  %s6789_s2 = inlined_call_operand.vmem [shape: bf16[2,64,32], index: 2, kind: input, shape index: {}]   ;;  %s6790_s3 = inlined_call_operand.hbm [shape: f32[2,32,256], index: 3, kind: input, shape index: {}]   ;;  %s6791_s4 = inlined_call_operand.hbm [shape: f32[2,32,256], index: 4, kind: input, shape index: {}]   ;;  %s6792_s5 = inlined_call_operand.hbm [shape: bf16[256,256], index: 5, kind: input, shape index: {}]   ;;  %s6793_s6 = inlined_call_operand.vmem [shape: f32[1,256], index: 6, kind: input, shape index: {}]   ;;  %s6794_s7 = inlined_call_operand.vmem [shape: f32[1,256], index: 7, kind: input, shape index: {}]   ;;  %s6795_s8 = inlined_call_operand.vmem [shape: f32[1,256], index: 8, kind: input, shape index: {}]   ;;  %s6796_s9 = inlined_call_operand.<no memory space> [shape: f32[1,1], index: 9, kind: input, shape index: {}]   ;;  %s6797_s10 = inlined_call_operand.hbm [shape: bf16[256,512], index: 10, kind: input, shape index: {}]   ;;  %s6798_s11 = inlined_call_operand.vmem [shape: f32[1,512], index: 11, kind: input, shape index: {}]   ;;  %s6799_s12 = inlined_call_operand.hbm [shape: bf16[256,256], index: 12, kind: input, shape index: {}]   ;;  %s6800_s13 = inlined_call_operand.vmem [shape: f32[1,256], index: 13, kind: input, shape index: {}]   ;;  %s6801_s14 = inlined_call_operand.hbm [shape: bf16[256,256], index: 14, kind: input, shape index: {}]   ;;  %s6802_s15 = inlined_call_operand.vmem [shape: f32[1,256], index: 15, kind: input, shape index: {}]   ;;  %s6803_s16 = inlined_call_operand.hbm [shape: f32[2,32,256], index: 16, kind: output, shape index: {}]  }
   0x1   :  { %6828 = sst [smem:[#allocation33_spill]] %s6787_s0  ;;  %v21_v0 = vstv %s6796_s9 }
   0x2   :  { %6829 = sst [smem:[#allocation34_spill]] %s6790_s3  ;;  %22 = vst [vmem:[#allocation2] sm:$0x1] %v21_v0 }
   0x3   :  { %6830 = sst [smem:[#allocation35_spill]] %s6792_s5 }
   0x4   :  { %6831 = sst [smem:[#allocation36_spill]] %s6797_s10 }
   0x5   :  { %6832 = sst [smem:[#allocation37_spill]] %s6799_s12 }
   0x6   :  { %6833 = sst [smem:[#allocation38_spill]] %s6801_s14 }
   0x7   :  { %6834 = sst [smem:[#allocation39_spill]] %s6803_s16 }
   0x8   :  { %23 = vsyncpa [#allocation4], 0 }
   0x9   :  { %25 = vsyncpa [#allocation4 + $0x1], 0 }
   0xa   :  { %26 = vsyncpa [#allocation7], 0 }
   0xb   :  { %28 = vsyncpa [#allocation7 + $0x1], 0 }
   0xc   :  { %29 = vsyncpa [#allocation10], 0 }
   0xd   :  { %30 = vsyncpa [#allocation13], 0 }
   0xe   :  { %31 = vsyncpa [#allocation5], 0 }
   0xf   :  { %33 = vsyncpa [#allocation5 + $0x1], 0  ;;  %s5746_s23 = smov 0   ;;  %s5748_s24 = smov 0  }
  0x10   :  { %s5750_s25 = smov 0   ;;  %s5752_s26 = smov 0  }
  0x11 LB: > { %6835 = sst [smem:[#allocation21_spill]] %s5627_s23  ;;  %s5767_s9 = sadd.s32 4294967295, %s5639_s26   ;;  %s5639_s26 = sphi %s5752_s26, %s6886_s26   ;;  %s5635_s25 = sphi %s5750_s25, %s6888_s25   ;;  %s5631_s24 = sphi %s5748_s24, %s6890_s24   ;;  %s5627_s23 = sphi %s5746_s23, %s6889_s23  }
  0x12   : > { %6836 = sst [smem:[#allocation22_spill]] %s5635_s25  ;;  %s4325_s27 = sadd.s32 4294967294, %s5639_s26  }
  0x13   : > { %p137_p0 = scmp.ne.s32.totalorder %s5631_s24, %s5627_s23  ;;  %p6810_p1 = scmp.eq.s32.totalorder %s5767_s9, 0 }
  0x14   : > { %p424_p3 = scmp.eq.s32.totalorder %s4325_s27, 1  ;;  %p4326_p5 = scmp.ge.s32.totalorder %s5639_s26, 1 }
  0x15   : > { %p5776_p4 = por %p6810_p1, %p137_p0  ;;  %p431_p7 = scmp.lt.s32.totalorder %s5639_s26, 3 }
  0x16   : > { %p5781_p6 = por %p424_p3, %p137_p0  ;;  %s5641_s0 = smov [#allocation8]  }
  0x17   : > { %s6837_s28 = scalar_select %p5776_p4, 1, 0 }
  0x18   : > { %s6838_s29 = scalar_select %p5781_p6, 1, 0 }
  0x19   : > { %p5786_p8 = pnand %p4326_p5, %p431_p7  ;;  %s443_s17 = sshll.u32 %s5641_s0, 4  ;;  %s444_s17 = int_to_ptr.vmem [resolvable:$true] %s443_s17 }
  0x1a   : > { %6839 = sst [smem:[#allocation23_spill]] %s6838_s29  ;;  %s5642_s19 = smov [#allocation9]  }
  0x1b   : > { %p4842_p9 = pneg %p5786_p8  ;;  %s468_s20 = sshll.u32 %s5642_s19, 4  ;;  %s469_s20 = int_to_ptr.vmem [resolvable:$true] %s468_s20 }
  0x1c   : > { %s5410_s21 = scalar_lea.vmem %s444_s17, 4096  ;;  %p5418_p5 = scmp.lt.s32.totalorder %s444_s17, %s444_s17 }
  0x1d   : > { %p5795_p11 = pnand %p4842_p9, %p6810_p1  ;;  %p5411_p13 = scmp.ne.s32.totalorder %s444_s17, %s5410_s21 }
  0x1e   : > { %p5419_p7 = scmp.lt.s32.totalorder %s5410_s21, %s5410_s21 }
  0x1f   : > { %p5401_p12 = pneg %p5795_p11 }
  0x20   : > { %p5420_p10 = por %p5419_p7, %p5418_p5 }
  0x21   : > { %p5413_p0 = pnand %p5411_p13, %p5401_p12 }
  0x23   : > { %p5414_p3 = pneg %p5413_p0 }
  0x25   : > { %p5421_p9 = pnand %p5420_p10, %p5414_p3 }
  0x27   : > { %5424 = shalt.err (!%p5421_p9)
}
  0x28   : > { %s6806_s22 = smov 128   ;;  %s6808_s27 = smov 8  }
  0x29   : > { %s6842_s5 = sld [smem:[#allocation35_spill]]  ;;  %s5436_s29 = scalar_lea.vmem %s469_s20, 8192 }
  0x2a   : > { %p5437_p13 = scmp.ne.s32.totalorder %s469_s20, %s5436_s29  ;;  %p5444_p10 = scmp.lt.s32.totalorder %s469_s20, %s469_s20 }
  0x2b   : > { %p5445_p3 = scmp.lt.s32.totalorder %s5436_s29, %s5436_s29 }
  0x2c   : > { %p5439_p0 = pnand %p5437_p13, %p5401_p12 }
  0x2d   : > { %p5446_p7 = por %p5445_p3, %p5444_p10 }
  0x2e   : > { %p5440_p5 = pneg %p5439_p0 }
  0x2f   : > { %4845 = dma.hbm_to_vmem [thread:$0]  (!%p5795_p11), %s6842_s5, 4096, %s444_s17, [#allocation7], %s6806_s22, %s6806_s22, %s6808_s27  }
  0x30   : > { %p5447_p9 = pnand %p5446_p7, %p5440_p5 }
  0x32   : > { %5450 = shalt.err (!%p5447_p9)
}
  0x33   : > { %s6811_s21 = smov 256   ;;  %s6813_s23 = smov 16  }
  0x34   : > { %s6843_s10 = sld [smem:[#allocation36_spill]]  ;;  %s5647_s19 = smov [#allocation11]  }
  0x35   : > { %s484_s22 = sshll.u32 %s5647_s19, 4  ;;  %s5648_s27 = smov [#allocation12]   ;;  %s485_s22 = int_to_ptr.vmem [resolvable:$true] %s484_s22 }
  0x36   : > { %s500_s5 = sshll.u32 %s5648_s27, 4  ;;  %s5462_s29 = scalar_lea.vmem %s485_s22, 4096  ;;  %s501_s5 = int_to_ptr.vmem [resolvable:$true] %s500_s5 }
  0x37   : > { %p5463_p13 = scmp.ne.s32.totalorder %s485_s22, %s5462_s29  ;;  %p5470_p10 = scmp.lt.s32.totalorder %s485_s22, %s485_s22 }
  0x38   : > { %p5471_p3 = scmp.lt.s32.totalorder %s5462_s29, %s5462_s29 }
  0x39   : > { %p5465_p0 = pnand %p5463_p13, %p5401_p12 }
  0x3a   : > { %4848 = dma.hbm_to_vmem [thread:$0]  (!%p5795_p11), %s6843_s10, 8192, %s469_s20, [#allocation10], %s6811_s21, %s6811_s21, %s6813_s23  }
  0x3b   : > { %p5466_p5 = pneg %p5465_p0  ;;  %p5472_p7 = por %p5471_p3, %p5470_p10 }
  0x3d   : > { %p5473_p9 = pnand %p5472_p7, %p5466_p5 }
  0x3f   : > { %5476 = shalt.err (!%p5473_p9)
}
  0x40   : > { %s6844_s20 = smov 8   ;;  %s6845_s17 = smov 128  }
  0x41   : > { %s6846_s12 = sld [smem:[#allocation37_spill]]  ;;  %s5488_s19 = scalar_lea.vmem %s501_s5, 4096 }
  0x42   : > { %p5489_p1 = scmp.ne.s32.totalorder %s501_s5, %s5488_s19  ;;  %p5496_p2 = scmp.lt.s32.totalorder %s501_s5, %s501_s5 }
  0x43   : > { %p5497_p10 = scmp.lt.s32.totalorder %s5488_s19, %s5488_s19 }
  0x44   : > { %p5491_p13 = pnand %p5489_p1, %p5401_p12 }
  0x45   : > { %p5498_p5 = por %p5497_p10, %p5496_p2 }
  0x46   : > { %p5492_p0 = pneg %p5491_p13 }
  0x47   : > { %4851 = dma.hbm_to_vmem [thread:$0]  (!%p5795_p11), %s6846_s12, 4096, %s485_s22, [#allocation10], %s6845_s17, %s6845_s17, %s6844_s20  }
  0x48   : > { %p5499_p3 = pnand %p5498_p5, %p5492_p0 }
  0x4a   : > { %5502 = shalt.err (!%p5499_p3)
}
  0x4b   : > { %s6847_s14 = sld [smem:[#allocation38_spill]]  ;;  %s5846_s22 = sadd.s32 1, %s5639_s26  }
  0x4c   : > { %6848 = sst [smem:[#allocation24_spill]] %s5846_s22  ;;  %s121_s18 = ssub.s32 %s5639_s26, %s5846_s22 }
  0x4d   : > { %p122_p1 = scmp.eq.s32.totalorder %s121_s18, 0  ;;  %s124_s27 = sadd.s32 1, %s5635_s25 }
  0x4e   : > { %p131_p2 = scmp.ne.s32.totalorder %s5635_s25, %s5631_s24  ;;  %p132_p12 = scmp.eq.s32.totalorder %s5639_s26, 0 }
  0x4f   : > { %s5855_s19 = scalar_select %p122_p1, %s5635_s25, %s124_s27  }
  0x50   : > { %p133_p7 = por %p132_p12, %p131_p2  ;;  %p6850_p9 = scmp.eq.s32.totalorder %s5767_s9, 1 }
  0x51   : > { %4854 = dma.hbm_to_vmem [thread:$0]  (!%p5795_p11), %s6847_s14, 4096, %s501_s5, [#allocation13], %s6845_s17, %s6845_s17, %s6844_s20  }
  0x52   : > { %6849 = sst [smem:[#allocation25_spill]] %s5855_s19  ;;  %p5859_p13 = por %p6850_p9, %p131_p2 }
  0x53   : > { %p4870_p0 = scmp.lt.s32.totalorder %s5639_s26, 2  ;;  %s541_s0 = sand.u32 1, %s5635_s25  }
  0x54   : > { %s6851_s29 = scalar_select %p5859_p13, 1, 0 }
  0x55   : > { %s4332_s21 = sshll.u32 %s541_s0, 6  ;;  %s4568_s5 = sshll.u32 %s5639_s26, 10 }
  0x56   : > { %s6852_s3 = sld [smem:[#allocation34_spill]]  ;;  %s545_s18 = scalar_lea.vmem [#allocation3], %s4332_s21 }
  0x57   : > { %s552_s27 = sshll.u32 %s545_s18, 4  ;;  %p5873_p11 = pnand %p4870_p0, %p133_p7  ;;  %s5871_s27 = int_to_ptr.vmem [resolvable:$true] %s552_s27 }
  0x58   : > { %s5880_s19 = scalar_lea.hbm %s6791_s4, %s4568_s5  ;;  %s566_s20 = scalar_lea.vmem [#allocation6], %s4332_s21 }
  0x59   : > { %s5882_s17 = sshll.u32 %s566_s20, 4  ;;  %s5884_s25 = scalar_lea.sflag [#allocation4], %s541_s0  ;;  %s5915_s17 = int_to_ptr.vmem [resolvable:$true] %s5882_s17 }
  0x5a   : > { %p5505_p5 = pneg %p5873_p11 }
  0x5c   : > { %s5869_s23 = scalar_lea.hbm %s6852_s3, %s4568_s5  ;;  %s5508_s12 = scalar_lea.hbm %s6852_s3, 2048 }
  0x5d   : > { %s5503_s22 = scalar_lea.hbm %s5869_s23, 1024  ;;  %p5509_p2 = scmp.lt.s32.totalorder %s5869_s23, %s6852_s3 }
  0x5e   : > { %p5504_p10 = scmp.ne.s32.totalorder %s5869_s23, %s5503_s22  ;;  %p5510_p12 = scmp.lt.s32.totalorder %s5508_s12, %s5503_s22 }
  0x60   : > { %p5506_p3 = pnand %p5505_p5, %p5504_p10  ;;  %p5511_p7 = por %p5510_p12, %p5509_p2 }
  0x62   : > { %p5507_p1 = pneg %p5506_p3 }
  0x64   : > { %p5512_p9 = pnand %p5511_p7, %p5507_p1 }
  0x66   : > { %5515 = shalt.err (!%p5512_p9)
}
  0x67   : > { %s5516_s21 = scalar_lea.vmem %s5871_s27, 1024  ;;  %s5649_s16 = smov [#allocation3]  }
  0x68   : > { %p5517_p0 = scmp.ne.s32.totalorder %s5871_s27, %s5516_s21  ;;  %s5521_s0 = sshll.u32 %s5649_s16, 4  ;;  %s5522_s0 = int_to_ptr.vmem [resolvable:$false] %s5521_s0 }
  0x69   : > { %s5523_s20 = scalar_lea.vmem %s5522_s0, 2048  ;;  %p5524_p6 = scmp.lt.s32.totalorder %s5871_s27, %s5522_s0 }
  0x6a   : > { %p5519_p10 = pnand %p5517_p0, %p5505_p5  ;;  %p5525_p13 = scmp.lt.s32.totalorder %s5523_s20, %s5516_s21 }
  0x6c   : > { %p5520_p3 = pneg %p5519_p10  ;;  %p5526_p4 = por %p5525_p13, %p5524_p6 }
  0x6e   : > { %p5527_p2 = pnand %p5526_p4, %p5520_p3 }
  0x70   : > { %5530 = shalt.err (!%p5527_p2)
}
  0x71   : > { %s6854_s22 = smov 16   ;;  %s6855_s18 = smov 256  }
  0x72   : > { %4858 = dma.hbm_to_vmem [thread:$0]  (!%p5873_p11), %s5869_s23, 1024, %s5871_s27, %s5884_s25, %s6855_s18, %s6855_s18, %s6854_s22  }
  0x73   : > { %s562_s12 = sand.u32 1, %s5639_s26   ;;  %s5531_s5 = scalar_lea.hbm %s5880_s19, 1024 }
  0x74   : > { %s563_s14 = scalar_lea.sflag [#allocation7], %s562_s12  ;;  %p5532_p4 = scmp.ne.s32.totalorder %s5880_s19, %s5531_s5 }
  0x75   : > { %s5536_s0 = scalar_lea.hbm %s6791_s4, 2048  ;;  %p5537_p1 = scmp.lt.s32.totalorder %s5880_s19, %s6791_s4 }
  0x76   : > { %p5534_p6 = pnand %p5532_p4, %p5505_p5  ;;  %p5538_p12 = scmp.lt.s32.totalorder %s5536_s0, %s5531_s5 }
  0x78   : > { %p5535_p13 = pneg %p5534_p6  ;;  %p5539_p7 = por %p5538_p12, %p5537_p1 }
  0x7a   : > { %p5540_p9 = pnand %p5539_p7, %p5535_p13 }
  0x7c   : > { %5543 = shalt.err (!%p5540_p9)
}
  0x7d   : > { %s5544_s23 = scalar_lea.vmem %s5915_s17, 1024  ;;  %s5650_s25 = smov [#allocation6]  }
  0x7e   : > { %p5545_p0 = scmp.ne.s32.totalorder %s5915_s17, %s5544_s23  ;;  %s5549_s27 = sshll.u32 %s5650_s25, 4  ;;  %s5550_s27 = int_to_ptr.vmem [resolvable:$false] %s5549_s27 }
  0x7f   : > { %s5551_s12 = scalar_lea.vmem %s5550_s27, 2048  ;;  %p5552_p2 = scmp.lt.s32.totalorder %s5915_s17, %s5550_s27 }
  0x80   : > { %p5547_p10 = pnand %p5545_p0, %p5505_p5  ;;  %p5553_p4 = scmp.lt.s32.totalorder %s5551_s12, %s5544_s23 }
  0x82   : > { %p5548_p3 = pneg %p5547_p10  ;;  %p5554_p6 = por %p5553_p4, %p5552_p2 }
  0x84   : > { %p5555_p1 = pnand %p5554_p6, %p5548_p3 }
  0x86   : > { %5558 = shalt.err (!%p5555_p1)
}
  0x87   : > { %4861 = dma.hbm_to_vmem [thread:$0]  (!%p5873_p11), %s5880_s19, 1024, %s5915_s17, %s563_s14, %s6855_s18, %s6855_s18, %s6854_s22  }
  0x88   : > { %585 = sbr.rel (%p5786_p8) target bundleno = 4745 (0x1289), region = 84 }
  0x8d   : > { %s5946_s3 = sand.u32 1, %s5631_s24   ;;  %p6856_p5 = scmp.ne.s32.totalorder %s6837_s28, 0 }
  0x8e   : > { %s5949_s5 = sshll.u32 %s5946_s3, 6  ;;  %s588_s21 = scalar_lea.sflag [#allocation4], %s5946_s3 }
  0x8f   : > { %s5953_s10 = scalar_lea.vmem [#allocation3], %s5949_s5 }
  0x90   : > { %5602 = dma.done.wait (%p6856_p5), %s588_s21, 1024  }
  0x91   : > { %5604 = vsyncadd (%p6856_p5), %s588_s21, 4294966272  ;;  %s596_s30 = sand.u32 1, %s5767_s9   ;;  %s5961_s17 = scalar_lea.vmem [#allocation6], %s5949_s5 }
  0x92   : > { %s597_s19 = scalar_lea.sflag [#allocation7], %s596_s30 }
  0x93   : > { %5606 = dma.done.wait (%p6856_p5), %s597_s19, 1024  }
  0x94   : > { %5608 = vsyncadd (%p6856_p5), %s597_s19, 4294966272  ;;  %p6857_p8 = scmp.eq.s32.totalorder %s5767_s9, 0 }
  0x96   : > { %5610 = dma.done.wait (%p6857_p8), [#allocation7], 4096   ;;  %p6858_p11 = pmov %p6857_p8 }
  0x97   : > { %p6859_p13 = pmov %p6857_p8 }
  0x98   : > { %5612 = vsyncadd (%p6858_p11), [#allocation7], 4294963200 }
  0x99   : > { %5614 = dma.done.wait (%p6859_p13), [#allocation10], 12288   ;;  %p6860_p12 = pmov %p6857_p8 }
  0x9a   : > { %p6861_p7 = pmov %p6857_p8 }
  0x9b   : > { %5616 = vsyncadd (%p6860_p12), [#allocation10], 4294955008 }
  0x9c   : > { %5618 = dma.done.wait (%p6861_p7), [#allocation13], 4096   ;;  %p6862_p9 = pmov %p6861_p7 }
  0x9d   : > { %v4985_v1 = vld [vmem:[#allocation8 + $0x74] ss:$8 sps:$4 sm:$0xff]   ;;  %v4987_v2 = vld [vmem:[#allocation8 + $0x70] ss:$8 sps:$4 sm:$0xff]   ;;  %v4988_v3 = vld [vmem:[#allocation8 + $0x64] ss:$8 sps:$4 sm:$0xff]   ;;  %v816_v61 = vlaneseq }
  0x9e   : > { %5620 = vsyncadd (%p6862_p9), [#allocation13], 4294963200  ;;  %1042 = vmatprep.subr.bf16.mxu0 %v4985_v1  ;;  %v4990_v4 = vld [vmem:[#allocation8 + $0x60] ss:$8 sps:$4 sm:$0xff]   ;;  %v4991_v5 = vld [vmem:[#allocation8 + $0x54] ss:$8 sps:$4 sm:$0xff]  }
  0x9f   : > { %1043 = vmatpush1.bf16.msra.mxu0 %v4987_v2  ;;  %v4993_v6 = vld [vmem:[#allocation8 + $0x50] ss:$8 sps:$4 sm:$0xff]   ;;  %v4994_v7 = vld [vmem:[#allocation8 + $0x44] ss:$8 sps:$4 sm:$0xff]   ;;  %p685_p0 = scmp.lt.s32.totalorder %s5767_s9, 1  ;;  %s6863_s16 = sld [smem:[#allocation33_spill]] }
  0xa0   : > { %1044 = vmatprep.subr.bf16.mxu0 %v4988_v3  ;;  %v4996_v8 = vld [vmem:[#allocation8 + $0x40] ss:$8 sps:$4 sm:$0xff]   ;;  %v4997_v9 = vld [vmem:[#allocation8 + $0x34] ss:$8 sps:$4 sm:$0xff]   ;;  %v4999_v10 = vld [vmem:[#allocation8 + $0x30] ss:$8 sps:$4 sm:$0xff]  }
  0xa1   : > { %s5981_s28 = scalar_select %p685_p0, %s5767_s9, 1  ;;  %v5000_v11 = vld [vmem:[#allocation8 + $0x24] ss:$8 sps:$4 sm:$0xff]   ;;  %v5002_v12 = vld [vmem:[#allocation8 + $0x20] ss:$8 sps:$4 sm:$0xff]   ;;  %vm757_vm0 = vcmask 261120  }
  0xa2   : > { %v5003_v13 = vld [vmem:[#allocation8 + $0x14] ss:$8 sps:$4 sm:$0xff]   ;;  %v5005_v15 = vld [vmem:[#allocation8 + $0x10] ss:$8 sps:$4 sm:$0xff]   ;;  %v5006_v16 = vld [vmem:[#allocation8 + $0x4] ss:$8 sps:$4 sm:$0xff]  }
  0xa3   : > { %1045 = vmatpush1.bf16.msra.mxu0 %v4990_v4  ;;  %s4570_s22 = sshll.u32 %s5981_s28, 6  ;;  %s4571_s20 = sshll.u32 %s5981_s28, 5  ;;  %v5008_v17 = vld [vmem:[#allocation8] ss:$8 sps:$4 sm:$0xff]   ;;  %v5009_v18 = vld [vmem:[#allocation8 + $0xf4] ss:$8 sps:$4 sm:$0xff]  }
  0xa4   : > { %1046 = vmatprep.subr.bf16.mxu0 %v4991_v5  ;;  %s694_s27 = scalar_lea.vmem %s6788_s1, %s4571_s20  ;;  %v5011_v29 = vld [vmem:[#allocation8 + $0xf0] ss:$8 sps:$4 sm:$0xff]   ;;  %v5012_v32 = vld [vmem:[#allocation8 + $0xe4] ss:$8 sps:$4 sm:$0xff]   ;;  %v5014_v40 = vld [vmem:[#allocation8 + $0xe0] ss:$8 sps:$4 sm:$0xff]  }
  0xa5   : > { %s5987_s0 = scalar_lea.vmem %s6863_s16, %s4570_s22  ;;  %v4575_v21 = vld [vmem:[%s694_s27] sm:$0xff]   ;;  %v4606_v25 = vld [vmem:[%s694_s27 + $0x8] sm:$0xff]   ;;  %v4607_v26 = vld [vmem:[%s694_s27 + $0x10] sm:$0xff]   ;;  %v6027_v62 = vshrl.u32 %v816_v61, 7  ;;  %vm1390_vm1 = vcmask 523264   ;;  %s5652_s28 = smov 96  }
  0xa6   : > { %v5035_v14 = vld [vmem:[%s5987_s0 + $0x4] ss:$8 sps:$4 sm:$0xff]   ;;  %v6000_v20 = vld [vmem:[%s5987_s0 + $0x34] ss:$8 sps:$4 sm:$0xff]   ;;  %v6003_v22 = vld [vmem:[%s5987_s0 + $0x30] ss:$8 sps:$4 sm:$0xff]   ;;  %v4576_v23 = vunpack.c.l.bf16 %v4575_v21  ;;  %v4577_v24 = vunpack.c.h.bf16 %v4575_v21  ;;  %v4580_v27 = vunpack.c.l.bf16 %v4606_v25  ;;  %v4581_v28 = vunpack.c.h.bf16 %v4606_v25 }
  0xa7   : > { %1047 = vmatpush1.bf16.msra.mxu0 %v4993_v6  ;;  %1074 = vmatprep.mubr.bf16.mxu0 %v5035_v14  ;;  %v5997_v19 = vld [vmem:[%s5987_s0 + $0x24] ss:$8 sps:$4 sm:$0xff]   ;;  %v6007_v30 = vld [vmem:[%s5987_s0 + $0x20] ss:$8 sps:$4 sm:$0xff]   ;;  %v5036_v33 = vld [vmem:[%s5987_s0 + $0x14] ss:$8 sps:$4 sm:$0xff]   ;;  %v4584_v37 = vunpack.c.l.bf16 %v4607_v26  ;;  %v4585_v39 = vunpack.c.h.bf16 %v4607_v26 }
  0xa8   : > { %1048 = vmatprep.subr.bf16.mxu0 %v4994_v7  ;;  %1405 = vmatprep.subr.bf16.mxu1 %v6000_v20  ;;  %v758_v31 = vsel %vm757_vm0, %v4576_v23, 0.0  ;;  %v764_v34 = vsel %vm757_vm0, %v4580_v27, 0.0  ;;  %v4608_v35 = vld [vmem:[%s694_s27 + $0x18] sm:$0xff]   ;;  %v761_v36 = vsel %vm757_vm0, %v4577_v24, 0.0  ;;  %v767_v38 = vsel %vm757_vm0, %v4581_v28, 0.0  ;;  %s5654_s27 = smov 32  }
  0xa9   : > { %1406 = vmatpush1.bf16.msra.mxu1 %v6003_v22  ;;  %759 = vadd.xlane.f32.xlu0 %v758_v31  ;;  %v5038_v41 = vld [vmem:[%s5987_s0 + $0x10] ss:$8 sps:$4 sm:$0xff]   ;;  %v770_v43 = vsel %vm757_vm0, %v4584_v37, 0.0  ;;  %v4588_v44 = vunpack.c.l.bf16 %v4608_v35  ;;  %v773_v45 = vsel %vm757_vm0, %v4585_v39, 0.0  ;;  %v4589_v46 = vunpack.c.h.bf16 %v4608_v35  ;;  %v5033_v49 = vld [vmem:[%s5987_s0] ss:$8 sps:$4 sm:$0xff]   ;;  %s699_s0 = scalar_lea.vmem %s6789_s2, %s4571_s20 }
  0xaa   : > { %1407 = vmatprep.subr.bf16.mxu1 %v5997_v19  ;;  %765 = vadd.xlane.f32.xlu1 %v764_v34  ;;  %v5015_v42 = vld [vmem:[#allocation8 + $0xd4] ss:$8 sps:$4 sm:$0xff]   ;;  %v5017_v47 = vld [vmem:[#allocation8 + $0xd0] ss:$8 sps:$4 sm:$0xff]   ;;  %v5018_v48 = vld [vmem:[#allocation8 + $0xc4] ss:$8 sps:$4 sm:$0xff]  }
  0xab   : > { %1049 = vmatpush1.bf16.msra.mxu0 %v4996_v8  ;;  %v776_v50 = vsel %vm757_vm0, %v4588_v44, 0.0  ;;  %v779_v51 = vsel %vm757_vm0, %v4589_v46, 0.0  ;;  %v5020_v52 = vld [vmem:[#allocation8 + $0xc0] ss:$8 sps:$4 sm:$0xff]   ;;  %v5021_v53 = vld [vmem:[#allocation8 + $0xb4] ss:$8 sps:$4 sm:$0xff]  }
  0xac   : > { %1050 = vmatprep.subr.bf16.mxu0 %v4997_v9  ;;  %v5023_v54 = vld [vmem:[#allocation8 + $0xb0] ss:$8 sps:$4 sm:$0xff]   ;;  %v5024_v55 = vld [vmem:[#allocation8 + $0xa4] ss:$8 sps:$4 sm:$0xff]   ;;  %v5026_v56 = vld [vmem:[#allocation8 + $0xa0] ss:$8 sps:$4 sm:$0xff]  }
  0xad   : > { %1408 = vmatpush1.bf16.msra.mxu1 %v6007_v30  ;;  %762 = vadd.xlane.f32.xlu0 %v761_v36  ;;  %v5027_v57 = vld [vmem:[#allocation8 + $0x94] ss:$8 sps:$4 sm:$0xff]   ;;  %v5029_v58 = vld [vmem:[#allocation8 + $0x90] ss:$8 sps:$4 sm:$0xff]   ;;  %v5030_v59 = vld [vmem:[#allocation8 + $0x84] ss:$8 sps:$4 sm:$0xff]  }
  0xae   : > { %1409 = vmatprep.subr.bf16.mxu1 %v5036_v33  ;;  %768 = vadd.xlane.f32.xlu1 %v767_v38  ;;  %v5032_v60 = vld [vmem:[#allocation8 + $0x80] ss:$8 sps:$4 sm:$0xff]   ;;  %v6030_v63 = vsub.s32 0, %v6027_v62  ;;  %v6036_v1 = vsub.s32 1, %v6027_v62  ;;  %s5653_s20 = smov 64   ;;  %vm3847_vm2 = vcmask 785408  }
  0xaf   : > { %1051 = vmatpush1.bf16.msra.mxu0 %v4999_v10  ;;  %v814_v0 = vld [vmem:[%s6793_s6] sm:$0x3]  ;;  %s684_s30 = scalar_lea.vmem [#allocation14], %s5949_s5  ;;  %s4573_s19 = sshll.u32 %s5767_s9, 10 }
  0xb0   : > { %1052 = vmatprep.subr.bf16.mxu0 %v5000_v11  ;;  %v6039_v3 = vrot.slane %v814_v0, %v6030_v63  ;;  %v6042_v4 = vrot.slane %v814_v0, %v6036_v1  ;;  %v1115_v5 = vld [vmem:[%s6794_s7] sm:$0x3]  ;;  %s4155_s5 = sshll.u32 %s684_s30, 4  ;;  %s6879_s14 = sld [smem:[#allocation39_spill]]  ;;  %s6737_s5 = int_to_ptr.vmem [resolvable:$true] %s4155_s5 }
  0xb1   : > { %1410 = vmatpush1.bf16.msra.mxu1 %v5038_v41  ;;  %771 = vadd.xlane.f32.xlu0 %v770_v43  ;;  %v6049_v8 = vrot.slane %v1115_v5, %v6030_v63  ;;  %s4142_s9 = scalar_lea.sflag [#allocation5], %s5946_s3  ;;  %p6881_p3 = scmp.ne.s32.totalorder %s6851_s29, 0 }
  0xb2   : > { %1411 = vmatprep.subr.bf16.mxu1 %v5035_v14  ;;  %774 = vadd.xlane.f32.xlu1 %v773_v45 }
  0xb3   : > { %1053 = vmatpush1.bf16.msra.mxu0 %v5002_v12 }
  0xb4   : > { %1054 = vmatprep.subr.bf16.mxu0 %v5003_v13  ;;  %v6053_v13 = vrot.slane %v1115_v5, %v6036_v1 }
  0xb5   : > { %1412 = vmatpush1.bf16.msra.mxu1 %v5033_v49  ;;  %777 = vadd.xlane.f32.xlu0 %v776_v50 }
  0xb6   : > { %780 = vadd.xlane.f32.xlu1 %v779_v51  ;;  %s6743_s16 = scalar_lea.hbm %s6879_s14, %s4573_s19 }
  0xb7   : > { %1055 = vmatpush1.bf16.msra.mxu0 %v5005_v15  ;;  %v1159_v15 = vld [vmem:[%s6795_s8] sm:$0x3] }
  0xb8   : > { %1056 = vmatprep.subr.bf16.mxu0 %v5006_v16  ;;  %v6062_v21 = vrot.slane %v1159_v15, %v6030_v63 }
  0xbb   : > { %1057 = vmatpush1.bf16.msra.mxu0 %v5008_v17 }
  0xbc   : > { %1058 = vmatprep.subr.bf16.mxu0 %v5009_v18 }
  0xbf   : > { %1059 = vmatpush2.bf16.msra.mxu0 %v5011_v29 }
  0xc0   : > { %1060 = vmatprep.subr.bf16.mxu0 %v5012_v32 }
  0xc3   : > { %1061 = vmatpush2.bf16.msra.mxu0 %v5014_v40 }
  0xc4   : > { %1062 = vmatprep.subr.bf16.mxu0 %v5015_v42 }
  0xc7   : > { %1063 = vmatpush2.bf16.msra.mxu0 %v5017_v47 }
  0xc8   : > { %1064 = vmatprep.subr.bf16.mxu0 %v5018_v48 }
  0xcb   : > { %1065 = vmatpush2.bf16.msra.mxu0 %v5020_v52 }
  0xcc   : > { %1066 = vmatprep.subr.bf16.mxu0 %v5021_v53 }
  0xcf   : > { %1067 = vmatpush2.bf16.msra.mxu0 %v5023_v54 }
  0xd0   : > { %1068 = vmatprep.subr.bf16.mxu0 %v5024_v55 }
  0xd3   : > { %1069 = vmatpush2.bf16.msra.mxu0 %v5026_v56 }
  0xd4   : > { %1070 = vmatprep.subr.bf16.mxu0 %v5027_v57 }
  0xd7   : > { %1071 = vmatpush2.bf16.msra.mxu0 %v5029_v58 }
  0xd8   : > { %1072 = vmatprep.subr.bf16.mxu0 %v5030_v59 }
  0xdb   : > { %1073 = vmatpush2.bf16.msra.mxu0 %v5032_v60 }
  0xde   : > { %1075 = vmatmul.mubr.bf16.vlgmr.msra.gmra.mxu0 %v5033_v49 }
  0xdf   : > { %1084 = vmatprep.mubr.bf16.mxu0 %v5036_v33 }
  0xe6   : > { %1085 = vmatmul.mubr.bf16.gmra.mxu0 %v5038_v41 }
  0xe7   : > { %1094 = vmatprep.mubr.bf16.mxu0 %v5997_v19 }
  0xee   : > { %1095 = vmatmul.mubr.bf16.gmra.mxu0 %v6007_v30 }
  0xef   : > { %1104 = vmatprep.mubr.bf16.mxu0 %v6000_v20 }
  0xf6   : > { %1105 = vmatmul.mubr.bf16.gmra.mxu0 %v6003_v22  ;;  %v6065_v22 = vrot.slane %v1159_v15, %v6036_v1 }
 0x132   : > { %v760_v2 = vpop.xlane.xlu0 %759 }
 0x133   : > { %v826_v6 = vmul.f32 %v6039_v3, %v760_v2  ;;  %v827_v9 = vmul.f32 %v6042_v4, %v760_v2  ;;  %v766_v10 = vpop.xlane.xlu1 %765 }
 0x134   : > { %v830_v26 = vmul.f32 %v6039_v3, %v766_v10  ;;  %v831_v32 = vmul.f32 %v6042_v4, %v766_v10 }
 0x136   : > { %v763_v7 = vpop.xlane.xlu0 %762 }
 0x137   : > { %v828_v14 = vmul.f32 %v6039_v3, %v763_v7  ;;  %v829_v19 = vmul.f32 %v6042_v4, %v763_v7  ;;  %v769_v27 = vpop.xlane.xlu1 %768 }
 0x138   : > { %v832_v34 = vmul.f32 %v6039_v3, %v769_v27  ;;  %v833_v42 = vmul.f32 %v6042_v4, %v769_v27 }
 0x13a   : > { %v772_v40 = vpop.xlane.xlu0 %771 }
 0x13b   : > { %v834_v48 = vmul.f32 %v6039_v3, %v772_v40  ;;  %v775_v54 = vpop.xlane.xlu1 %774  ;;  %v835_v56 = vmul.f32 %v6042_v4, %v772_v40 }
 0x13c   : > { %v836_v0 = vmul.f32 %v6039_v3, %v775_v54 }
 0x13e   : > { %v778_v10 = vpop.xlane.xlu0 %777 }
 0x13f   : > { %v781_v27 = vpop.xlane.xlu1 %780 }
 0x19e   : > { %v1076_v11 = vpop.f32.mrf.mxu0 }
 0x19f   : > { %v1077_v12 = vadd.f32 %v1076_v11, %v826_v6 }
 0x1a0   : > { %v1078_v16 = vpop.f32.mrf.mxu0 }
 0x1a1   : > { %v1127_v17 = vadd.f32 %v6049_v8, %v1077_v12  ;;  %v1079_v18 = vadd.f32 %v1078_v16, %v827_v9  ;;  %v837_v12 = vmul.f32 %v6042_v4, %v775_v54 }
 0x1a2   : > { %v1080_v20 = vpop.f32.mrf.mxu0 }
 0x1a3   : > { %v1143_v23 = vmax.f32 %v1127_v17, 0.0  ;;  %v1128_v24 = vadd.f32 %v6053_v13, %v1079_v18  ;;  %v1081_v25 = vadd.f32 %v1080_v20, %v828_v14 }
 0x1a4   : > { %v1082_v28 = vpop.f32.mrf.mxu0 }
 0x1a5   : > { %v1144_v29 = vmax.f32 %v1128_v24, 0.0  ;;  %v1129_v30 = vadd.f32 %v6049_v8, %v1081_v25  ;;  %v1083_v31 = vadd.f32 %v1082_v28, %v829_v19  ;;  %v1171_v35 = vmul.f32 %v6062_v21, %v1143_v23 }
 0x1a6   : > { %v1086_v33 = vpop.f32.mrf.mxu0  ;;  %v838_v19 = vmul.f32 %v6039_v3, %v778_v10 }
 0x1a7   : > { %v1145_v36 = vmax.f32 %v1129_v30, 0.0  ;;  %v1130_v37 = vadd.f32 %v6053_v13, %v1083_v31  ;;  %v1087_v38 = vadd.f32 %v1086_v33, %v830_v26  ;;  %v1172_v39 = vmul.f32 %v6065_v22, %v1144_v29 }
 0x1a8   : > { %v1088_v41 = vpop.f32.mrf.mxu0  ;;  %v839_v29 = vmul.f32 %v6042_v4, %v778_v10 }
 0x1a9   : > { %v1146_v43 = vmax.f32 %v1130_v37, 0.0  ;;  %v1131_v44 = vadd.f32 %v6049_v8, %v1087_v38  ;;  %v1089_v45 = vadd.f32 %v1088_v41, %v831_v32  ;;  %v1187_v46 = vadd.f32 %v1172_v39, %v1171_v35 }
 0x1aa   : > { %v1090_v47 = vpop.f32.mrf.mxu0  ;;  %v1173_v49 = vmul.f32 %v6062_v21, %v1145_v36  ;;  %v840_v35 = vmul.f32 %v6039_v3, %v781_v27 }
 0x1ab   : > { %v1147_v50 = vmax.f32 %v1131_v44, 0.0  ;;  %v1132_v51 = vadd.f32 %v6053_v13, %v1089_v45  ;;  %v1091_v52 = vadd.f32 %v1090_v47, %v832_v34  ;;  %1188 = vadd.xlane.f32.xlu0 %v1187_v46  ;;  %v1174_v53 = vmul.f32 %v6065_v22, %v1146_v43 }
 0x1ac   : > { %v1092_v55 = vpop.f32.mrf.mxu0 }
 0x1ad   : > { %v1148_v57 = vmax.f32 %v1132_v51, 0.0  ;;  %v1133_v58 = vadd.f32 %v6049_v8, %v1091_v52  ;;  %v1093_v59 = vadd.f32 %v1092_v55, %v833_v42  ;;  %v1190_v60 = vadd.f32 %v1174_v53, %v1173_v49 }
 0x1ae   : > { %v1096_v61 = vpop.f32.mrf.mxu0  ;;  %v1175_v2 = vmul.f32 %v6062_v21, %v1147_v50  ;;  %v841_v42 = vmul.f32 %v6042_v4, %v781_v27 }
 0x1af   : > { %v1149_v5 = vmax.f32 %v1133_v58, 0.0  ;;  %v1134_v6 = vadd.f32 %v6053_v13, %v1093_v59  ;;  %v1097_v7 = vadd.f32 %v1096_v61, %v834_v48  ;;  %1191 = vadd.xlane.f32.xlu1 %v1190_v60  ;;  %v1176_v9 = vmul.f32 %v6065_v22, %v1148_v57 }
 0x1b0   : > { %v1098_v11 = vpop.f32.mrf.mxu0 }
 0x1b1   : > { %v1150_v14 = vmax.f32 %v1134_v6, 0.0  ;;  %v1135_v15 = vadd.f32 %v6049_v8, %v1097_v7  ;;  %v1099_v16 = vadd.f32 %v1098_v11, %v835_v56  ;;  %v1193_v17 = vadd.f32 %v1176_v9, %v1175_v2 }
 0x1b2   : > { %v1100_v18 = vpop.f32.mrf.mxu0  ;;  %v1177_v20 = vmul.f32 %v6062_v21, %v1149_v5 }
 0x1b3   : > { %v1151_v23 = vmax.f32 %v1135_v15, 0.0  ;;  %v1136_v24 = vadd.f32 %v6053_v13, %v1099_v16  ;;  %v1101_v25 = vadd.f32 %v1100_v18, %v836_v0  ;;  %1194 = vadd.xlane.f32.xlu0 %v1193_v17  ;;  %v1178_v26 = vmul.f32 %v6065_v22, %v1150_v14 }
 0x1b4   : > { %v1102_v28 = vpop.f32.mrf.mxu0 }
 0x1b5   : > { %v1152_v30 = vmax.f32 %v1136_v24, 0.0  ;;  %v1137_v31 = vadd.f32 %v6049_v8, %v1101_v25  ;;  %v1103_v32 = vadd.f32 %v1102_v28, %v837_v12  ;;  %v1196_v33 = vadd.f32 %v1178_v26, %v1177_v20 }
 0x1b6   : > { %v1106_v34 = vpop.f32.mrf.mxu0  ;;  %v1179_v36 = vmul.f32 %v6062_v21, %v1151_v23 }
 0x1b7   : > { %v1153_v37 = vmax.f32 %v1137_v31, 0.0  ;;  %v1138_v38 = vadd.f32 %v6053_v13, %v1103_v32  ;;  %v1107_v39 = vadd.f32 %v1106_v34, %v838_v19  ;;  %1197 = vadd.xlane.f32.xlu1 %v1196_v33  ;;  %v1180_v40 = vmul.f32 %v6065_v22, %v1152_v30 }
 0x1b8   : > { %v1108_v41 = vpop.f32.mrf.mxu0 }
 0x1b9   : > { %v1154_v43 = vmax.f32 %v1138_v38, 0.0  ;;  %v1139_v44 = vadd.f32 %v6049_v8, %v1107_v39  ;;  %v1109_v45 = vadd.f32 %v1108_v41, %v839_v29  ;;  %v1199_v46 = vadd.f32 %v1180_v40, %v1179_v36 }
 0x1ba   : > { %v1110_v47 = vpop.f32.mrf.mxu0  ;;  %v1181_v3 = vmul.f32 %v6062_v21, %v1153_v37 }
 0x1bb   : > { %v1155_v48 = vmax.f32 %v1139_v44, 0.0  ;;  %v1140_v49 = vadd.f32 %v6053_v13, %v1109_v45  ;;  %v1111_v50 = vadd.f32 %v1110_v47, %v840_v35  ;;  %1200 = vadd.xlane.f32.xlu0 %v1199_v46  ;;  %v1182_v51 = vmul.f32 %v6065_v22, %v1154_v43 }
 0x1bc   : > { %v1112_v52 = vpop.f32.mrf.mxu0 }
 0x1bd   : > { %v1156_v53 = vmax.f32 %v1140_v49, 0.0  ;;  %v1141_v54 = vadd.f32 %v6049_v8, %v1111_v50  ;;  %v1113_v4 = vadd.f32 %v1112_v52, %v841_v42  ;;  %v1202_v55 = vadd.f32 %v1182_v51, %v1181_v3 }
 0x1be   : > { %v1183_v58 = vmul.f32 %v6062_v21, %v1155_v48  ;;  %v5651_v8 = vmov 0  }
 0x1bf   : > { %v1157_v56 = vmax.f32 %v1141_v54, 0.0  ;;  %v1142_v57 = vadd.f32 %v6053_v13, %v1113_v4  ;;  %1203 = vadd.xlane.f32.xlu1 %v1202_v55  ;;  %v1184_v59 = vmul.f32 %v6065_v22, %v1156_v53  ;;  %4923 = vset.pattern.permute.xlu0 %v5651_v8  ;;  %v4392_v13 = vld [vmem:[#allocation2] ss:$0 sm:$0xff] }
 0x1c0   : > { %4924 = vset.pattern.permute.xlu1 %v5651_v8  ;;  %1429 = vmatprep.mubr.bf16.mxu1 %v5651_v8 }
 0x1c1   : > { %v1158_v60 = vmax.f32 %v1142_v57, 0.0  ;;  %v1205_v61 = vadd.f32 %v1184_v59, %v1183_v58  ;;  %v1185_v0 = vmul.f32 %v6062_v21, %v1157_v56  ;;  %v4591_v56 = vld [vmem:[%s699_s0] sm:$0xff]   ;;  %v4609_v57 = vld [vmem:[%s699_s0 + $0x8] sm:$0xff]  }
 0x1c2   : > { %v4593_v58 = vunpack.c.h.bf16 %v4591_v56  ;;  %v4592_v59 = vunpack.c.l.bf16 %v4591_v56 }
 0x1c3   : > { %1206 = vadd.xlane.f32.xlu0 %v1205_v61  ;;  %v1186_v2 = vmul.f32 %v6065_v22, %v1158_v60  ;;  %v4596_v60 = vunpack.c.l.bf16 %v4609_v57 }
 0x1c5   : > { %v1208_v5 = vadd.f32 %v1186_v2, %v1185_v0  ;;  %v4610_v2 = vld [vmem:[%s699_s0 + $0x10] sm:$0xff]  }
 0x1c7   : > { %1209 = vadd.xlane.f32.xlu1 %v1208_v5 }
 0x234   : > { %v1189_v6 = vpop.xlane.xlu0 %1188 }
 0x235   : > { %v1218_v7 = vadd.f32 %v4392_v13, %v1189_v6 }
 0x237   : > { %v4393_v9 = vmul.f32 -1.442695, %v1218_v7 }
 0x238   : > { %v1192_v10 = vpop.xlane.xlu1 %1191 }
 0x239   : > { %5237 = vpow2.f32 %v4393_v9  ;;  %v1219_v11 = vadd.f32 %v4392_v13, %v1192_v10  ;;  %v4600_v9 = vunpack.c.l.bf16 %v4610_v2 }
 0x23b   : > { %v4394_v12 = vmul.f32 -1.442695, %v1219_v11 }
 0x23c   : > { %v1195_v21 = vpop.xlane.xlu0 %1194 }
 0x23d   : > { %5239 = vpow2.f32 %v4394_v12  ;;  %v1220_v22 = vadd.f32 %v4392_v13, %v1195_v21  ;;  %v4601_v21 = vunpack.c.h.bf16 %v4610_v2  ;;  %v5066_v2 = vld [vmem:[#allocation9 + $0x88] ss:$16 sps:$4 sm:$0xff]  }
 0x23f   : > { %v4395_v14 = vmul.f32 -1.442695, %v1220_v22  ;;  %v4611_v22 = vld [vmem:[%s699_s0 + $0x18] sm:$0xff]   ;;  %s5559_s0 = scalar_lea.vmem %s6737_s5, 1024 }
 0x240   : > { %v1198_v15 = vpop.xlane.xlu1 %1197  ;;  %p5560_p10 = scmp.ne.s32.totalorder %s6737_s5, %s5559_s0 }
 0x241   : > { %5241 = vpow2.f32 %v4395_v14  ;;  %v1221_v16 = vadd.f32 %v4392_v13, %v1198_v15 }
 0x242   : > { %p5561_p2 = pnand %p5560_p10, %p6881_p3 }
 0x243   : > { %v4396_v17 = vmul.f32 -1.442695, %v1221_v16 }
 0x244   : > { %v1201_v18 = vpop.xlane.xlu0 %1200  ;;  %p5562_p4 = pneg %p5561_p2 }
 0x245   : > { %5243 = vpow2.f32 %v4396_v17  ;;  %v1222_v19 = vadd.f32 %v4392_v13, %v1201_v18 }
 0x246   : > { %v5238_v20 = vpop.eup %5237 }
 0x247   : > { %v1250_v23 = vadd.f32 1.0, %v5238_v20  ;;  %v4397_v24 = vmul.f32 -1.442695, %v1222_v19 }
 0x248   : > { %v1204_v25 = vpop.xlane.xlu1 %1203 }
 0x249   : > { %5245 = vrcp.f32 %v1250_v23  ;;  %v1223_v26 = vadd.f32 %v4392_v13, %v1204_v25  ;;  %v4604_v23 = vunpack.c.l.bf16 %v4611_v22 }
 0x24a   : > { %v5240_v27 = vpop.eup %5239  ;;  %5247 = vpow2.f32 %v4397_v24 }
 0x24b   : > { %v1251_v28 = vadd.f32 1.0, %v5240_v27  ;;  %v4398_v29 = vmul.f32 -1.442695, %v1223_v26 }
 0x24c   : > { %v1207_v30 = vpop.xlane.xlu0 %1206 }
 0x24d   : > { %5249 = vrcp.f32 %v1251_v28  ;;  %v1224_v31 = vadd.f32 %v4392_v13, %v1207_v30  ;;  %v4605_v30 = vunpack.c.h.bf16 %v4611_v22  ;;  %v5098_v22 = vld [vmem:[#allocation9 + $0x1ec] ss:$16 sps:$4 sm:$0xff]  }
 0x24e   : > { %v5242_v32 = vpop.eup %5241  ;;  %5251 = vpow2.f32 %v4398_v29 }
 0x24f   : > { %v1252_v33 = vadd.f32 1.0, %v5242_v32  ;;  %v4399_v34 = vmul.f32 -1.442695, %v1224_v31 }
 0x250   : > { %v1210_v35 = vpop.xlane.xlu1 %1209 }
 0x251   : > { %5253 = vrcp.f32 %v1252_v33  ;;  %v1225_v36 = vadd.f32 %v4392_v13, %v1210_v35  ;;  %v4597_v13 = vunpack.c.h.bf16 %v4609_v57  ;;  %v5054_v57 = vld [vmem:[#allocation9 + $0xc8] ss:$16 sps:$4 sm:$0xff]  }
 0x252   : > { %v5244_v37 = vpop.eup %5243  ;;  %5255 = vpow2.f32 %v4399_v34 }
 0x253   : > { %v1253_v38 = vadd.f32 1.0, %v5244_v37  ;;  %v4400_v39 = vmul.f32 -1.442695, %v1225_v36 }
 0x255   : > { %5257 = vrcp.f32 %v1253_v38 }
 0x256   : > { %v5246_v40 = vpop.eup %5245  ;;  %5259 = vpow2.f32 %v4400_v39 }
 0x257   : > { %v5248_v41 = vpop.eup %5247  ;;  %1276 = vperm.xlu0 %4923, %v5246_v40  }
 0x258   : > { %v1254_v42 = vadd.f32 1.0, %v5248_v41 }
 0x25a   : > { %v5250_v43 = vpop.eup %5249  ;;  %5261 = vrcp.f32 %v1254_v42 }
 0x25b   : > { %v5252_v44 = vpop.eup %5251  ;;  %1281 = vperm.xlu1 %4924, %v5250_v43  }
 0x25c   : > { %v1255_v45 = vadd.f32 1.0, %v5252_v44 }
 0x25e   : > { %v5254_v46 = vpop.eup %5253  ;;  %5263 = vrcp.f32 %v1255_v45 }
 0x25f   : > { %v5256_v47 = vpop.eup %5255  ;;  %1286 = vperm.xlu1 %4924, %v5254_v46  }
 0x260   : > { %v1256_v3 = vadd.f32 1.0, %v5256_v47 }
 0x262   : > { %v5258_v48 = vpop.eup %5257  ;;  %5265 = vrcp.f32 %v1256_v3 }
 0x263   : > { %v5260_v49 = vpop.eup %5259  ;;  %1291 = vperm.xlu1 %4924, %v5258_v48  }
 0x264   : > { %v1257_v50 = vadd.f32 1.0, %v5260_v49 }
 0x266   : > { %5267 = vrcp.f32 %v1257_v50 }
 0x267   : > { %v5262_v51 = vpop.eup %5261 }
 0x268   : > { %1296 = vperm.xlu1 %4924, %v5262_v51  }
 0x26b   : > { %v5264_v52 = vpop.eup %5263 }
 0x26c   : > { %1301 = vperm.xlu1 %4924, %v5264_v52  }
 0x26f   : > { %v5266_v53 = vpop.eup %5265 }
 0x270   : > { %1306 = vperm.xlu1 %4924, %v5266_v53   ;;  %v5047_v53 = vld [vmem:[#allocation9 + $0xe4] ss:$16 sps:$4 sm:$0xff]  }
 0x271   : > { %1880 = vmatprep.subr.bf16.mxu1 %v5047_v53  ;;  %v5117_v53 = vld [vmem:[#allocation9 + $0x160] ss:$16 sps:$4 sm:$0xff]  }
 0x273   : > { %v5268_v54 = vpop.eup %5267 }
 0x274   : > { %1311 = vperm.xlu1 %4924, %v5268_v54   ;;  %v5048_v54 = vld [vmem:[#allocation9 + $0xe8] ss:$16 sps:$4 sm:$0xff]  }
 0x2d2   : > { %v1277_v0 = vpop.permute.xlu0 %1276 }
 0x2d3   : > { %v1314_v6 = vmul.f32 %v4592_v59, %v1277_v0 }
 0x2d5   : > { %v1322_v14 = vsel %vm757_vm0, %v1314_v6, 0.0 }
 0x2d6   : > { %v1282_v4 = vpop.permute.xlu1 %1281 }
 0x2d7   : > { %v1315_v5 = vmul.f32 %v4593_v58, %v1282_v4  ;;  %v5050_v4 = vld [vmem:[#allocation9 + $0xec] ss:$16 sps:$4 sm:$0xff]  }
 0x2d8   : > { %1933 = vmatprep.subr.bf16.mxu0 %v5050_v4  ;;  %v5062_v58 = vld [vmem:[#allocation9 + $0xac] ss:$16 sps:$4 sm:$0xff]   ;;  %v5123_v4 = vld [vmem:[#allocation9 + $0x140] ss:$16 sps:$4 sm:$0xff]  }
 0x2d9   : > { %v1323_v11 = vsel %vm757_vm0, %v1315_v5, 0.0  ;;  %1934 = vmatpush1.bf16.msra.mxu0 %v5048_v54  ;;  %v5125_v54 = vld [vmem:[#allocation9 + $0x144] ss:$16 sps:$4 sm:$0xff]  }
 0x2da   : > { %v1287_v55 = vpop.permute.xlu1 %1286  ;;  %v1324_v17 = vadd.f32 %v1323_v11, %v1322_v14  ;;  %v5084_v11 = vld [vmem:[#allocation9 + $0x28] ss:$16 sps:$4 sm:$0xff]  }
 0x2db   : > { %v1316_v7 = vmul.f32 %v4596_v60, %v1287_v55  ;;  %v5056_v55 = vld [vmem:[#allocation9 + $0xcc] ss:$16 sps:$4 sm:$0xff]   ;;  %v5060_v60 = vld [vmem:[#allocation9 + $0xa8] ss:$16 sps:$4 sm:$0xff]  }
 0x2dc   : > { %1935 = vmatprep.subr.bf16.mxu0 %v5056_v55  ;;  %v5096_v14 = vld [vmem:[#allocation9 + $0x1e8] ss:$16 sps:$4 sm:$0xff]   ;;  %v5128_v55 = vld [vmem:[#allocation9 + $0x14c] ss:$16 sps:$4 sm:$0xff]  }
 0x2dd   : > { %v1325_v15 = vsel %vm757_vm0, %v1316_v7, 0.0  ;;  %1936 = vmatpush1.bf16.msra.mxu0 %v5054_v57  ;;  %v5131_v57 = vld [vmem:[#allocation9 + $0x124] ss:$16 sps:$4 sm:$0xff]  }
 0x2de   : > { %v1292_v61 = vpop.permute.xlu1 %1291  ;;  %v1326_v24 = vadd.f32 %v1325_v15, %v1324_v17  ;;  %1937 = vmatprep.subr.bf16.mxu0 %v5062_v58  ;;  %v5104_v15 = vld [vmem:[#allocation9 + $0x1cc] ss:$16 sps:$4 sm:$0xff]   ;;  %v5129_v58 = vld [vmem:[#allocation9 + $0x120] ss:$16 sps:$4 sm:$0xff]  }
 0x2df   : > { %v1317_v12 = vmul.f32 %v4597_v13, %v1292_v61  ;;  %v5068_v61 = vld [vmem:[#allocation9 + $0x8c] ss:$16 sps:$4 sm:$0xff]  }
 0x2e0   : > { %v5110_v17 = vld [vmem:[#allocation9 + $0x1ac] ss:$16 sps:$4 sm:$0xff]  }
 0x2e1   : > { %v1327_v19 = vsel %vm757_vm0, %v1317_v12, 0.0  ;;  %1938 = vmatpush1.bf16.msra.mxu0 %v5060_v60  ;;  %v5134_v60 = vld [vmem:[#allocation9 + $0x12c] ss:$16 sps:$4 sm:$0xff]  }
 0x2e2   : > { %v1328_v26 = vadd.f32 %v1327_v19, %v1326_v24  ;;  %1939 = vmatprep.subr.bf16.mxu0 %v5068_v61  ;;  %v5116_v19 = vld [vmem:[#allocation9 + $0x18c] ss:$16 sps:$4 sm:$0xff]   ;;  %v5120_v24 = vld [vmem:[#allocation9 + $0x168] ss:$16 sps:$4 sm:$0xff]   ;;  %v5137_v61 = vld [vmem:[#allocation9 + $0x104] ss:$16 sps:$4 sm:$0xff]  }
 0x2e3   : > { %v1297_v10 = vpop.permute.xlu1 %1296 }
 0x2e4   : > { %v1318_v16 = vmul.f32 %v4600_v9, %v1297_v10  ;;  %v5078_v9 = vld [vmem:[#allocation9 + $0x48] ss:$16 sps:$4 sm:$0xff]   ;;  %v5086_v10 = vld [vmem:[#allocation9 + $0x2c] ss:$16 sps:$4 sm:$0xff]  }
 0x2e5   : > { %1940 = vmatpush1.bf16.msra.mxu0 %v5066_v2  ;;  %v5138_v2 = vld [vmem:[#allocation9 + $0x108] ss:$16 sps:$4 sm:$0xff]  }
 0x2e6   : > { %v1329_v25 = vsel %vm757_vm0, %v1318_v16, 0.0 }
 0x2e7   : > { %v1302_v18 = vpop.permute.xlu1 %1301  ;;  %v1330_v31 = vadd.f32 %v1329_v25, %v1328_v26 }
 0x2e8   : > { %v1319_v20 = vmul.f32 %v4601_v21, %v1302_v18  ;;  %v5090_v21 = vld [vmem:[#allocation9 + $0x8] ss:$16 sps:$4 sm:$0xff]  }
 0x2e9   : > { %v5108_v18 = vld [vmem:[#allocation9 + $0x1a8] ss:$16 sps:$4 sm:$0xff]  }
 0x2ea   : > { %v1331_v28 = vsel %vm757_vm0, %v1319_v20, 0.0 }
 0x2eb   : > { %v1307_v27 = vpop.permute.xlu1 %1306  ;;  %v1332_v33 = vadd.f32 %v1331_v28, %v1330_v31  ;;  %v5051_v31 = vld [vmem:[#allocation9 + $0xc0] ss:$16 sps:$4 sm:$0xff]  }
 0x2ec   : > { %v1320_v29 = vmul.f32 %v4604_v23, %v1307_v27  ;;  %v5122_v23 = vld [vmem:[#allocation9 + $0x16c] ss:$16 sps:$4 sm:$0xff]   ;;  %v5045_v27 = vld [vmem:[#allocation9 + $0xe0] ss:$16 sps:$4 sm:$0xff]  }
 0x2ee   : > { %v1333_v32 = vsel %vm757_vm0, %v1320_v29, 0.0 }
 0x2ef   : > { %v1312_v34 = vpop.permute.xlu1 %1311  ;;  %v1334_v36 = vadd.f32 %v1333_v32, %v1332_v33  ;;  %v5059_v32 = vld [vmem:[#allocation9 + $0xa4] ss:$16 sps:$4 sm:$0xff]  }
 0x2f0   : > { %v1321_v35 = vmul.f32 %v4605_v30, %v1312_v34  ;;  %v5057_v34 = vld [vmem:[#allocation9 + $0xa0] ss:$16 sps:$4 sm:$0xff]  }
 0x2f2   : > { %v1335_v37 = vsel %vm757_vm0, %v1321_v35, 0.0 }
 0x2f3   : > { %v1336_v38 = vadd.f32 %v1335_v37, %v1334_v36  ;;  %v5065_v36 = vld [vmem:[#allocation9 + $0x84] ss:$16 sps:$4 sm:$0xff]   ;;  %v5063_v37 = vld [vmem:[#allocation9 + $0x80] ss:$16 sps:$4 sm:$0xff]  }
 0x2f5   : > { %v1337_v39 = vrot.slane %v1336_v38, 4 }
 0x2f7   : > { %v1338_v40 = vadd.f32 %v1337_v39, %v1336_v38  ;;  %v5071_v38 = vld [vmem:[#allocation9 + $0x64] ss:$16 sps:$4 sm:$0xff]   ;;  %v5069_v39 = vld [vmem:[#allocation9 + $0x60] ss:$16 sps:$4 sm:$0xff]  }
 0x2f9   : > { %v1339_v41 = vrot.slane %v1338_v40, 2 }
 0x2fb   : > { %v1340_v42 = vadd.f32 %v1339_v41, %v1338_v40  ;;  %v5075_v40 = vld [vmem:[#allocation9 + $0x40] ss:$16 sps:$4 sm:$0xff]   ;;  %v5083_v41 = vld [vmem:[#allocation9 + $0x24] ss:$16 sps:$4 sm:$0xff]  }
 0x2fd   : > { %v1341_v43 = vrot.slane %v1340_v42, 1 }
 0x2ff   : > { %v1342_v44 = vadd.f32 %v1341_v43, %v1340_v42  ;;  %v5081_v42 = vld [vmem:[#allocation9 + $0x20] ss:$16 sps:$4 sm:$0xff]   ;;  %v5089_v43 = vld [vmem:[#allocation9 + $0x4] ss:$16 sps:$4 sm:$0xff]  }
 0x301   : > { %v1343_v45 = vmax.f32 %v1342_v44, 1e-05  ;;  %v5087_v44 = vld [vmem:[#allocation9] ss:$16 sps:$4 sm:$0xff]  }
 0x303   : > { %5269 = vrcp.f32 %v1343_v45 }
 0x310   : > { %v5270_v46 = vpop.eup %5269 }
 0x311   : > { %v1345_v47 = vmul.f32 %v5270_v46, %v1343_v45  ;;  %v5095_v45 = vld [vmem:[#allocation9 + $0x1e4] ss:$16 sps:$4 sm:$0xff]  }
 0x313   : > { %v1346_v3 = vsub.f32 2.0, %v1345_v47  ;;  %v5101_v47 = vld [vmem:[#allocation9 + $0x1c4] ss:$16 sps:$4 sm:$0xff]  }
 0x315   : > { %v1347_v48 = vmul.f32 %v5270_v46, %v1346_v3  ;;  %v5093_v46 = vld [vmem:[#allocation9 + $0x1e0] ss:$16 sps:$4 sm:$0xff]  }
 0x316   : > { %v5099_v3 = vld [vmem:[#allocation9 + $0x1c0] ss:$16 sps:$4 sm:$0xff]  }
 0x317   : > { %v1348_v49 = vmul.f32 %v1347_v48, %v1314_v6  ;;  %v1349_v50 = vmul.f32 %v1347_v48, %v1315_v5  ;;  %v1350_v51 = vmul.f32 %v1347_v48, %v1316_v7  ;;  %v1351_v52 = vmul.f32 %v1347_v48, %v1317_v12  ;;  %v5074_v5 = vld [vmem:[#allocation9 + $0x6c] ss:$16 sps:$4 sm:$0xff]   ;;  %v5072_v6 = vld [vmem:[#allocation9 + $0x68] ss:$16 sps:$4 sm:$0xff]  }
 0x318   : > { %v1352_v56 = vmul.f32 %v1347_v48, %v1318_v16  ;;  %v1353_v59 = vmul.f32 %v1347_v48, %v1319_v20  ;;  %v1354_v0 = vmul.f32 %v1347_v48, %v1320_v29  ;;  %v1355_v13 = vmul.f32 %v1347_v48, %v1321_v35  ;;  %1941 = vmatprep.subr.bf16.mxu0 %v5074_v5  ;;  %v5080_v7 = vld [vmem:[#allocation9 + $0x4c] ss:$16 sps:$4 sm:$0xff]   ;;  %v5102_v16 = vld [vmem:[#allocation9 + $0x1c8] ss:$16 sps:$4 sm:$0xff]   ;;  %v5053_v29 = vld [vmem:[#allocation9 + $0xc4] ss:$16 sps:$4 sm:$0xff]  }
 0x319   : > { %1356 = vxpose.xlu1.b32.start [1/8] (short) (narrow) %v1348_v49, 32  ;;  %1942 = vmatpush1.bf16.msra.mxu0 %v5072_v6  ;;  %v5092_v12 = vld [vmem:[#allocation9 + $0xc] ss:$16 sps:$4 sm:$0xff]   ;;  %v5114_v20 = vld [vmem:[#allocation9 + $0x188] ss:$16 sps:$4 sm:$0xff]  }
 0x31a   : > { %1943 = vmatprep.subr.bf16.mxu0 %v5080_v7  ;;  %v5107_v48 = vld [vmem:[#allocation9 + $0x1a4] ss:$16 sps:$4 sm:$0xff]   ;;  %v5105_v49 = vld [vmem:[#allocation9 + $0x1a0] ss:$16 sps:$4 sm:$0xff]   ;;  %v5140_v5 = vld [vmem:[#allocation9 + $0x10c] ss:$16 sps:$4 sm:$0xff]  }
 0x31b   : > { %v742_v7 = vld [vmem:[%s5953_s10 + $0x8] sm:$0xff] }
 0x31d   : > { %1357 = vxpose.xlu1.b32.cont [2/8] (short) (narrow) %v1349_v50, 32  ;;  %1944 = vmatpush1.bf16.msra.mxu0 %v5078_v9  ;;  %v5113_v50 = vld [vmem:[#allocation9 + $0x184] ss:$16 sps:$4 sm:$0xff]  }
 0x31e   : > { %1945 = vmatprep.subr.bf16.mxu0 %v5086_v10  ;;  %v743_v10 = vld [vmem:[%s5953_s10 + $0x10] sm:$0xff] }
 0x321   : > { %1358 = vxpose.xlu1.b32.cont [3/8] (short) (narrow) %v1350_v51, 32  ;;  %1946 = vmatpush1.bf16.msra.mxu0 %v5084_v11  ;;  %v5111_v51 = vld [vmem:[#allocation9 + $0x180] ss:$16 sps:$4 sm:$0xff]  }
 0x322   : > { %1947 = vmatprep.subr.bf16.mxu0 %v5092_v12  ;;  %v741_v11 = vld [vmem:[%s5953_s10] sm:$0xff] }
 0x325   : > { %1359 = vxpose.xlu1.b32.cont [4/8] (short) (narrow) %v1351_v52, 32  ;;  %1948 = vmatpush1.bf16.msra.mxu0 %v5090_v21  ;;  %v5119_v52 = vld [vmem:[#allocation9 + $0x164] ss:$16 sps:$4 sm:$0xff]   ;;  %v744_v21 = vld [vmem:[%s5953_s10 + $0x18] sm:$0xff] }
 0x326   : > { %1949 = vmatprep.subr.bf16.mxu0 %v5098_v22 }
 0x329   : > { %1360 = vxpose.xlu1.b32.cont [5/8] (short) (narrow) %v1352_v56, 32  ;;  %1950 = vmatpush2.bf16.msra.mxu0 %v5096_v14  ;;  %v5126_v56 = vld [vmem:[#allocation9 + $0x148] ss:$16 sps:$4 sm:$0xff]   ;;  %v751_v14 = vld [vmem:[%s5961_s17 + $0x10] sm:$0xff] }
 0x32a   : > { %1951 = vmatprep.subr.bf16.mxu0 %v5104_v15 }
 0x32d   : > { %1361 = vxpose.xlu1.b32.cont [6/8] (short) (narrow) %v1353_v59, 32  ;;  %1952 = vmatpush2.bf16.msra.mxu0 %v5102_v16  ;;  %v5132_v59 = vld [vmem:[#allocation9 + $0x128] ss:$16 sps:$4 sm:$0xff]  }
 0x32e   : > { %1953 = vmatprep.subr.bf16.mxu0 %v5110_v17  ;;  %v750_v17 = vld [vmem:[%s5961_s17 + $0x8] sm:$0xff] }
 0x331   : > { %1362 = vxpose.xlu1.b32.cont [7/8] (short) (narrow) %v1354_v0, 32  ;;  %1954 = vmatpush2.bf16.msra.mxu0 %v5108_v18  ;;  %v5135_v0 = vld [vmem:[#allocation9 + $0x100] ss:$16 sps:$4 sm:$0xff]   ;;  %v752_v18 = vld [vmem:[%s5961_s17 + $0x18] sm:$0xff] }
 0x332   : > { %1955 = vmatprep.subr.bf16.mxu0 %v5116_v19 }
 0x335   : > { %1363 = vxpose.xlu1.b32.end [8/8] (short) (narrow) %v1355_v13, 32  ;;  %1956 = vmatpush2.bf16.msra.mxu0 %v5114_v20  ;;  %v5143_v13 = vld [vmem:[#allocation11 + $0x74] ss:$8 sps:$4 sm:$0xff]   ;;  %v749_v20 = vld [vmem:[%s5961_s17] sm:$0xff] }
 0x336   : > { %1957 = vmatprep.subr.bf16.mxu0 %v5122_v23 }
 0x339   : > { %1958 = vmatpush2.bf16.msra.mxu0 %v5120_v24 }
 0x33a   : > { %1959 = vmatprep.subr.bf16.mxu0 %v5128_v55 }
 0x33d   : > { %1960 = vmatpush2.bf16.msra.mxu0 %v5126_v56  ;;  %v5150_v56 = vld [vmem:[#allocation11 + $0x40] ss:$8 sps:$4 sm:$0xff]  }
 0x33e   : > { %1961 = vmatprep.subr.bf16.mxu0 %v5134_v60  ;;  %v5156_v60 = vld [vmem:[#allocation11 + $0x20] ss:$8 sps:$4 sm:$0xff]  }
 0x341   : > { %1962 = vmatpush2.bf16.msra.mxu0 %v5132_v59  ;;  %v5158_v59 = vld [vmem:[#allocation11 + $0x24] ss:$8 sps:$4 sm:$0xff]  }
 0x342   : > { %1963 = vmatprep.subr.bf16.mxu0 %v5140_v5  ;;  %v5162_v5 = vld [vmem:[#allocation11] ss:$8 sps:$4 sm:$0xff]  }
 0x345   : > { %1964 = vmatpush2.bf16.msra.mxu0 %v5138_v2  ;;  %v5164_v2 = vld [vmem:[#allocation11 + $0x4] ss:$8 sps:$4 sm:$0xff]  }
 0x395   : > { %v1372_v25 = vpop.trf.xlu1 }
 0x399   : > { %v1373_v26 = vpop.trf.xlu1 }
 0x39a   : > { %v1388_v28 = vpack.c.bf16 %v1373_v26, %v1372_v25 }
 0x39c   : > { %4401 = vmatmul.mubr.msk.bf16.vlgmr.msra.gmra.mxu1 %vm1390_vm1, %v1388_v28 }
 0x39d   : > { %v1374_v30 = vpop.trf.xlu1  ;;  %1439 = vmatprep.mubr.bf16.mxu1 %v5651_v8  ;;  %1881 = vmatpush1.bf16.msra.mxu1 %v5045_v27  ;;  %v5077_v8 = vld [vmem:[#allocation9 + $0x44] ss:$16 sps:$4 sm:$0xff]  }
 0x39e   : > { %1882 = vmatprep.subr.bf16.mxu1 %v5053_v29  ;;  %v746_v29 = vld [vmem:[%s5953_s10 + $0x28] sm:$0xff] }
 0x3a1   : > { %v1375_v33 = vpop.trf.xlu1  ;;  %1883 = vmatpush1.bf16.msra.mxu1 %v5051_v31  ;;  %v747_v31 = vld [vmem:[%s5953_s10 + $0x30] sm:$0xff] }
 0x3a2   : > { %v1389_v35 = vpack.c.bf16 %v1375_v33, %v1374_v30  ;;  %1884 = vmatprep.subr.bf16.mxu1 %v5059_v32  ;;  %v745_v32 = vld [vmem:[%s5953_s10 + $0x20] sm:$0xff] }
 0x3a4   : > { %4402 = vmatmul.mubr.msk.bf16.gmra.mxu1 %vm1390_vm1, %v1389_v35 }
 0x3a5   : > { %1885 = vmatpush1.bf16.msra.mxu1 %v5057_v34  ;;  %v5141_v34 = vld [vmem:[#allocation11 + $0x70] ss:$8 sps:$4 sm:$0xff]  }
 0x3a6   : > { %1886 = vmatprep.subr.bf16.mxu1 %v5065_v36 }
 0x3a9   : > { %1887 = vmatpush1.bf16.msra.mxu1 %v5063_v37  ;;  %v748_v37 = vld [vmem:[%s5953_s10 + $0x38] sm:$0xff]  ;;  %s5655_s10 = smov [#allocation14]  }
 0x3aa   : > { %1888 = vmatprep.subr.bf16.mxu1 %v5071_v38  ;;  %v5146_v38 = vld [vmem:[#allocation11 + $0x64] ss:$8 sps:$4 sm:$0xff]  }
 0x3ad   : > { %1889 = vmatpush1.bf16.msra.mxu1 %v5069_v39 }
 0x3ae   : > { %1890 = vmatprep.subr.bf16.mxu1 %v5077_v8  ;;  %v755_v8 = vld [vmem:[%s5961_s17 + $0x30] sm:$0xff] }
 0x3b1   : > { %1891 = vmatpush1.bf16.msra.mxu1 %v5075_v40 }
 0x3b2   : > { %1892 = vmatprep.subr.bf16.mxu1 %v5083_v41 }
 0x3b5   : > { %1893 = vmatpush1.bf16.msra.mxu1 %v5081_v42  ;;  %v754_v42 = vld [vmem:[%s5961_s17 + $0x28] sm:$0xff] }
 0x3b6   : > { %1894 = vmatprep.subr.bf16.mxu1 %v5089_v43  ;;  %v756_v43 = vld [vmem:[%s5961_s17 + $0x38] sm:$0xff] }
 0x3b9   : > { %1895 = vmatpush1.bf16.msra.mxu1 %v5087_v44 }
 0x3ba   : > { %1896 = vmatprep.subr.bf16.mxu1 %v5095_v45  ;;  %v753_v45 = vld [vmem:[%s5961_s17 + $0x20] sm:$0xff]  ;;  %s5563_s17 = sshll.u32 %s5655_s10, 4  ;;  %s5564_s17 = int_to_ptr.vmem [resolvable:$false] %s5563_s17 }
 0x3bb   : > { %p5566_p6 = scmp.lt.s32.totalorder %s6737_s5, %s5564_s17 }
 0x3bd   : > { %1897 = vmatpush2.bf16.msra.mxu1 %v5093_v46 }
 0x3be   : > { %1898 = vmatprep.subr.bf16.mxu1 %v5101_v47  ;;  %v5144_v47 = vld [vmem:[#allocation11 + $0x60] ss:$8 sps:$4 sm:$0xff]  }
 0x3c1   : > { %1899 = vmatpush2.bf16.msra.mxu1 %v5099_v3 }
 0x3c2   : > { %1900 = vmatprep.subr.bf16.mxu1 %v5107_v48  ;;  %v5149_v48 = vld [vmem:[#allocation11 + $0x54] ss:$8 sps:$4 sm:$0xff]  }
 0x3c5   : > { %1901 = vmatpush2.bf16.msra.mxu1 %v5105_v49 }
 0x3c6   : > { %1902 = vmatprep.subr.bf16.mxu1 %v5113_v50 }
 0x3c9   : > { %1903 = vmatpush2.bf16.msra.mxu1 %v5111_v51 }
 0x3ca   : > { %1904 = vmatprep.subr.bf16.mxu1 %v5119_v52 }
 0x3cd   : > { %1905 = vmatpush2.bf16.msra.mxu1 %v5117_v53  ;;  %v5147_v53 = vld [vmem:[#allocation11 + $0x50] ss:$8 sps:$4 sm:$0xff]  }
 0x3ce   : > { %1906 = vmatprep.subr.bf16.mxu1 %v5125_v54 }
 0x3d1   : > { %1907 = vmatpush2.bf16.msra.mxu1 %v5123_v4  ;;  %v5152_v4 = vld [vmem:[#allocation11 + $0x44] ss:$8 sps:$4 sm:$0xff]  }
 0x3d2   : > { %1908 = vmatprep.subr.bf16.mxu1 %v5131_v57  ;;  %v5155_v57 = vld [vmem:[#allocation11 + $0x34] ss:$8 sps:$4 sm:$0xff]  }
 0x3d5   : > { %1909 = vmatpush2.bf16.msra.mxu1 %v5129_v58  ;;  %v5153_v58 = vld [vmem:[#allocation11 + $0x30] ss:$8 sps:$4 sm:$0xff]  }
 0x3d6   : > { %1910 = vmatprep.subr.bf16.mxu1 %v5137_v61  ;;  %v5161_v61 = vld [vmem:[#allocation11 + $0x14] ss:$8 sps:$4 sm:$0xff]  }
 0x3d9   : > { %1911 = vmatpush2.bf16.msra.mxu1 %v5135_v0  ;;  %v5159_v0 = vld [vmem:[#allocation11 + $0x10] ss:$8 sps:$4 sm:$0xff]  }
 0x3da   : > { %2190 = vmatprep.subr.bf16.mxu1 %v5143_v13  ;;  %v5167_v13 = vld [vmem:[#allocation11 + $0xf4] ss:$8 sps:$4 sm:$0xff]  }
 0x45c   : > { %v1431_v6 = vpop.f32.mrf.mxu1 }
 0x45d   : > { %v6138_v16 = vadd.f32 %v1431_v6, %v741_v11  ;;  %v5165_v6 = vld [vmem:[#allocation11 + $0xf0] ss:$8 sps:$4 sm:$0xff]  }
 0x45e   : > { %v1433_v9 = vpop.f32.mrf.mxu1  ;;  %v5171_v11 = vld [vmem:[#allocation11 + $0xd0] ss:$8 sps:$4 sm:$0xff]  }
 0x45f   : > { %v6133_v22 = vadd.f32 %v1433_v9, %v742_v7  ;;  %v1458_v28 = vadd.f32 %v6138_v16, %v749_v20  ;;  %v5170_v7 = vld [vmem:[#allocation11 + $0xe4] ss:$8 sps:$4 sm:$0xff]   ;;  %v5168_v9 = vld [vmem:[#allocation11 + $0xe0] ss:$8 sps:$4 sm:$0xff]   ;;  %v5185_v20 = vld [vmem:[#allocation11 + $0x94] ss:$8 sps:$4 sm:$0xff]  }
 0x460   : > { %v1435_v12 = vpop.f32.mrf.mxu1 }
 0x461   : > { %6864 = vst [vmem:[#allocation26_spill] sm:$0xff] %v6133_v22  ;;  %v6136_v15 = vadd.f32 %v1435_v12, %v743_v10  ;;  %v1459_v26 = vadd.f32 %v6133_v22, %v750_v17  ;;  %v5173_v10 = vld [vmem:[#allocation11 + $0xd4] ss:$8 sps:$4 sm:$0xff]   ;;  %v5176_v12 = vld [vmem:[#allocation11 + $0xc4] ss:$8 sps:$4 sm:$0xff]  }
 0x462   : > { %v1437_v19 = vpop.f32.mrf.mxu1  ;;  %v5177_v17 = vld [vmem:[#allocation11 + $0xb0] ss:$8 sps:$4 sm:$0xff]  }
 0x463   : > { %6865 = vst [vmem:[#allocation27_spill] sm:$0xff] %v6136_v15  ;;  %v6143_v23 = vadd.f32 %v1437_v19, %v744_v21  ;;  %v1460_v24 = vadd.f32 %v6136_v15, %v751_v14  ;;  %v5174_v21 = vld [vmem:[#allocation11 + $0xc0] ss:$8 sps:$4 sm:$0xff]   ;;  %v5179_v14 = vld [vmem:[#allocation11 + $0xb4] ss:$8 sps:$4 sm:$0xff]  }
 0x464   : > { %v1441_v25 = vpop.f32.mrf.mxu1  ;;  %v5180_v19 = vld [vmem:[#allocation11 + $0xa0] ss:$8 sps:$4 sm:$0xff]  }
 0x465   : > { %6866 = vst [vmem:[#allocation28_spill] sm:$0xff] %v6143_v23  ;;  %v1461_v27 = vadd.f32 %v6143_v23, %v752_v18  ;;  %v1466_v35 = vpack.c.bf16 %v1460_v24, %v1458_v28  ;;  %v6158_v41 = vadd.f32 %v1441_v25, %v745_v32  ;;  %v1471_v55 = vpack.c.bf16 %v6143_v23, %v6133_v22  ;;  %v5182_v18 = vld [vmem:[#allocation11 + $0xa4] ss:$8 sps:$4 sm:$0xff]   ;;  %v5183_v24 = vld [vmem:[#allocation11 + $0x90] ss:$8 sps:$4 sm:$0xff]  }
 0x466   : > { %v1443_v30 = vpop.f32.mrf.mxu1  ;;  %v5188_v25 = vld [vmem:[#allocation11 + $0x84] ss:$8 sps:$4 sm:$0xff]  }
 0x467   : > { %v1467_v33 = vpack.c.bf16 %v1461_v27, %v1459_v26  ;;  %v6153_v39 = vadd.f32 %v1443_v30, %v746_v29  ;;  %6869 = vst [vmem:[#allocation31_spill] sm:$0xff] %v6158_v41  ;;  %v1462_v51 = vadd.f32 %v6158_v41, %v753_v45  ;;  %v5186_v26 = vld [vmem:[#allocation11 + $0x80] ss:$8 sps:$4 sm:$0xff]   ;;  %v1470_v27 = vpack.c.bf16 %v6136_v15, %v6138_v16 }
 0x468   : > { %v1445_v36 = vpop.f32.mrf.mxu1  ;;  %v1538_v30 = vld [vmem:[%s6798_s11] sm:$0xf]  ;;  %v1550_v45 = vsub.s32 2, %v6027_v62 }
 0x469   : > { %6867 = vst [vmem:[#allocation29_spill] sm:$0xff] %v6153_v39  ;;  %v6156_v40 = vadd.f32 %v1445_v36, %v747_v31  ;;  %1912 = vmatprep.mubr.bf16.mxu1 %v1467_v33  ;;  %1965 = vmatprep.mubr.bf16.mxu0 %v1467_v33  ;;  %v1463_v49 = vadd.f32 %v6153_v39, %v754_v42  ;;  %v1554_v31 = vsub.s32 3, %v6027_v62 }
 0x46a   : > { %v1447_v44 = vpop.f32.mrf.mxu1  ;;  %1913 = vmatmul.mubr.bf16.vlgmr.msra.gmra.mxu1 %v1466_v35  ;;  %1966 = vmatmul.mubr.bf16.vlgmr.msra.gmra.mxu0 %v1466_v35  ;;  %v1547_v35 = vrot.slane %v1538_v30, %v6036_v1 }
 0x46b   : > { %6868 = vst [vmem:[#allocation30_spill] sm:$0xff] %v6156_v40  ;;  %v6163_v46 = vadd.f32 %v1447_v44, %v748_v37  ;;  %2191 = vmatpush1.bf16.msra.mxu1 %v5141_v34  ;;  %v1464_v3 = vadd.f32 %v6156_v40, %v755_v8  ;;  %v1472_v29 = vpack.c.bf16 %v6156_v40, %v6158_v41 }
 0x46c   : > { %2192 = vmatprep.subr.bf16.mxu1 %v5146_v38  ;;  %v1543_v34 = vrot.slane %v1538_v30, %v6030_v63  ;;  %v6183_v38 = vrot.slane %v1538_v30, %v1554_v31 }
 0x46d   : > { %6870 = vst [vmem:[#allocation32_spill] sm:$0xff] %v6163_v46  ;;  %v1465_v50 = vadd.f32 %v6163_v46, %v756_v43  ;;  %v1468_v54 = vpack.c.bf16 %v1464_v3, %v1462_v51  ;;  %v1473_v28 = vpack.c.bf16 %v6163_v46, %v6153_v39 }
 0x46f   : > { %2193 = vmatpush1.bf16.msra.mxu1 %v5144_v47  ;;  %v1469_v52 = vpack.c.bf16 %v1465_v50, %v1463_v49 }
 0x470   : > { %2194 = vmatprep.subr.bf16.mxu1 %v5149_v48 }
 0x471   : > { %1922 = vmatprep.mubr.bf16.mxu1 %v1469_v52  ;;  %1975 = vmatprep.mubr.bf16.mxu0 %v1469_v52 }
 0x472   : > { %1923 = vmatmul.mubr.bf16.gmra.mxu1 %v1468_v54  ;;  %1976 = vmatmul.mubr.bf16.gmra.mxu0 %v1468_v54 }
 0x473   : > { %2195 = vmatpush1.bf16.msra.mxu1 %v5147_v53  ;;  %2222 = vmatprep.mubr.bf16.mxu1 %v1471_v55 }
 0x474   : > { %2196 = vmatprep.subr.bf16.mxu1 %v5152_v4 }
 0x477   : > { %2197 = vmatpush1.bf16.msra.mxu1 %v5150_v56 }
 0x478   : > { %2198 = vmatprep.subr.bf16.mxu1 %v5155_v57  ;;  %v1551_v57 = vrot.slane %v1538_v30, %v1550_v45 }
 0x47b   : > { %2199 = vmatpush1.bf16.msra.mxu1 %v5153_v58 }
 0x47c   : > { %2200 = vmatprep.subr.bf16.mxu1 %v5158_v59 }
 0x47f   : > { %2201 = vmatpush1.bf16.msra.mxu1 %v5156_v60 }
 0x480   : > { %2202 = vmatprep.subr.bf16.mxu1 %v5161_v61 }
 0x483   : > { %2203 = vmatpush1.bf16.msra.mxu1 %v5159_v0 }
 0x484   : > { %2204 = vmatprep.subr.bf16.mxu1 %v5164_v2 }
 0x487   : > { %2205 = vmatpush1.bf16.msra.mxu1 %v5162_v5 }
 0x488   : > { %2206 = vmatprep.subr.bf16.mxu1 %v5167_v13 }
 0x48b   : > { %2207 = vmatpush2.bf16.msra.mxu1 %v5165_v6 }
 0x48c   : > { %2208 = vmatprep.subr.bf16.mxu1 %v5170_v7 }
 0x48f   : > { %2209 = vmatpush2.bf16.msra.mxu1 %v5168_v9 }
 0x490   : > { %2210 = vmatprep.subr.bf16.mxu1 %v5173_v10 }
 0x493   : > { %2211 = vmatpush2.bf16.msra.mxu1 %v5171_v11 }
 0x494   : > { %2212 = vmatprep.subr.bf16.mxu1 %v5176_v12 }
 0x497   : > { %2213 = vmatpush2.bf16.msra.mxu1 %v5174_v21 }
 0x498   : > { %2214 = vmatprep.subr.bf16.mxu1 %v5179_v14 }
 0x49b   : > { %2215 = vmatpush2.bf16.msra.mxu1 %v5177_v17 }
 0x49c   : > { %2216 = vmatprep.subr.bf16.mxu1 %v5182_v18  ;;  %v2018_v18 = vld [vmem:[%s6800_s13] sm:$0x3] }
 0x49f   : > { %2217 = vmatpush2.bf16.msra.mxu1 %v5180_v19  ;;  %v2027_v19 = vrot.slane %v2018_v18, %v6036_v1 }
 0x4a0   : > { %2218 = vmatprep.subr.bf16.mxu1 %v5185_v20 }
 0x4a3   : > { %2219 = vmatpush2.bf16.msra.mxu1 %v5183_v24 }
 0x4a4   : > { %2220 = vmatprep.subr.bf16.mxu1 %v5188_v25 }
 0x4a7   : > { %2221 = vmatpush2.bf16.msra.mxu1 %v5186_v26 }
 0x4aa   : > { %2223 = vmatmul.mubr.bf16.vlgmr.msra.gmra.mxu1 %v1470_v27 }
 0x4ab   : > { %2232 = vmatprep.mubr.bf16.mxu1 %v1473_v28 }
 0x4b2   : > { %2233 = vmatmul.mubr.bf16.gmra.mxu1 %v1472_v29 }
 0x52a   : > { %v1914_v32 = vpop.f32.mrf.mxu1  ;;  %v1967_v33 = vpop.f32.mrf.mxu0 }
 0x52b   : > { %v1915_v43 = vadd.f32 %v1914_v32, %v1543_v34  ;;  %v1968_v5 = vadd.f32 %v1967_v33, %v1551_v57  ;;  %v2023_v32 = vrot.slane %v2018_v18, %v6030_v63 }
 0x52c   : > { %v1916_v36 = vpop.f32.mrf.mxu1  ;;  %v1969_v37 = vpop.f32.mrf.mxu0 }
 0x52d   : > { %v1917_v47 = vadd.f32 %v1916_v36, %v1547_v35  ;;  %v1970_v49 = vadd.f32 %v1969_v37, %v6183_v38 }
 0x52e   : > { %v1918_v8 = vpop.f32.mrf.mxu1  ;;  %v1971_v42 = vpop.f32.mrf.mxu0 }
 0x52f   : > { %v1919_v44 = vadd.f32 %v1918_v8, %v1543_v34  ;;  %v1972_v60 = vadd.f32 %v1971_v42, %v1551_v57 }
 0x530   : > { %v1920_v3 = vpop.f32.mrf.mxu1  ;;  %v1973_v48 = vpop.f32.mrf.mxu0 }
 0x531   : > { %v6187_v50 = vpack.c.bf16 %v1919_v44, %v1915_v43  ;;  %v1921_v51 = vadd.f32 %v1920_v3, %v1547_v35  ;;  %v1974_v52 = vadd.f32 %v1973_v48, %v6183_v38  ;;  %v6200_v9 = vpack.c.bf16 %v1972_v60, %v1968_v5 }
 0x532   : > { %v1924_v53 = vpop.f32.mrf.mxu1  ;;  %v1977_v54 = vpop.f32.mrf.mxu0 }
 0x533   : > { %v6190_v4 = vpack.c.bf16 %v1921_v51, %v1917_v47  ;;  %v6192_v55 = vpack.c.bf16 %v1974_v52, %v1970_v49  ;;  %4680 = vmatprep.mubr.msk.bf16.mxu0 %vm757_vm0, %v6187_v50  ;;  %v1978_v61 = vadd.f32 %v1977_v54, %v1551_v57  ;;  %v2256_v12 = vsel %vm757_vm0, %v6200_v9, 0 }
 0x534   : > { %v1926_v62 = vpop.f32.mrf.mxu1  ;;  %v6196_v56 = vpop.f32.mrf.mxu0  ;;  %v1925_v14 = vadd.f32 %v1924_v53, %v1543_v34 }
 0x535   : > { %v1927_v13 = vadd.f32 %v1926_v62, %v1547_v35 }
 0x536   : > { %v1928_v58 = vpop.f32.mrf.mxu1  ;;  %v1981_v59 = vpop.f32.mrf.mxu0 }
 0x537   : > { %v1982_v0 = vadd.f32 %v1981_v59, %v1551_v57  ;;  %v1929_v21 = vadd.f32 %v1928_v58, %v1543_v34 }
 0x538   : > { %v1930_v2 = vpop.f32.mrf.mxu1 }
 0x539   : > { %v6198_v6 = vpack.c.bf16 %v1982_v0, %v1978_v61  ;;  %v1931_v7 = vadd.f32 %v1930_v2, %v1547_v35  ;;  %v6220_v17 = vpack.c.bf16 %v1929_v21, %v1925_v14 }
 0x53b   : > { %v6202_v10 = vpack.c.bf16 %v1931_v7, %v1927_v13  ;;  %2433 = vrot.lane.b32.xlu0 %v6198_v6, %s5652_s28  ;;  %4804 = vmatprep.subr.msk.bf16.mxu0 %vm757_vm0, %v6198_v6  ;;  %v2259_v11 = vsel %vm757_vm0, %v6198_v6, 0 }
 0x53c   : > { %4677 = vmatpush3.bf16.xpose.msra.mxu0 %v2259_v11 }
 0x53d   : > { %4805 = vmatprep.subr.msk.bf16.mxu0 %vm757_vm0, %v6200_v9 }
 0x53f   : > { %2431 = vrot.lane.b32.xlu0 %v6200_v9, %s5652_s28 }
 0x543   : > { %2425 = vrot.lane.b32.xlu0 %v6187_v50, %s5652_s28 }
 0x544   : > { %4679 = vmatpush3.bf16.xpose.msra.mxu0 %v2256_v12 }
 0x547   : > { %2623 = vrot.lane.b32.xlu0 %v6198_v6, %s5653_s20 }
 0x54b   : > { %2427 = vrot.lane.b32.xlu0 %v6220_v17, %s5652_s28  ;;  %4681 = vmatmul.mubr.msk.bf16.vlgmr.msra.gmra.mxu0 %vm757_vm0, %v6220_v17 }
 0x54f   : > { %2621 = vrot.lane.b32.xlu0 %v6200_v9, %s5653_s20 }
 0x553   : > { %2617 = vrot.lane.b32.xlu0 %v6187_v50, %s5653_s20 }
 0x557   : > { %2619 = vrot.lane.b32.xlu0 %v6220_v17, %s5653_s20 }
 0x56a   : > { %v2224_v20 = vpop.f32.mrf.mxu1 }
 0x56b   : > { %v2225_v42 = vadd.f32 %v2224_v20, %v2023_v32 }
 0x56c   : > { %v2226_v24 = vpop.f32.mrf.mxu1 }
 0x56d   : > { %v2227_v25 = vadd.f32 %v2226_v24, %v2027_v19 }
 0x56e   : > { %v2228_v26 = vpop.f32.mrf.mxu1 }
 0x56f   : > { %v2229_v35 = vadd.f32 %v2228_v26, %v2023_v32 }
 0x570   : > { %v2230_v27 = vpop.f32.mrf.mxu1 }
 0x571   : > { %v2231_v28 = vadd.f32 %v2230_v27, %v2027_v19  ;;  %v6241_v45 = vpack.c.bf16 %v2229_v35, %v2225_v42 }
 0x572   : > { %v2234_v29 = vpop.f32.mrf.mxu1 }
 0x573   : > { %v6236_v30 = vpack.c.bf16 %v2231_v28, %v2227_v25  ;;  %v2235_v36 = vadd.f32 %v2234_v29, %v2023_v32 }
 0x574   : > { %v2236_v31 = vpop.f32.mrf.mxu1 }
 0x575   : > { %v2237_v33 = vadd.f32 %v2236_v31, %v2027_v19 }
 0x576   : > { %v2238_v34 = vpop.f32.mrf.mxu1 }
 0x577   : > { %v2239_v37 = vadd.f32 %v2238_v34, %v2023_v32 }
 0x578   : > { %v2240_v8 = vpop.f32.mrf.mxu1 }
 0x579   : > { %v6239_v43 = vpack.c.bf16 %v2239_v37, %v2235_v36  ;;  %v2241_v44 = vadd.f32 %v2240_v8, %v2027_v19 }
 0x57b   : > { %v6243_v47 = vpack.c.bf16 %v2241_v44, %v2237_v33  ;;  %4684 = vmatprep.subr.bf16.mxu0 %v6239_v43 }
 0x57c   : > { %4685 = vmatpush3.bf16.msra.mxu0 %v6239_v43 }
 0x57d   : > { %4686 = vmatprep.subr.bf16.mxu0 %v6241_v45 }
 0x580   : > { %4687 = vmatpush3.bf16.msra.mxu0 %v6241_v45 }
 0x5ad   : > { %v2434_v3 = vpop.permute.xlu0 %2433 }
 0x5ae   : > { %4806 = vmatprep.subr.msk.bf16.mxu1 %vm757_vm0, %v2434_v3  ;;  %v2445_v48 = vsel %vm757_vm0, %v2434_v3, 0 }
 0x5af   : > { %4693 = vmatpush3.bf16.xpose.msra.mxu1 %v2445_v48 }
 0x5b1   : > { %v2432_v49 = vpop.permute.xlu0 %2431 }
 0x5b2   : > { %4807 = vmatprep.subr.msk.bf16.mxu1 %vm757_vm0, %v2432_v49  ;;  %v2442_v52 = vsel %vm757_vm0, %v2432_v49, 0 }
 0x5b5   : > { %v2426_v51 = vpop.permute.xlu0 %2425 }
 0x5b6   : > { %4696 = vmatprep.mubr.msk.bf16.mxu1 %vm757_vm0, %v2426_v51 }
 0x5b7   : > { %4695 = vmatpush3.bf16.xpose.msra.mxu1 %v2442_v52 }
 0x5b9   : > { %v2624_v53 = vpop.permute.xlu0 %2623 }
 0x5ba   : > { %4808 = vmatprep.subr.msk.bf16.mxu1 %vm757_vm0, %v2624_v53  ;;  %v2635_v62 = vsel %vm757_vm0, %v2624_v53, 0 }
 0x5bd   : > { %v2428_v54 = vpop.permute.xlu0 %2427 }
 0x5be   : > { %4697 = vmatmul.mubr.msk.bf16.vlgmr.msra.gmra.mxu1 %vm757_vm0, %v2428_v54 }
 0x5bf   : > { %4709 = vmatpush3.bf16.xpose.msra.mxu1 %v2635_v62 }
 0x5c1   : > { %v2622_v57 = vpop.permute.xlu0 %2621 }
 0x5c2   : > { %4809 = vmatprep.subr.msk.bf16.mxu1 %vm757_vm0, %v2622_v57  ;;  %v2632_v59 = vsel %vm757_vm0, %v2622_v57, 0 }
 0x5c5   : > { %v2618_v58 = vpop.permute.xlu0 %2617 }
 0x5c6   : > { %4712 = vmatprep.mubr.msk.bf16.mxu1 %vm757_vm0, %v2618_v58 }
 0x5c7   : > { %4711 = vmatpush3.bf16.xpose.msra.mxu1 %v2632_v59 }
 0x5c9   : > { %v2620_v60 = vpop.permute.xlu0 %2619 }
 0x5ce   : > { %4713 = vmatmul.mubr.msk.bf16.vlgmr.msra.gmra.mxu1 %vm757_vm0, %v2620_v60 }
 0x67e   : > { %v6261_v61 = vpop.f32.mrf.mxu1 }
 0x680   : > { %v6263_v0 = vpop.f32.mrf.mxu1 }
 0x682   : > { %v6265_v2 = vpop.f32.mrf.mxu1 }
 0x684   : > { %v6267_v5 = vpop.f32.mrf.mxu1 }
 0x68e   : > { %v4714_v13 = vpop.f32.mrf.mxu1 }
 0x68f   : > { %v2692_v7 = vsel %vm757_vm0, %v4714_v13, -inf }
 0x690   : > { %2693 = vmax.xlane.f32.xlu1 %v2692_v7  ;;  %v2671_v11 = vpop.f32.mrf.mxu1 }
 0x691   : > { %v2686_v12 = vsel %vm757_vm0, %v2671_v11, -inf }
 0x692   : > { %2687 = vmax.xlane.f32.xlu0 %v2686_v12  ;;  %v4715_v21 = vpop.f32.mrf.mxu1 }
 0x693   : > { %v2695_v19 = vsel %vm757_vm0, %v4715_v21, -inf }
 0x694   : > { %v2674_v14 = vpop.f32.mrf.mxu1 }
 0x695   : > { %v2689_v18 = vsel %vm757_vm0, %v2674_v14, -inf }
 0x696   : > { %2690 = vmax.xlane.f32.xlu0 %v2689_v18 }
 0x69a   : > { %2696 = vmax.xlane.f32.xlu0 %v2695_v19 }
 0x6a1   : > { %2744 = vrot.lane.b32.xlu1 %v6241_v45, %s5653_s20 }
 0x719   : > { %v2694_v20 = vpop.xlane.xlu1 %2693 }
 0x71a   : > { %v2700_v24 = vsub.f32 %v4714_v13, %v2694_v20 }
 0x71b   : > { %v2688_v25 = vpop.xlane.xlu0 %2687 }
 0x71c   : > { %v2706_v26 = vmul.f32 1.442695, %v2700_v24  ;;  %v2698_v27 = vsub.f32 %v2671_v11, %v2688_v25 }
 0x71d   : > { %v2745_v57 = vpop.permute.xlu1 %2744 }
 0x71e   : > { %5271 = vpow2.f32 %v2706_v26  ;;  %v2702_v28 = vmul.f32 1.442695, %v2698_v27 }
 0x71f   : > { %v2691_v29 = vpop.xlane.xlu0 %2690 }
 0x720   : > { %5273 = vpow2.f32 %v2702_v28  ;;  %v2699_v31 = vsub.f32 %v2674_v14, %v2691_v29 }
 0x722   : > { %v2704_v34 = vmul.f32 1.442695, %v2699_v31 }
 0x723   : > { %v2697_v32 = vpop.xlane.xlu0 %2696 }
 0x724   : > { %v2701_v33 = vsub.f32 %v4715_v21, %v2697_v32 }
 0x726   : > { %v2708_v35 = vmul.f32 1.442695, %v2701_v33 }
 0x728   : > { %5275 = vpow2.f32 %v2708_v35  ;;  %v1983_v35 = vpop.f32.mrf.mxu0 }
 0x729   : > { %5277 = vpow2.f32 %v2704_v34 }
 0x72b   : > { %v5272_v36 = vpop.eup %5271 }
 0x72c   : > { %v2716_v37 = vsel %vm757_vm0, %v5272_v36, 0.0 }
 0x72d   : > { %v5274_v8 = vpop.eup %5273  ;;  %2717 = vadd.xlane.f32.xlu0 %v2716_v37  ;;  %v1984_v37 = vadd.f32 %v1983_v35, %v6183_v38 }
 0x72e   : > { %v2710_v42 = vsel %vm757_vm0, %v5274_v8, 0.0 }
 0x731   : > { %2711 = vadd.xlane.f32.xlu0 %v2710_v42 }
 0x735   : > { %v5276_v44 = vpop.eup %5275 }
 0x736   : > { %v2719_v3 = vsel %vm757_vm0, %v5276_v44, 0.0  ;;  %v5278_v48 = vpop.eup %5277 }
 0x737   : > { %2720 = vadd.xlane.f32.xlu0 %v2719_v3  ;;  %v2713_v49 = vsel %vm757_vm0, %v5278_v48, 0.0 }
 0x73b   : > { %2714 = vadd.xlane.f32.xlu0 %v2713_v49 }
 0x751   : > { %2746 = vrot.lane.b32.xlu0 %v6239_v43, %s5653_s20 }
 0x755   : > { %2811 = vrot.lane.b32.xlu0 %v6198_v6, %s5654_s27 }
 0x759   : > { %2809 = vrot.lane.b32.xlu0 %v6200_v9, %s5654_s27 }
 0x75d   : > { %2805 = vrot.lane.b32.xlu0 %v6187_v50, %s5654_s27 }
 0x761   : > { %2807 = vrot.lane.b32.xlu0 %v6220_v17, %s5654_s27 }
 0x7b6   : > { %v2718_v51 = vpop.xlane.xlu0 %2717 }
 0x7ba   : > { %v2712_v52 = vpop.xlane.xlu0 %2711 }
 0x7bb   : > { %5279 = vrcp.f32 %v2712_v52 }
 0x7bc   : > { %5281 = vrcp.f32 %v2718_v51 }
 0x7c0   : > { %v2721_v53 = vpop.xlane.xlu0 %2720 }
 0x7c1   : > { %5283 = vrcp.f32 %v2721_v53 }
 0x7c4   : > { %v2715_v54 = vpop.xlane.xlu0 %2714 }
 0x7c5   : > { %5285 = vrcp.f32 %v2715_v54 }
 0x7c8   : > { %v2747_v62 = vpop.permute.xlu0 %2746  ;;  %v5280_v6 = vpop.eup %5279 }
 0x7c9   : > { %4716 = vmatprep.subr.bf16.mxu1 %v2747_v62  ;;  %v5282_v9 = vpop.eup %5281  ;;  %v2726_v58 = vmul.f32 %v5280_v6, %v2712_v52 }
 0x7ca   : > { %4717 = vmatpush3.bf16.msra.mxu1 %v2747_v62  ;;  %v2728_v59 = vmul.f32 %v5282_v9, %v2718_v51 }
 0x7cb   : > { %4718 = vmatprep.subr.bf16.mxu1 %v2745_v57  ;;  %v2730_v13 = vsub.f32 2.0, %v2726_v58 }
 0x7cc   : > { %v2812_v60 = vpop.permute.xlu0 %2811  ;;  %v2732_v12 = vsub.f32 2.0, %v2728_v59 }
 0x7cd   : > { %v2734_v18 = vmul.f32 %v5280_v6, %v2730_v13  ;;  %v2823_v33 = vsel %vm757_vm0, %v2812_v60, 0 }
 0x7ce   : > { %v5284_v50 = vpop.eup %5283  ;;  %4719 = vmatpush3.bf16.msra.mxu1 %v2745_v57  ;;  %v2736_v20 = vmul.f32 %v5282_v9, %v2732_v12 }
 0x7cf   : > { %v2729_v17 = vmul.f32 %v5284_v50, %v2721_v53  ;;  %4810 = vmatprep.subr.msk.bf16.mxu1 %vm757_vm0, %v2812_v60  ;;  %v2738_v27 = vmul.f32 %v5274_v8, %v2734_v18 }
 0x7d0   : > { %v2810_v26 = vpop.permute.xlu0 %2809  ;;  %v2740_v29 = vmul.f32 %v5272_v36, %v2736_v20  ;;  %v1980_v36 = vadd.f32 %v6196_v56, %v6183_v38  ;;  %v3006_v38 = vsel %vm757_vm0, %v6192_v55, 0 }
 0x7d1   : > { %v2733_v7 = vsub.f32 2.0, %v2729_v17  ;;  %v2820_v42 = vsel %vm757_vm0, %v2810_v26, 0 }
 0x7d2   : > { %v5286_v11 = vpop.eup %5285  ;;  %v6298_v8 = vpack.c.bf16 %v1984_v37, %v1980_v36 }
 0x7d3   : > { %v2727_v21 = vmul.f32 %v5286_v11, %v2715_v54  ;;  %v2737_v14 = vmul.f32 %v5284_v50, %v2733_v7 }
 0x7d4   : > { %v2806_v34 = vpop.permute.xlu0 %2805  ;;  %v3009_v3 = vsel %vm757_vm0, %v6298_v8, 0 }
 0x7d5   : > { %v2731_v19 = vsub.f32 2.0, %v2727_v21  ;;  %v2741_v25 = vmul.f32 %v5276_v44, %v2737_v14 }
 0x7d7   : > { %v2735_v24 = vmul.f32 %v5286_v11, %v2731_v19  ;;  %v2743_v32 = vpack.c.bf16 %v2741_v25, %v2740_v29 }
 0x7d8   : > { %v2808_v44 = vpop.permute.xlu0 %2807 }
 0x7d9   : > { %v2739_v28 = vmul.f32 %v5278_v48, %v2735_v24 }
 0x7db   : > { %v2742_v31 = vpack.c.bf16 %v2739_v28, %v2738_v27 }
 0x7dd   : > { %4720 = vmatprep.mubr.msk.bf16.mxu1 %vm757_vm0, %v2742_v31 }
 0x7de   : > { %4721 = vmatmul.mubr.msk.bf16.vlgmr.msra.gmra.mxu1 %vm757_vm0, %v2743_v32 }
 0x7df   : > { %4725 = vmatpush3.bf16.xpose.msra.mxu1 %v2823_v33  ;;  %4728 = vmatprep.mubr.msk.bf16.mxu1 %vm757_vm0, %v2806_v34 }
 0x7e0   : > { %4811 = vmatprep.subr.msk.bf16.mxu1 %vm757_vm0, %v2810_v26 }
 0x7e7   : > { %4727 = vmatpush3.bf16.xpose.msra.mxu1 %v2820_v42  ;;  %v6366_v42 = vpop.f32.mrf.mxu0 }
 0x7e8   : > { %4812 = vmatprep.subr.msk.bf16.mxu1 %vm757_vm0, %v6298_v8 }
 0x7ee   : > { %4729 = vmatmul.mubr.msk.bf16.vlgmr.msra.gmra.mxu1 %vm757_vm0, %v2808_v44  ;;  %v6368_v44 = vpop.f32.mrf.mxu0 }
 0x7ef   : > { %4741 = vmatpush3.bf16.xpose.msra.mxu1 %v3009_v3  ;;  %4744 = vmatprep.mubr.msk.bf16.mxu1 %vm757_vm0, %v6190_v4 }
 0x7f0   : > { %4813 = vmatprep.subr.msk.bf16.mxu1 %vm757_vm0, %v6192_v55  ;;  %v6370_v3 = vpop.f32.mrf.mxu0 }
 0x7f7   : > { %4743 = vmatpush3.bf16.xpose.msra.mxu1 %v3006_v38  ;;  %v6372_v38 = vpop.f32.mrf.mxu0 }
 0x7f8   : > { %4748 = vmatprep.subr.bf16.mxu1 %v6243_v47 }
 0x7fe   : > { %4745 = vmatmul.mubr.msk.bf16.vlgmr.msra.gmra.mxu1 %vm757_vm0, %v6202_v10 }
 0x7ff   : > { %4749 = vmatpush3.bf16.msra.mxu1 %v6243_v47 }
 0x800   : > { %4750 = vmatprep.subr.bf16.mxu1 %v6236_v30 }
 0x803   : > { %4751 = vmatpush3.bf16.msra.mxu1 %v6236_v30 }
 0x89e   : > { %v6318_v56 = vpop.f32.mrf.mxu1 }
 0x8a0   : > { %v6320_v48 = vpop.f32.mrf.mxu1 }
 0x8a2   : > { %v6322_v49 = vpop.f32.mrf.mxu1 }
 0x8a4   : > { %v6326_v52 = vpop.f32.mrf.mxu1 }
 0x8ae   : > { %v6330_v54 = vpop.f32.mrf.mxu1 }
 0x8b0   : > { %v6332_v62 = vpop.f32.mrf.mxu1 }
 0x8b2   : > { %v6334_v6 = vpop.f32.mrf.mxu1 }
 0x8b4   : > { %v6336_v57 = vpop.f32.mrf.mxu1 }
 0x8be   : > { %v4746_v9 = vpop.f32.mrf.mxu1 }
 0x8bf   : > { %v3066_v7 = vsel %vm757_vm0, %v4746_v9, -inf }
 0x8c0   : > { %v3045_v58 = vpop.f32.mrf.mxu1 }
 0x8c1   : > { %v3060_v50 = vsel %vm757_vm0, %v3045_v58, -inf }
 0x8c2   : > { %3061 = vmax.xlane.f32.xlu1 %v3060_v50  ;;  %v4747_v59 = vpop.f32.mrf.mxu1  ;;  %v2316_v50 = vsel %vm757_vm0, %v6366_v42, -inf }
 0x8c3   : > { %v3069_v17 = vsel %vm757_vm0, %v4747_v59, -inf }
 0x8c4   : > { %v3048_v60 = vpop.f32.mrf.mxu1 }
 0x8c5   : > { %v3063_v13 = vsel %vm757_vm0, %v3048_v60, -inf }
 0x8c6   : > { %3070 = vmax.xlane.f32.xlu1 %v3069_v17  ;;  %3064 = vmax.xlane.f32.xlu0 %v3063_v13  ;;  %v2499_v17 = vsel %vm757_vm0, %v6267_v5, -inf  ;;  %v2502_v13 = vsel %vm757_vm0, %v6261_v61, -inf }
 0x8ca   : > { %3067 = vmax.xlane.f32.xlu0 %v3066_v7  ;;  %v2505_v7 = vsel %vm757_vm0, %v6265_v2, -inf }
 0x94b   : > { %v3062_v11 = vpop.xlane.xlu1 %3061 }
 0x94c   : > { %v3072_v12 = vsub.f32 %v3045_v58, %v3062_v11  ;;  %v2310_v58 = vsel %vm757_vm0, %v6368_v44, -inf  ;;  %v2874_v11 = vsel %vm757_vm0, %v6332_v62, -inf }
 0x94e   : > { %v3076_v21 = vmul.f32 1.442695, %v3072_v12  ;;  %v2877_v12 = vsel %vm757_vm0, %v6336_v57, -inf }
 0x94f   : > { %v3071_v14 = vpop.xlane.xlu1 %3070  ;;  %v3065_v18 = vpop.xlane.xlu0 %3064 }
 0x950   : > { %5287 = vpow2.f32 %v3076_v21  ;;  %v3075_v19 = vsub.f32 %v4747_v59, %v3071_v14  ;;  %v3073_v20 = vsub.f32 %v3048_v60, %v3065_v18  ;;  %v2319_v59 = vsel %vm757_vm0, %v6370_v3, -inf }
 0x951   : > { %v2496_v60 = vsel %vm757_vm0, %v6263_v0, -inf  ;;  %v2880_v21 = vsel %vm757_vm0, %v6330_v54, -inf  ;;  %v2883_v14 = vsel %vm757_vm0, %v6334_v6, -inf }
 0x952   : > { %v3078_v24 = vmul.f32 1.442695, %v3073_v20  ;;  %v3082_v25 = vmul.f32 1.442695, %v3075_v19 }
 0x953   : > { %v3068_v26 = vpop.xlane.xlu0 %3067 }
 0x954   : > { %v3074_v27 = vsub.f32 %v4746_v9, %v3068_v26  ;;  %5289 = vpow2.f32 %v3078_v24  ;;  %v2313_v9 = vsel %vm757_vm0, %v6372_v38, -inf }
 0x955   : > { %5291 = vpow2.f32 %v3082_v25 }
 0x956   : > { %v3080_v28 = vmul.f32 1.442695, %v3074_v27 }
 0x958   : > { %5293 = vpow2.f32 %v3080_v28 }
 0x95d   : > { %v6342_v29 = vpop.eup %5287 }
 0x95e   : > { %v3084_v31 = vsel %vm757_vm0, %v6342_v29, 0.0 }
 0x95f   : > { %3085 = vadd.xlane.f32.xlu0 %v3084_v31 }
 0x961   : > { %v6346_v32 = vpop.eup %5289 }
 0x962   : > { %v3087_v33 = vsel %vm757_vm0, %v6346_v32, 0.0  ;;  %v6350_v34 = vpop.eup %5291 }
 0x963   : > { %3088 = vadd.xlane.f32.xlu1 %v3087_v33  ;;  %v3093_v36 = vsel %vm757_vm0, %v6350_v34, 0.0 }
 0x965   : > { %v6352_v35 = vpop.eup %5293 }
 0x966   : > { %v3090_v37 = vsel %vm757_vm0, %v6352_v35, 0.0 }
 0x967   : > { %3091 = vadd.xlane.f32.xlu0 %v3090_v37  ;;  %3094 = vadd.xlane.f32.xlu1 %v3093_v36 }
 0x978   : > { %3181 = vrot.lane.b32.xlu1 %v6192_v55, %s5652_s28 }
 0x97c   : > { %3175 = vrot.lane.b32.xlu1 %v6190_v4, %s5652_s28 }
 0x97d   : > { %3183 = vrot.lane.b32.xlu0 %v6298_v8, %s5652_s28 }
 0x981   : > { %3177 = vrot.lane.b32.xlu0 %v6202_v10, %s5652_s28 }
 0x9a0   : > { %2314 = vmax.xlane.f32.xlu0 %v2313_v9  ;;  %2311 = vmax.xlane.f32.xlu1 %v2310_v58 }
 0x9a4   : > { %2317 = vmax.xlane.f32.xlu0 %v2316_v50  ;;  %2320 = vmax.xlane.f32.xlu1 %v2319_v59 }
 0x9a8   : > { %2497 = vmax.xlane.f32.xlu0 %v2496_v60  ;;  %2500 = vmax.xlane.f32.xlu1 %v2499_v17 }
 0x9ac   : > { %2503 = vmax.xlane.f32.xlu0 %v2502_v13  ;;  %2506 = vmax.xlane.f32.xlu1 %v2505_v7 }
 0x9b0   : > { %2875 = vmax.xlane.f32.xlu0 %v2874_v11  ;;  %2878 = vmax.xlane.f32.xlu1 %v2877_v12 }
 0x9b4   : > { %2881 = vmax.xlane.f32.xlu0 %v2880_v21  ;;  %2884 = vmax.xlane.f32.xlu1 %v2883_v14 }
 0x9e8   : > { %v3086_v18 = vpop.xlane.xlu0 %3085 }
 0x9e9   : > { %5295 = vrcp.f32 %v3086_v18 }
 0x9ec   : > { %v3089_v19 = vpop.xlane.xlu1 %3088 }
 0x9ed   : > { %5297 = vrcp.f32 %v3089_v19 }
 0x9f0   : > { %v3092_v20 = vpop.xlane.xlu0 %3091  ;;  %v3095_v24 = vpop.xlane.xlu1 %3094 }
 0x9f1   : > { %5299 = vrcp.f32 %v3092_v20 }
 0x9f2   : > { %5301 = vrcp.f32 %v3095_v24 }
 0x9f4   : > { %v3184_v25 = vpop.permute.xlu0 %3183  ;;  %v3182_v14 = vpop.permute.xlu1 %3181 }
 0x9f5   : > { %4814 = vmatprep.subr.msk.bf16.mxu1 %vm757_vm0, %v3184_v25 }
 0x9f6   : > { %v5296_v26 = vpop.eup %5295 }
 0x9f7   : > { %v3100_v27 = vmul.f32 %v5296_v26, %v3086_v18 }
 0x9f9   : > { %v3104_v28 = vsub.f32 2.0, %v3100_v27 }
 0x9fa   : > { %v5298_v31 = vpop.eup %5297 }
 0x9fb   : > { %v3101_v33 = vmul.f32 %v5298_v31, %v3089_v19  ;;  %v3108_v36 = vmul.f32 %v5296_v26, %v3104_v28 }
 0x9fd   : > { %v3105_v9 = vsub.f32 2.0, %v3101_v33  ;;  %v3112_v13 = vmul.f32 %v6342_v29, %v3108_v36  ;;  %v3192_v29 = vsel %vm757_vm0, %v3182_v14, 0 }
 0x9fe   : > { %v5300_v37 = vpop.eup %5299 }
 0x9ff   : > { %v5302_v58 = vpop.eup %5301  ;;  %v3102_v50 = vmul.f32 %v5300_v37, %v3092_v20  ;;  %v3109_v59 = vmul.f32 %v5298_v31, %v3105_v9  ;;  %v3195_v20 = vsel %vm757_vm0, %v3184_v25, 0 }
 0xa00   : > { %v3103_v60 = vmul.f32 %v5302_v58, %v3095_v24  ;;  %v3176_v24 = vpop.permute.xlu1 %3175 }
 0xa01   : > { %v3106_v17 = vsub.f32 2.0, %v3102_v50  ;;  %v3113_v7 = vmul.f32 %v6346_v32, %v3109_v59  ;;  %v3178_v32 = vpop.permute.xlu0 %3177 }
 0xa02   : > { %v3107_v11 = vsub.f32 2.0, %v3103_v60 }
 0xa03   : > { %v3110_v12 = vmul.f32 %v5300_v37, %v3106_v17  ;;  %v3116_v18 = vpack.c.bf16 %v3113_v7, %v3112_v13 }
 0xa04   : > { %v3111_v21 = vmul.f32 %v5302_v58, %v3107_v11 }
 0xa05   : > { %v3114_v27 = vmul.f32 %v6352_v35, %v3110_v12  ;;  %4752 = vmatprep.mubr.msk.bf16.mxu1 %vm757_vm0, %v3116_v18 }
 0xa06   : > { %v3115_v19 = vmul.f32 %v6350_v34, %v3111_v21 }
 0xa08   : > { %v3117_v26 = vpack.c.bf16 %v3115_v19, %v3114_v27 }
 0xa0a   : > { %4753 = vmatmul.mubr.msk.bf16.vlgmr.msra.gmra.mxu1 %vm757_vm0, %v3117_v26 }
 0xa0b   : > { %4757 = vmatpush3.bf16.xpose.msra.mxu1 %v3195_v20  ;;  %4760 = vmatprep.mubr.msk.bf16.mxu1 %vm757_vm0, %v3176_v24 }
 0xa0c   : > { %4815 = vmatprep.subr.msk.bf16.mxu1 %vm757_vm0, %v3182_v14 }
 0xa13   : > { %4759 = vmatpush3.bf16.xpose.msra.mxu1 %v3192_v29 }
 0xa1a   : > { %4761 = vmatmul.mubr.msk.bf16.vlgmr.msra.gmra.mxu1 %vm757_vm0, %v3178_v32 }
 0xa29   : > { %v2315_v34 = vpop.xlane.xlu0 %2314  ;;  %v2312_v35 = vpop.xlane.xlu1 %2311 }
 0xa2a   : > { %v2322_v37 = vsub.f32 %v6368_v44, %v2312_v35  ;;  %v2323_v9 = vsub.f32 %v6372_v38, %v2315_v34 }
 0xa2c   : > { %v2326_v50 = vmul.f32 1.442695, %v2322_v37  ;;  %v2328_v17 = vmul.f32 1.442695, %v2323_v9 }
 0xa2d   : > { %v2318_v28 = vpop.xlane.xlu0 %2317  ;;  %v2321_v31 = vpop.xlane.xlu1 %2320 }
 0xa2e   : > { %v2324_v59 = vsub.f32 %v6366_v42, %v2318_v28  ;;  %v2325_v13 = vsub.f32 %v6370_v3, %v2321_v31  ;;  %5303 = vpow2.f32 %v2326_v50 }
 0xa2f   : > { %5305 = vpow2.f32 %v2328_v17 }
 0xa30   : > { %v2330_v12 = vmul.f32 1.442695, %v2324_v59  ;;  %v2332_v44 = vmul.f32 1.442695, %v2325_v13 }
 0xa31   : > { %v2498_v33 = vpop.xlane.xlu0 %2497  ;;  %v2501_v36 = vpop.xlane.xlu1 %2500 }
 0xa32   : > { %v2508_v21 = vsub.f32 %v6263_v0, %v2498_v33  ;;  %v2509_v38 = vsub.f32 %v6267_v5, %v2501_v36  ;;  %5307 = vpow2.f32 %v2330_v12 }
 0xa33   : > { %5309 = vpow2.f32 %v2332_v44 }
 0xa34   : > { %v2512_v42 = vmul.f32 1.442695, %v2508_v21  ;;  %v2514_v26 = vmul.f32 1.442695, %v2509_v38 }
 0xa35   : > { %v2504_v60 = vpop.xlane.xlu0 %2503  ;;  %v2507_v7 = vpop.xlane.xlu1 %2506 }
 0xa36   : > { %v2510_v27 = vsub.f32 %v6261_v61, %v2504_v60  ;;  %v2511_v20 = vsub.f32 %v6265_v2, %v2507_v7  ;;  %5311 = vpow2.f32 %v2512_v42 }
 0xa37   : > { %5313 = vpow2.f32 %v2514_v26 }
 0xa38   : > { %v2516_v0 = vmul.f32 1.442695, %v2510_v27  ;;  %v2518_v61 = vmul.f32 1.442695, %v2511_v20 }
 0xa39   : > { %v2876_v14 = vpop.xlane.xlu0 %2875  ;;  %v2879_v19 = vpop.xlane.xlu1 %2878 }
 0xa3a   : > { %v2886_v5 = vsub.f32 %v6332_v62, %v2876_v14  ;;  %v2887_v35 = vsub.f32 %v6336_v57, %v2879_v19  ;;  %5315 = vpow2.f32 %v2516_v0 }
 0xa3b   : > { %v6443_v36 = vpop.eup %5303  ;;  %5317 = vpow2.f32 %v2518_v61 }
 0xa3c   : > { %v2890_v62 = vmul.f32 1.442695, %v2886_v5  ;;  %v2892_v9 = vmul.f32 1.442695, %v2887_v35  ;;  %v6448_v59 = vpop.eup %5305 }
 0xa3d   : > { %v2882_v32 = vpop.xlane.xlu0 %2881  ;;  %v2885_v28 = vpop.xlane.xlu1 %2884  ;;  %v2337_v7 = vsel %vm757_vm0, %v6448_v59, 0.0 }
 0xa3e   : > { %v2888_v33 = vsub.f32 %v6330_v54, %v2882_v32  ;;  %v2889_v57 = vsub.f32 %v6334_v6, %v2885_v28  ;;  %5319 = vpow2.f32 %v2890_v62  ;;  %v2334_v54 = vsel %vm757_vm0, %v6443_v36, 0.0 }
 0xa3f   : > { %v6452_v17 = vpop.eup %5307  ;;  %5321 = vpow2.f32 %v2892_v9 }
 0xa40   : > { %v2894_v60 = vmul.f32 1.442695, %v2888_v33  ;;  %v2896_v13 = vmul.f32 1.442695, %v2889_v57  ;;  %v6456_v6 = vpop.eup %5309  ;;  %v2340_v12 = vsel %vm757_vm0, %v6452_v17, 0.0 }
 0xa41   : > { %v2343_v44 = vsel %vm757_vm0, %v6456_v6, 0.0 }
 0xa42   : > { %5323 = vpow2.f32 %v2894_v60 }
 0xa43   : > { %v6460_v21 = vpop.eup %5311  ;;  %5325 = vpow2.f32 %v2896_v13 }
 0xa44   : > { %v6464_v38 = vpop.eup %5313  ;;  %v2520_v14 = vsel %vm757_vm0, %v6460_v21, 0.0 }
 0xa45   : > { %v2523_v27 = vsel %vm757_vm0, %v6464_v38, 0.0 }
 0xa47   : > { %v6468_v42 = vpop.eup %5315 }
 0xa48   : > { %v6472_v19 = vpop.eup %5317  ;;  %v2526_v26 = vsel %vm757_vm0, %v6468_v42, 0.0 }
 0xa49   : > { %v2529_v0 = vsel %vm757_vm0, %v6472_v19, 0.0 }
 0xa4b   : > { %v6476_v20 = vpop.eup %5319 }
 0xa4c   : > { %v6480_v5 = vpop.eup %5321 }
 0xa4d   : > { %v2901_v61 = vsel %vm757_vm0, %v6480_v5, 0.0 }
 0xa4f   : > { %v6484_v32 = vpop.eup %5323 }
 0xa50   : > { %v6488_v35 = vpop.eup %5325 }
 0xa51   : > { %v2907_v28 = vsel %vm757_vm0, %v6488_v35, 0.0 }
 0xaca   : > { %v6410_v25 = vpop.f32.mrf.mxu1 }
 0xacc   : > { %v6414_v58 = vpop.f32.mrf.mxu1 }
 0xace   : > { %v6418_v11 = vpop.f32.mrf.mxu1 }
 0xad0   : > { %v6422_v18 = vpop.f32.mrf.mxu1 }
 0xada   : > { %v6425_v3 = vpop.f32.mrf.mxu1 }
 0xadb   : > { %v3252_v37 = vsel %vm757_vm0, %v6425_v3, -inf }
 0xadc   : > { %v6428_v24 = vpop.f32.mrf.mxu1 }
 0xadd   : > { %v3246_v29 = vsel %vm757_vm0, %v6428_v24, -inf }
 0xade   : > { %v6433_v34 = vpop.f32.mrf.mxu1  ;;  %3247 = vmax.xlane.f32.xlu0 %v3246_v29  ;;  %v2898_v29 = vsel %vm757_vm0, %v6476_v20, 0.0 }
 0xadf   : > { %v3255_v2 = vsel %vm757_vm0, %v6433_v34, -inf }
 0xae0   : > { %v6438_v31 = vpop.f32.mrf.mxu1  ;;  %3256 = vmax.xlane.f32.xlu1 %v3255_v2  ;;  %v2904_v2 = vsel %vm757_vm0, %v6484_v32, 0.0 }
 0xae1   : > { %v3249_v50 = vsel %vm757_vm0, %v6438_v31, -inf }
 0xae2   : > { %3253 = vmax.xlane.f32.xlu0 %v3252_v37 }
 0xae4   : > { %3250 = vmax.xlane.f32.xlu1 %v3249_v50 }
 0xae6   : > { %2335 = vadd.xlane.f32.xlu0 %v2334_v54 }
 0xae8   : > { %2338 = vadd.xlane.f32.xlu1 %v2337_v7 }
 0xaea   : > { %2341 = vadd.xlane.f32.xlu0 %v2340_v12 }
 0xaec   : > { %2344 = vadd.xlane.f32.xlu1 %v2343_v44 }
 0xaee   : > { %2521 = vadd.xlane.f32.xlu0 %v2520_v14 }
 0xaf0   : > { %2524 = vadd.xlane.f32.xlu1 %v2523_v27 }
 0xaf2   : > { %2527 = vadd.xlane.f32.xlu0 %v2526_v26 }
 0xaf4   : > { %2530 = vadd.xlane.f32.xlu1 %v2529_v0 }
 0xaf6   : > { %2899 = vadd.xlane.f32.xlu0 %v2898_v29 }
 0xaf8   : > { %2902 = vadd.xlane.f32.xlu1 %v2901_v61 }
 0xafa   : > { %2905 = vadd.xlane.f32.xlu0 %v2904_v2 }
 0xafc   : > { %2908 = vadd.xlane.f32.xlu1 %v2907_v28 }
 0xb0d   : > { %2556 = vrot.lane.b32.xlu1 %v6241_v45, %s5652_s28 }
 0xb10   : > { %2558 = vrot.lane.b32.xlu0 %v6239_v43, %s5652_s28 }
 0xb11   : > { %2934 = vrot.lane.b32.xlu1 %v6239_v43, %s5654_s27 }
 0xb15   : > { %3308 = vrot.lane.b32.xlu1 %v6243_v47, %s5652_s28 }
 0xb67   : > { %v3248_v62 = vpop.xlane.xlu0 %3247 }
 0xb68   : > { %v3258_v33 = vsub.f32 %v6428_v24, %v3248_v62 }
 0xb69   : > { %v3257_v37 = vpop.xlane.xlu1 %3256 }
 0xb6a   : > { %v3261_v9 = vsub.f32 %v6433_v34, %v3257_v37  ;;  %v3262_v57 = vmul.f32 1.442695, %v3258_v33 }
 0xb6b   : > { %v3254_v50 = vpop.xlane.xlu0 %3253 }
 0xb6c   : > { %v3268_v60 = vmul.f32 1.442695, %v3261_v9  ;;  %v3260_v54 = vsub.f32 %v6425_v3, %v3254_v50 }
 0xb6d   : > { %v3251_v13 = vpop.xlane.xlu1 %3250 }
 0xb6e   : > { %5327 = vpow2.f32 %v3268_v60  ;;  %v3266_v7 = vmul.f32 1.442695, %v3260_v54  ;;  %v3259_v12 = vsub.f32 %v6438_v31, %v3251_v13 }
 0xb6f   : > { %5329 = vpow2.f32 %v3262_v57  ;;  %v2336_v43 = vpop.xlane.xlu0 %2335 }
 0xb70   : > { %5331 = vpow2.f32 %v3266_v7  ;;  %v3264_v44 = vmul.f32 1.442695, %v3259_v12 }
 0xb71   : > { %5333 = vrcp.f32 %v2336_v43  ;;  %v2339_v14 = vpop.xlane.xlu1 %2338 }
 0xb72   : > { %5335 = vpow2.f32 %v3264_v44 }
 0xb73   : > { %5337 = vrcp.f32 %v2339_v14  ;;  %v2342_v24 = vpop.xlane.xlu0 %2341 }
 0xb74   : > { %5339 = vrcp.f32 %v2342_v24 }
 0xb75   : > { %v2345_v34 = vpop.xlane.xlu1 %2344 }
 0xb76   : > { %5341 = vrcp.f32 %v2345_v34 }
 0xb77   : > { %v2522_v27 = vpop.xlane.xlu0 %2521 }
 0xb78   : > { %5343 = vrcp.f32 %v2522_v27 }
 0xb79   : > { %v2525_v3 = vpop.xlane.xlu1 %2524 }
 0xb7a   : > { %5345 = vrcp.f32 %v2525_v3 }
 0xb7b   : > { %v6506_v26 = vpop.eup %5327  ;;  %v2528_v0 = vpop.xlane.xlu0 %2527 }
 0xb7c   : > { %v6508_v31 = vpop.eup %5329  ;;  %5347 = vrcp.f32 %v2528_v0  ;;  %v3279_v29 = vsel %vm757_vm0, %v6506_v26, 0.0 }
 0xb7d   : > { %v6512_v61 = vpop.eup %5331  ;;  %3280 = vadd.xlane.f32.xlu1 %v3279_v29  ;;  %v2531_v2 = vpop.xlane.xlu1 %2530  ;;  %v3270_v44 = vsel %vm757_vm0, %v6508_v31, 0.0 }
 0xb7e   : > { %v5334_v28 = vpop.eup %5333  ;;  %5349 = vrcp.f32 %v2531_v2  ;;  %v3276_v62 = vsel %vm757_vm0, %v6512_v61, 0.0 }
 0xb7f   : > { %v6516_v33 = vpop.eup %5335  ;;  %v2350_v37 = vmul.f32 %v5334_v28, %v2336_v43  ;;  %3277 = vadd.xlane.f32.xlu0 %v3276_v62  ;;  %v2900_v9 = vpop.xlane.xlu0 %2899 }
 0xb80   : > { %v5338_v57 = vpop.eup %5337  ;;  %5351 = vrcp.f32 %v2900_v9  ;;  %v3273_v50 = vsel %vm757_vm0, %v6516_v33, 0.0 }
 0xb81   : > { %v5340_v60 = vpop.eup %5339  ;;  %v2354_v54 = vsub.f32 2.0, %v2350_v37  ;;  %v2351_v13 = vmul.f32 %v5338_v57, %v2339_v14  ;;  %3274 = vadd.xlane.f32.xlu1 %v3273_v50  ;;  %v2903_v7 = vpop.xlane.xlu1 %2902 }
 0xb82   : > { %v2352_v12 = vmul.f32 %v5340_v60, %v2342_v24  ;;  %5353 = vrcp.f32 %v2903_v7 }
 0xb83   : > { %v5342_v29 = vpop.eup %5341  ;;  %v2358_v51 = vmul.f32 %v5334_v28, %v2354_v54  ;;  %v2355_v43 = vsub.f32 2.0, %v2351_v13  ;;  %3271 = vadd.xlane.f32.xlu0 %v3270_v44  ;;  %v2906_v62 = vpop.xlane.xlu0 %2905 }
 0xb84   : > { %v2356_v53 = vsub.f32 2.0, %v2352_v12  ;;  %v2353_v46 = vmul.f32 %v5342_v29, %v2345_v34  ;;  %5355 = vrcp.f32 %v2906_v62 }
 0xb85   : > { %v5344_v40 = vpop.eup %5343  ;;  %v2359_v39 = vmul.f32 %v5338_v57, %v2355_v43  ;;  %v2909_v41 = vpop.xlane.xlu1 %2908  ;;  %v2362_v23 = vmul.f32 %v6443_v36, %v2358_v51 }
 0xb86   : > { %v2360_v37 = vmul.f32 %v5340_v60, %v2356_v53  ;;  %v2357_v14 = vsub.f32 2.0, %v2353_v46  ;;  %v2536_v50 = vmul.f32 %v5344_v40, %v2522_v27  ;;  %5357 = vrcp.f32 %v2909_v41 }
 0xb87   : > { %v5346_v24 = vpop.eup %5345  ;;  %v2363_v15 = vmul.f32 %v6448_v59, %v2359_v39  ;;  %v2559_v22 = vpop.permute.xlu0 %2558 }
 0xb88   : > { %v2361_v28 = vmul.f32 %v5342_v29, %v2357_v14  ;;  %v2540_v54 = vsub.f32 2.0, %v2536_v50  ;;  %v2537_v13 = vmul.f32 %v5346_v24, %v2525_v3  ;;  %4700 = vmatprep.subr.bf16.mxu0 %v2559_v22  ;;  %v2364_v34 = vmul.f32 %v6452_v17, %v2360_v37 }
 0xb89   : > { %v5348_v12 = vpop.eup %5347  ;;  %v2366_v44 = vpack.c.bf16 %v2363_v15, %v2362_v23  ;;  %v2557_v43 = vpop.permute.xlu1 %2556 }
 0xb8a   : > { %v2365_v57 = vmul.f32 %v6456_v6, %v2361_v28  ;;  %v2544_v53 = vmul.f32 %v5344_v40, %v2540_v54  ;;  %v2541_v46 = vsub.f32 2.0, %v2537_v13  ;;  %v2538_v27 = vmul.f32 %v5348_v12, %v2528_v0 }
 0xb8b   : > { %v5350_v60 = vpop.eup %5349  ;;  %4688 = vmatprep.mubr.msk.bf16.mxu0 %vm757_vm0, %v2366_v44 }
 0xb8c   : > { %v2367_v51 = vpack.c.bf16 %v2365_v57, %v2364_v34  ;;  %v2545_v36 = vmul.f32 %v5346_v24, %v2541_v46  ;;  %v2542_v39 = vsub.f32 2.0, %v2538_v27  ;;  %v2539_v29 = vmul.f32 %v5350_v60, %v2531_v2 }
 0xb8d   : > { %v5352_v59 = vpop.eup %5351  ;;  %v2548_v3 = vmul.f32 %v6460_v21, %v2544_v53 }
 0xb8e   : > { %v2549_v14 = vmul.f32 %v6464_v38, %v2545_v36  ;;  %v2914_v17 = vmul.f32 %v5352_v59, %v2900_v9  ;;  %4689 = vmatmul.mubr.msk.bf16.vlgmr.msra.gmra.mxu0 %vm757_vm0, %v2367_v51  ;;  %v2546_v23 = vmul.f32 %v5348_v12, %v2542_v39  ;;  %v2543_v40 = vsub.f32 2.0, %v2539_v29 }
 0xb8f   : > { %v5354_v15 = vpop.eup %5353  ;;  %4701 = vmatpush3.bf16.msra.mxu0 %v2559_v22  ;;  %v2935_v22 = vpop.permute.xlu1 %2934 }
 0xb90   : > { %v2918_v6 = vsub.f32 2.0, %v2914_v17  ;;  %v2915_v0 = vmul.f32 %v5354_v15, %v2903_v7  ;;  %4702 = vmatprep.subr.bf16.mxu0 %v2557_v43  ;;  %v2552_v37 = vpack.c.bf16 %v2549_v14, %v2548_v3  ;;  %v2547_v24 = vmul.f32 %v5350_v60, %v2543_v40 }
 0xb91   : > { %v5356_v50 = vpop.eup %5355  ;;  %v2550_v38 = vmul.f32 %v6468_v42, %v2546_v23 }
 0xb92   : > { %v2922_v28 = vmul.f32 %v5352_v59, %v2918_v6  ;;  %v2919_v2 = vsub.f32 2.0, %v2915_v0  ;;  %v2916_v54 = vmul.f32 %v5356_v50, %v2906_v62  ;;  %3373 = vrot.lane.b32.xlu1 %v6298_v8, %s5653_s20  ;;  %4704 = vmatprep.mubr.msk.bf16.mxu0 %vm757_vm0, %v2552_v37  ;;  %v2551_v9 = vmul.f32 %v6472_v19, %v2547_v24 }
 0xb93   : > { %v5358_v21 = vpop.eup %5357  ;;  %4703 = vmatpush3.bf16.msra.mxu0 %v2557_v43 }
 0xb94   : > { %v2923_v7 = vmul.f32 %v5354_v15, %v2919_v2  ;;  %v2920_v13 = vsub.f32 2.0, %v2916_v54  ;;  %v2917_v12 = vmul.f32 %v5358_v21, %v2909_v41  ;;  %4732 = vmatprep.subr.bf16.mxu0 %v2935_v22  ;;  %v2553_v34 = vpack.c.bf16 %v2551_v9, %v2550_v38 }
 0xb95   : > { %v2926_v44 = vmul.f32 %v6476_v20, %v2922_v28 }
 0xb96   : > { %v2927_v62 = vmul.f32 %v6480_v5, %v2923_v7  ;;  %v2924_v57 = vmul.f32 %v5356_v50, %v2920_v13  ;;  %v2921_v53 = vsub.f32 2.0, %v2917_v12  ;;  %3367 = vrot.lane.b32.xlu1 %v6190_v4, %s5653_s20  ;;  %4705 = vmatmul.mubr.msk.bf16.vlgmr.msra.gmra.mxu0 %vm757_vm0, %v2553_v34  ;;  %v3309_v5 = vpop.permute.xlu1 %3308 }
 0xb97   : > { %4733 = vmatpush3.bf16.msra.mxu0 %v2935_v22 }
 0xb98   : > { %v2925_v42 = vmul.f32 %v5358_v21, %v2921_v53  ;;  %v2930_v19 = vpack.c.bf16 %v2927_v62, %v2926_v44  ;;  %v2928_v41 = vmul.f32 %v6484_v32, %v2924_v57 }
 0xb99   : > { %2932 = vrot.lane.b32.xlu0 %v6241_v45, %s5654_s27 }
 0xb9a   : > { %v2929_v46 = vmul.f32 %v6488_v35, %v2925_v42  ;;  %4736 = vmatprep.mubr.msk.bf16.mxu0 %vm757_vm0, %v2930_v19 }
 0xb9c   : > { %v2931_v20 = vpack.c.bf16 %v2929_v46, %v2928_v41 }
 0xb9d   : > { %3306 = vrot.lane.b32.xlu0 %v6236_v30, %s5652_s28 }
 0xba1   : > { %3371 = vrot.lane.b32.xlu0 %v6192_v55, %s5653_s20 }
 0xba5   : > { %3369 = vrot.lane.b32.xlu0 %v6202_v10, %s5653_s20 }
 0xc06   : > { %v3281_v27 = vpop.xlane.xlu1 %3280 }
 0xc07   : > { %5359 = vrcp.f32 %v3281_v27 }
 0xc08   : > { %v3278_v45 = vpop.xlane.xlu0 %3277 }
 0xc09   : > { %5361 = vrcp.f32 %v3278_v45 }
 0xc0a   : > { %v3275_v32 = vpop.xlane.xlu1 %3274 }
 0xc0b   : > { %5363 = vrcp.f32 %v3275_v32 }
 0xc0c   : > { %v3272_v35 = vpop.xlane.xlu0 %3271 }
 0xc0d   : > { %5365 = vrcp.f32 %v3272_v35 }
 0xc0e   : > { %v3374_v23 = vpop.permute.xlu1 %3373 }
 0xc0f   : > { %v3385_v7 = vsel %vm757_vm0, %v3374_v23, 0 }
 0xc10   : > { %v2933_v60 = vpop.permute.xlu0 %2932 }
 0xc11   : > { %4734 = vmatprep.subr.bf16.mxu0 %v2933_v60 }
 0xc12   : > { %4735 = vmatpush3.bf16.msra.mxu0 %v2933_v60  ;;  %v3368_v13 = vpop.permute.xlu1 %3367 }
 0xc13   : > { %4764 = vmatprep.subr.bf16.mxu0 %v3309_v5 }
 0xc14   : > { %v5360_v51 = vpop.eup %5359  ;;  %v3307_v59 = vpop.permute.xlu0 %3306 }
 0xc15   : > { %4737 = vmatmul.mubr.msk.bf16.vlgmr.msra.gmra.mxu0 %vm757_vm0, %v2931_v20  ;;  %v3289_v39 = vmul.f32 %v5360_v51, %v3281_v27 }
 0xc16   : > { %v5362_v36 = vpop.eup %5361  ;;  %4765 = vmatpush3.bf16.msra.mxu0 %v3309_v5 }
 0xc17   : > { %v3288_v29 = vmul.f32 %v5362_v36, %v3278_v45  ;;  %4766 = vmatprep.subr.bf16.mxu0 %v3307_v59  ;;  %v3293_v15 = vsub.f32 2.0, %v3289_v39 }
 0xc18   : > { %v5364_v43 = vpop.eup %5363  ;;  %v3372_v12 = vpop.permute.xlu0 %3371 }
 0xc19   : > { %v3292_v3 = vsub.f32 2.0, %v3288_v29  ;;  %v3287_v14 = vmul.f32 %v5364_v43, %v3275_v32  ;;  %v3297_v24 = vmul.f32 %v5360_v51, %v3293_v15 }
 0xc1a   : > { %v5366_v17 = vpop.eup %5365  ;;  %4767 = vmatpush3.bf16.msra.mxu0 %v3307_v59 }
 0xc1b   : > { %v3291_v40 = vsub.f32 2.0, %v3287_v14  ;;  %v3286_v6 = vmul.f32 %v5366_v17, %v3272_v35  ;;  %4816 = vmatprep.subr.msk.bf16.mxu0 %vm757_vm0, %v3374_v23  ;;  %v3296_v0 = vmul.f32 %v5362_v36, %v3292_v3  ;;  %v3301_v38 = vmul.f32 %v6506_v26, %v3297_v24 }
 0xc1d   : > { %v3295_v37 = vmul.f32 %v5364_v43, %v3291_v40  ;;  %v3290_v50 = vsub.f32 2.0, %v3286_v6  ;;  %v3300_v2 = vmul.f32 %v6512_v61, %v3296_v0  ;;  %v3382_v61 = vsel %vm757_vm0, %v3372_v12, 0 }
 0xc1f   : > { %v3294_v28 = vmul.f32 %v5366_v17, %v3290_v50  ;;  %v3299_v54 = vmul.f32 %v6516_v33, %v3295_v37  ;;  %v3303_v22 = vpack.c.bf16 %v3301_v38, %v3300_v2 }
 0xc21   : > { %v3298_v21 = vmul.f32 %v6508_v31, %v3294_v28  ;;  %v3370_v31 = vpop.permute.xlu0 %3369 }
 0xc23   : > { %v3302_v9 = vpack.c.bf16 %v3299_v54, %v3298_v21 }
 0xc25   : > { %4768 = vmatprep.mubr.msk.bf16.mxu0 %vm757_vm0, %v3302_v9 }
 0xc26   : > { %4769 = vmatmul.mubr.msk.bf16.vlgmr.msra.gmra.mxu0 %vm757_vm0, %v3303_v22 }
 0xc27   : > { %4773 = vmatpush3.bf16.xpose.msra.mxu0 %v3385_v7  ;;  %4776 = vmatprep.mubr.msk.bf16.mxu0 %vm757_vm0, %v3368_v13 }
 0xc28   : > { %4817 = vmatprep.subr.msk.bf16.mxu0 %vm757_vm0, %v3372_v12 }
 0xc2f   : > { %4775 = vmatpush3.bf16.xpose.msra.mxu0 %v3382_v61 }
 0xc36   : > { %4777 = vmatmul.mubr.msk.bf16.vlgmr.msra.gmra.mxu0 %vm757_vm0, %v3370_v31 }
 0xc4e   : > { %v6564_v26 = vpop.f32.mrf.mxu0 }
 0xc50   : > { %v6566_v33 = vpop.f32.mrf.mxu0 }
 0xc52   : > { %v6568_v34 = vpop.f32.mrf.mxu0 }
 0xc54   : > { %v6570_v44 = vpop.f32.mrf.mxu0 }
 0xc56   : > { %v6572_v62 = vpop.f32.mrf.mxu0 }
 0xc58   : > { %v6574_v57 = vpop.f32.mrf.mxu0 }
 0xc5a   : > { %v6576_v53 = vpop.f32.mrf.mxu0 }
 0xc5b   : > { %v4955_v42 = vpack.i.bf16 %v6576_v53, %v6572_v62 }
 0xc5c   : > { %v6580_v19 = vpop.f32.mrf.mxu0 }
 0xcd5   : > { %v6582_v41 = vpop.f32.mrf.mxu0 }
 0xcd7   : > { %v6584_v46 = vpop.f32.mrf.mxu0 }
 0xcd9   : > { %v6586_v20 = vpop.f32.mrf.mxu0 }
 0xcda   : > { %v4980_v5 = vpack.i.bf16 %v6586_v20, %v6582_v41 }
 0xcdb   : > { %v6590_v27 = vpop.f32.mrf.mxu0 }
 0xcdc   : > { %v4945_v45 = vpack.i.bf16 %v6590_v27, %v6584_v46 }
 0xce6   : > { %v6594_v32 = vpop.f32.mrf.mxu0 }
 0xce8   : > { %v6596_v35 = vpop.f32.mrf.mxu0 }
 0xcea   : > { %v6598_v60 = vpop.f32.mrf.mxu0 }
 0xceb   : > { %v4950_v51 = vpack.i.bf16 %v6598_v60, %v6594_v32 }
 0xcec   : > { %v6602_v36 = vpop.f32.mrf.mxu0 }
 0xced   : > { %v4925_v39 = vpack.i.bf16 %v6602_v36, %v6596_v35 }
 0xcf6   : > { %v4778_v59 = vpop.f32.mrf.mxu0 }
 0xcf7   : > { %v3442_v23 = vsel %vm757_vm0, %v4778_v59, -inf }
 0xcf8   : > { %v3421_v29 = vpop.f32.mrf.mxu0 }
 0xcf9   : > { %v3436_v43 = vsel %vm757_vm0, %v3421_v29, -inf }
 0xcfa   : > { %3437 = vmax.xlane.f32.xlu1 %v3436_v43  ;;  %v4779_v3 = vpop.f32.mrf.mxu0 }
 0xcfb   : > { %v3445_v17 = vsel %vm757_vm0, %v4779_v3, -inf }
 0xcfc   : > { %v3424_v14 = vpop.f32.mrf.mxu0 }
 0xcfd   : > { %v3439_v15 = vsel %vm757_vm0, %v3424_v14, -inf }
 0xcfe   : > { %3446 = vmax.xlane.f32.xlu1 %v3445_v17  ;;  %3440 = vmax.xlane.f32.xlu0 %v3439_v15 }
 0xd02   : > { %3443 = vmax.xlane.f32.xlu0 %v3442_v23 }
 0xd0f   : > { %3494 = vrot.lane.b32.xlu1 %v6236_v30, %s5653_s20 }
 0xd83   : > { %v3438_v40 = vpop.xlane.xlu1 %3437 }
 0xd84   : > { %v3448_v24 = vsub.f32 %v3421_v29, %v3438_v40 }
 0xd86   : > { %v3452_v38 = vmul.f32 1.442695, %v3448_v24 }
 0xd87   : > { %v3447_v6 = vpop.xlane.xlu1 %3446  ;;  %v3441_v0 = vpop.xlane.xlu0 %3440 }
 0xd88   : > { %v3451_v37 = vsub.f32 %v4779_v3, %v3447_v6  ;;  %v3449_v50 = vsub.f32 %v3424_v14, %v3441_v0 }
 0xd8a   : > { %v3458_v28 = vmul.f32 1.442695, %v3451_v37  ;;  %v3454_v2 = vmul.f32 1.442695, %v3449_v50 }
 0xd8b   : > { %v3444_v54 = vpop.xlane.xlu0 %3443  ;;  %v3495_v43 = vpop.permute.xlu1 %3494 }
 0xd8c   : > { %5367 = vpow2.f32 %v3458_v28  ;;  %v3450_v21 = vsub.f32 %v4778_v59, %v3444_v54 }
 0xd8d   : > { %5369 = vpow2.f32 %v3454_v2 }
 0xd8e   : > { %v3456_v9 = vmul.f32 1.442695, %v3450_v21 }
 0xd90   : > { %5371 = vpow2.f32 %v3456_v9 }
 0xd91   : > { %5373 = vpow2.f32 %v3452_v38 }
 0xd99   : > { %v5368_v22 = vpop.eup %5367 }
 0xd9a   : > { %v3469_v7 = vsel %vm757_vm0, %v5368_v22, 0.0  ;;  %v5370_v13 = vpop.eup %5369 }
 0xd9b   : > { %3470 = vadd.xlane.f32.xlu1 %v3469_v7  ;;  %v3463_v61 = vsel %vm757_vm0, %v5370_v13, 0.0 }
 0xd9d   : > { %v5372_v12 = vpop.eup %5371 }
 0xd9e   : > { %v3466_v31 = vsel %vm757_vm0, %v5372_v12, 0.0  ;;  %v5374_v29 = vpop.eup %5373 }
 0xd9f   : > { %3464 = vadd.xlane.f32.xlu1 %v3463_v61  ;;  %3467 = vadd.xlane.f32.xlu0 %v3466_v31  ;;  %v3460_v59 = vsel %vm757_vm0, %v5374_v29, 0.0 }
 0xda3   : > { %3461 = vadd.xlane.f32.xlu0 %v3460_v59 }
 0xdb0   : > { %3561 = vrot.lane.b32.xlu1 %v6298_v8, %s5654_s27 }
 0xdb4   : > { %3555 = vrot.lane.b32.xlu1 %v6190_v4, %s5654_s27 }
 0xdb9   : > { %3496 = vrot.lane.b32.xlu0 %v6243_v47, %s5653_s20 }
 0xdbd   : > { %3559 = vrot.lane.b32.xlu0 %v6192_v55, %s5654_s27 }
 0xdc1   : > { %3557 = vrot.lane.b32.xlu0 %v6202_v10, %s5654_s27 }
 0xe24   : > { %v3471_v3 = vpop.xlane.xlu1 %3470 }
 0xe25   : > { %5375 = vrcp.f32 %v3471_v3 }
 0xe28   : > { %v3465_v14 = vpop.xlane.xlu1 %3464  ;;  %v3468_v17 = vpop.xlane.xlu0 %3467 }
 0xe29   : > { %5377 = vrcp.f32 %v3465_v14 }
 0xe2a   : > { %5379 = vrcp.f32 %v3468_v17 }
 0xe2c   : > { %v3462_v8 = vpop.xlane.xlu0 %3461  ;;  %v3562_v55 = vpop.permute.xlu1 %3561 }
 0xe2d   : > { %5381 = vrcp.f32 %v3462_v8 }
 0xe30   : > { %v3497_v15 = vpop.permute.xlu0 %3496 }
 0xe31   : > { %4780 = vmatprep.subr.bf16.mxu1 %v3497_v15 }
 0xe32   : > { %4781 = vmatpush3.bf16.msra.mxu1 %v3497_v15  ;;  %v5376_v4 = vpop.eup %5375 }
 0xe33   : > { %4782 = vmatprep.subr.bf16.mxu1 %v3495_v43  ;;  %v3479_v40 = vmul.f32 %v5376_v4, %v3471_v3 }
 0xe35   : > { %v3483_v24 = vsub.f32 2.0, %v3479_v40  ;;  %v3560_v40 = vpop.permute.xlu0 %3559 }
 0xe36   : > { %v5378_v23 = vpop.eup %5377  ;;  %4783 = vmatpush3.bf16.msra.mxu1 %v3495_v43 }
 0xe37   : > { %v5380_v6 = vpop.eup %5379  ;;  %v3477_v10 = vmul.f32 %v5378_v23, %v3465_v14  ;;  %4818 = vmatprep.subr.msk.bf16.mxu1 %vm757_vm0, %v3562_v55  ;;  %v3487_v9 = vmul.f32 %v5376_v4, %v3483_v24  ;;  %v3573_v14 = vsel %vm757_vm0, %v3562_v55, 0 }
 0xe38   : > { %v3478_v0 = vmul.f32 %v5380_v6, %v3468_v17  ;;  %v3556_v17 = vpop.permute.xlu1 %3555 }
 0xe39   : > { %v3481_v37 = vsub.f32 2.0, %v3477_v10  ;;  %v3491_v3 = vmul.f32 %v5368_v22, %v3487_v9 }
 0xe3a   : > { %v5382_v50 = vpop.eup %5381  ;;  %v3482_v28 = vsub.f32 2.0, %v3478_v0 }
 0xe3b   : > { %v3476_v2 = vmul.f32 %v5382_v50, %v3462_v8  ;;  %v3485_v21 = vmul.f32 %v5378_v23, %v3481_v37 }
 0xe3c   : > { %v3486_v54 = vmul.f32 %v5380_v6, %v3482_v28 }
 0xe3d   : > { %v3480_v38 = vsub.f32 2.0, %v3476_v2  ;;  %v3489_v31 = vmul.f32 %v5370_v13, %v3485_v21  ;;  %v3558_v13 = vpop.permute.xlu0 %3557 }
 0xe3e   : > { %v3490_v61 = vmul.f32 %v5372_v12, %v3486_v54  ;;  %v3570_v12 = vsel %vm757_vm0, %v3560_v40, 0 }
 0xe3f   : > { %v3484_v7 = vmul.f32 %v5382_v50, %v3480_v38 }
 0xe40   : > { %v3493_v15 = vpack.c.bf16 %v3491_v3, %v3490_v61 }
 0xe41   : > { %v3488_v59 = vmul.f32 %v5374_v29, %v3484_v7 }
 0xe43   : > { %v3492_v43 = vpack.c.bf16 %v3489_v31, %v3488_v59 }
 0xe45   : > { %4784 = vmatprep.mubr.msk.bf16.mxu1 %vm757_vm0, %v3492_v43 }
 0xe46   : > { %4785 = vmatmul.mubr.msk.bf16.vlgmr.msra.gmra.mxu1 %vm757_vm0, %v3493_v15 }
 0xe47   : > { %4789 = vmatpush3.bf16.xpose.msra.mxu1 %v3573_v14  ;;  %4792 = vmatprep.mubr.msk.bf16.mxu1 %vm757_vm0, %v3556_v17 }
 0xe48   : > { %4819 = vmatprep.subr.msk.bf16.mxu1 %vm757_vm0, %v3560_v40 }
 0xe4f   : > { %4791 = vmatpush3.bf16.xpose.msra.mxu1 %v3570_v12 }
 0xe56   : > { %4793 = vmatmul.mubr.msk.bf16.vlgmr.msra.gmra.mxu1 %vm757_vm0, %v3558_v13 }
 0xf06   : > { %v6634_v22 = vpop.f32.mrf.mxu1 }
 0xf08   : > { %v3540_v29 = vpop.f32.mrf.mxu1 }
 0xf0a   : > { %v6636_v8 = vpop.f32.mrf.mxu1 }
 0xf0b   : > { %v4965_v4 = vpack.i.bf16 %v6636_v8, %v6634_v22 }
 0xf0c   : > { %v3543_v23 = vpop.f32.mrf.mxu1 }
 0xf0d   : > { %v4935_v55 = vpack.i.bf16 %v3543_v23, %v3540_v29 }
 0xf16   : > { %v4794_v6 = vpop.f32.mrf.mxu1 }
 0xf17   : > { %v3630_v2 = vsel %vm757_vm0, %v4794_v6, -inf }
 0xf18   : > { %v3609_v10 = vpop.f32.mrf.mxu1 }
 0xf19   : > { %v3624_v0 = vsel %vm757_vm0, %v3609_v10, -inf }
 0xf1a   : > { %3625 = vmax.xlane.f32.xlu1 %v3624_v0  ;;  %v4795_v37 = vpop.f32.mrf.mxu1  ;;  %v4930_v0 = vpack.i.bf16 %v6580_v19, %v6574_v57 }
 0xf1b   : > { %v3633_v28 = vsel %vm757_vm0, %v4795_v37, -inf }
 0xf1c   : > { %v3612_v50 = vpop.f32.mrf.mxu1 }
 0xf1d   : > { %v3627_v24 = vsel %vm757_vm0, %v3612_v50, -inf }
 0xf1e   : > { %3634 = vmax.xlane.f32.xlu1 %v3633_v28  ;;  %3628 = vmax.xlane.f32.xlu0 %v3627_v24 }
 0xf22   : > { %3631 = vmax.xlane.f32.xlu0 %v3630_v2 }
 0xfa3   : > { %v3626_v54 = vpop.xlane.xlu1 %3625 }
 0xfa4   : > { %v3636_v61 = vsub.f32 %v3609_v10, %v3626_v54 }
 0xfa6   : > { %v3640_v15 = vmul.f32 1.442695, %v3636_v61  ;;  %v5197_v61 = vld [vmem:[#allocation12 + $0x54] ss:$8 sps:$4 sm:$0xff]  }
 0xfa7   : > { %v3635_v21 = vpop.xlane.xlu1 %3634  ;;  %v3629_v38 = vpop.xlane.xlu0 %3628 }
 0xfa8   : > { %v3639_v9 = vsub.f32 %v4795_v37, %v3635_v21  ;;  %v3637_v7 = vsub.f32 %v3612_v50, %v3629_v38  ;;  %v5189_v21 = vld [vmem:[#allocation12 + $0x70] ss:$8 sps:$4 sm:$0xff]   ;;  %v5191_v38 = vld [vmem:[#allocation12 + $0x74] ss:$8 sps:$4 sm:$0xff]  }
 0xfaa   : > { %v3646_v31 = vmul.f32 1.442695, %v3639_v9  ;;  %v3642_v59 = vmul.f32 1.442695, %v3637_v7  ;;  %v5194_v9 = vld [vmem:[#allocation12 + $0x64] ss:$8 sps:$4 sm:$0xff]  }
 0xfab   : > { %v3632_v3 = vpop.xlane.xlu0 %3631  ;;  %v5192_v7 = vld [vmem:[#allocation12 + $0x60] ss:$8 sps:$4 sm:$0xff]  }
 0xfac   : > { %5383 = vpow2.f32 %v3646_v31  ;;  %v3638_v43 = vsub.f32 %v4794_v6, %v3632_v3  ;;  %v5195_v31 = vld [vmem:[#allocation12 + $0x50] ss:$8 sps:$4 sm:$0xff]   ;;  %v5198_v3 = vld [vmem:[#allocation12 + $0x40] ss:$8 sps:$4 sm:$0xff]  }
 0xfad   : > { %5385 = vpow2.f32 %v3642_v59  ;;  %v5200_v59 = vld [vmem:[#allocation12 + $0x44] ss:$8 sps:$4 sm:$0xff]  }
 0xfae   : > { %v3644_v14 = vmul.f32 1.442695, %v3638_v43  ;;  %v5203_v43 = vld [vmem:[#allocation12 + $0x34] ss:$8 sps:$4 sm:$0xff]  }
 0xfb0   : > { %5387 = vpow2.f32 %v3644_v14  ;;  %v5206_v14 = vld [vmem:[#allocation12 + $0x24] ss:$8 sps:$4 sm:$0xff]  }
 0xfb1   : > { %5389 = vpow2.f32 %v3640_v15  ;;  %v5201_v15 = vld [vmem:[#allocation12 + $0x30] ss:$8 sps:$4 sm:$0xff]  }
 0xfb9   : > { %v5384_v17 = vpop.eup %5383 }
 0xfba   : > { %v3657_v40 = vsel %vm757_vm0, %v5384_v17, 0.0  ;;  %v5386_v12 = vpop.eup %5385 }
 0xfbb   : > { %3658 = vadd.xlane.f32.xlu1 %v3657_v40  ;;  %v3651_v29 = vsel %vm757_vm0, %v5386_v12, 0.0  ;;  %v5209_v40 = vld [vmem:[#allocation12 + $0x14] ss:$8 sps:$4 sm:$0xff]  }
 0xfbd   : > { %v5388_v13 = vpop.eup %5387 }
 0xfbe   : > { %v3654_v23 = vsel %vm757_vm0, %v5388_v13, 0.0  ;;  %v5390_v10 = vpop.eup %5389 }
 0xfbf   : > { %3652 = vadd.xlane.f32.xlu1 %v3651_v29  ;;  %3655 = vadd.xlane.f32.xlu0 %v3654_v23  ;;  %v3648_v6 = vsel %vm757_vm0, %v5390_v10, 0.0  ;;  %v5210_v29 = vld [vmem:[#allocation12] ss:$8 sps:$4 sm:$0xff]   ;;  %v5215_v23 = vld [vmem:[#allocation12 + $0xf4] ss:$8 sps:$4 sm:$0xff]  }
 0xfc3   : > { %3649 = vadd.xlane.f32.xlu0 %v3648_v6  ;;  %v5218_v6 = vld [vmem:[#allocation12 + $0xe4] ss:$8 sps:$4 sm:$0xff]  }
 0xfd0   : > { %3682 = vrot.lane.b32.xlu1 %v6236_v30, %s5654_s27  ;;  %v6871_v30 = vpack.i.bf16 %v6326_v52, %v6320_v48 }
 0xfd4   : > { %4926 = vrot.lane.b32.xlu1 %v4925_v39, %s5654_s27 }
 0xfd8   : > { %4936 = vrot.lane.b32.xlu1 %v4935_v55, %s5653_s20 }
 0xfd9   : > { %3684 = vrot.lane.b32.xlu0 %v6243_v47, %s5654_s27  ;;  %v6872_v47 = vpack.i.bf16 %v6322_v49, %v6318_v56 }
 0xfdc   : > { %4951 = vrot.lane.b32.xlu1 %v4950_v51, %s5654_s27 }
 0xfdd   : > { %4931 = vrot.lane.b32.xlu0 %v4930_v0, %s5654_s27  ;;  %v5216_v0 = vld [vmem:[#allocation12 + $0xe0] ss:$8 sps:$4 sm:$0xff]  }
 0xfe1   : > { %4941 = vrot.lane.b32.xlu0 %v6871_v30, %s5653_s20  ;;  %v5221_v30 = vld [vmem:[#allocation12 + $0xd4] ss:$8 sps:$4 sm:$0xff]  }
 0xfe5   : > { %4946 = vrot.lane.b32.xlu0 %v4945_v45, %s5652_s28 }
 0xfe9   : > { %4956 = vrot.lane.b32.xlu0 %v4955_v42, %s5654_s27 }
 0xfed   : > { %4971 = vrot.lane.b32.xlu0 %v6872_v47, %s5653_s20  ;;  %v5219_v47 = vld [vmem:[#allocation12 + $0xd0] ss:$8 sps:$4 sm:$0xff]  }
 0xff1   : > { %4981 = vrot.lane.b32.xlu0 %v4980_v5, %s5652_s28 }
0x1044   : > { %v3659_v48 = vpop.xlane.xlu1 %3658 }
0x1045   : > { %5391 = vrcp.f32 %v3659_v48 }
0x1048   : > { %v3653_v52 = vpop.xlane.xlu1 %3652  ;;  %v3656_v57 = vpop.xlane.xlu0 %3655 }
0x1049   : > { %5393 = vrcp.f32 %v3653_v52 }
0x104a   : > { %5395 = vrcp.f32 %v3656_v57 }
0x104c   : > { %v3650_v19 = vpop.xlane.xlu0 %3649  ;;  %v3683_v53 = vpop.permute.xlu1 %3682 }
0x104d   : > { %5397 = vrcp.f32 %v3650_v19 }
0x1050   : > { %v3685_v62 = vpop.permute.xlu0 %3684 }
0x1051   : > { %4796 = vmatprep.subr.bf16.mxu0 %v3685_v62 }
0x1052   : > { %4797 = vmatpush3.bf16.msra.mxu0 %v3685_v62  ;;  %v5392_v42 = vpop.eup %5391  ;;  %v5230_v62 = vld [vmem:[#allocation12 + $0xa4] ss:$8 sps:$4 sm:$0xff]  }
0x1053   : > { %4798 = vmatprep.subr.bf16.mxu0 %v3683_v53  ;;  %v3667_v49 = vmul.f32 %v5392_v42, %v3659_v48  ;;  %v5224_v48 = vld [vmem:[#allocation12 + $0xc4] ss:$8 sps:$4 sm:$0xff]  }
0x1055   : > { %v3671_v45 = vsub.f32 2.0, %v3667_v49  ;;  %v5234_v49 = vld [vmem:[#allocation12 + $0x80] ss:$8 sps:$4 sm:$0xff]  }
0x1056   : > { %v5394_v56 = vpop.eup %5393  ;;  %4799 = vmatpush3.bf16.msra.mxu0 %v3683_v53  ;;  %v5228_v53 = vld [vmem:[#allocation12 + $0xa0] ss:$8 sps:$4 sm:$0xff]  }
0x1057   : > { %v5396_v46 = vpop.eup %5395  ;;  %v3665_v41 = vmul.f32 %v5394_v56, %v3653_v52  ;;  %v3675_v39 = vmul.f32 %v5392_v42, %v3671_v45  ;;  %4072 = vmatprep.subr.bf16.mxu0 %v5191_v38  ;;  %v5222_v52 = vld [vmem:[#allocation12 + $0xc0] ss:$8 sps:$4 sm:$0xff]   ;;  %v5233_v42 = vld [vmem:[#allocation12 + $0x94] ss:$8 sps:$4 sm:$0xff]  }
0x1058   : > { %v3666_v20 = vmul.f32 %v5396_v46, %v3656_v57  ;;  %v5227_v57 = vld [vmem:[#allocation12 + $0xb4] ss:$8 sps:$4 sm:$0xff]  }
0x1059   : > { %v3669_v5 = vsub.f32 2.0, %v3665_v41  ;;  %v3679_v28 = vmul.f32 %v5384_v17, %v3675_v39  ;;  %v5204_v17 = vld [vmem:[#allocation12 + $0x20] ss:$8 sps:$4 sm:$0xff]  }
0x105a   : > { %v5398_v27 = vpop.eup %5397  ;;  %v3670_v32 = vsub.f32 2.0, %v3666_v20 }
0x105b   : > { %v3664_v35 = vmul.f32 %v5398_v27, %v3650_v19  ;;  %v3673_v51 = vmul.f32 %v5394_v56, %v3669_v5  ;;  %v5225_v19 = vld [vmem:[#allocation12 + $0xb0] ss:$8 sps:$4 sm:$0xff]  }
0x105c   : > { %v3674_v60 = vmul.f32 %v5396_v46, %v3670_v32  ;;  %v5231_v56 = vld [vmem:[#allocation12 + $0x90] ss:$8 sps:$4 sm:$0xff]   ;;  %v5236_v46 = vld [vmem:[#allocation12 + $0x84] ss:$8 sps:$4 sm:$0xff]  }
0x105d   : > { %v3668_v36 = vsub.f32 2.0, %v3664_v35  ;;  %v3677_v50 = vmul.f32 %v5386_v12, %v3673_v51  ;;  %v5207_v12 = vld [vmem:[#allocation12 + $0x10] ss:$8 sps:$4 sm:$0xff]   ;;  %v4932_v35 = vpop.permute.xlu0 %4931  ;;  %v4927_v51 = vpop.permute.xlu1 %4926 }
0x105e   : > { %v3678_v37 = vmul.f32 %v5388_v13, %v3674_v60  ;;  %v5212_v13 = vld [vmem:[#allocation12 + $0x4] ss:$8 sps:$4 sm:$0xff]  }
0x105f   : > { %v3672_v55 = vmul.f32 %v5398_v27, %v3668_v36 }
0x1060   : > { %v3681_v54 = vpack.c.bf16 %v3679_v28, %v3678_v37  ;;  %v4929_v37 = vunpack.i.h.bf16 %v4927_v51  ;;  %v4933_v28 = vunpack.i.l.bf16 %v4932_v35 }
0x1061   : > { %v3676_v24 = vmul.f32 %v5390_v10, %v3672_v55  ;;  %v5213_v10 = vld [vmem:[#allocation12 + $0xf0] ss:$8 sps:$4 sm:$0xff]   ;;  %v4942_v60 = vpop.permute.xlu0 %4941  ;;  %v4937_v39 = vpop.permute.xlu1 %4936 }
0x1062   : > { %v4938_v22 = vunpack.i.l.bf16 %v4937_v39 }
0x1063   : > { %v3680_v2 = vpack.c.bf16 %v3677_v50, %v3676_v24  ;;  %v4928_v50 = vunpack.i.l.bf16 %v4927_v51  ;;  %v4934_v24 = vunpack.i.h.bf16 %v4932_v35 }
0x1065   : > { %4800 = vmatprep.mubr.msk.bf16.mxu0 %vm757_vm0, %v3680_v2  ;;  %v4947_v36 = vpop.permute.xlu0 %4946  ;;  %v4952_v2 = vpop.permute.xlu1 %4951 }
0x1066   : > { %4801 = vmatmul.mubr.msk.bf16.vlgmr.msra.gmra.mxu0 %vm757_vm0, %v3681_v54  ;;  %v4944_v54 = vunpack.i.h.bf16 %v4942_v60  ;;  %v4949_v8 = vunpack.i.h.bf16 %v4947_v36 }
0x1067   : > { %4073 = vmatpush1.bf16.msra.mxu0 %v5189_v21  ;;  %v4943_v21 = vunpack.i.l.bf16 %v4942_v60 }
0x1068   : > { %4074 = vmatprep.subr.bf16.mxu0 %v5194_v9  ;;  %v4939_v9 = vunpack.i.h.bf16 %v4937_v39 }
0x1069   : > { %v4957_v55 = vpop.permute.xlu0 %4956 }
0x106b   : > { %4075 = vmatpush1.bf16.msra.mxu0 %v5192_v7  ;;  %v3853_v7 = vsel %vm757_vm0, %v6422_v18, %v4929_v37 }
0x106c   : > { %4076 = vmatprep.subr.bf16.mxu0 %v5197_v61  ;;  %v3852_v61 = vsel %vm757_vm0, %v6414_v58, %v4928_v50  ;;  %v3857_v18 = vsel %vm1390_vm1, %v3853_v7, %v4939_v9 }
0x106d   : > { %v4972_v38 = vpop.permute.xlu0 %4971 }
0x106f   : > { %4077 = vmatpush1.bf16.msra.mxu0 %v5195_v31  ;;  %v3840_v31 = vsel %vm757_vm0, %v6570_v44, %v4934_v24 }
0x1070   : > { %4078 = vmatprep.subr.bf16.mxu0 %v5200_v59  ;;  %v3839_v59 = vsel %vm757_vm0, %v6566_v33, %v4933_v28 }
0x1071   : > { %v4982_v44 = vpop.permute.xlu0 %4981 }
0x1073   : > { %4079 = vmatpush1.bf16.msra.mxu0 %v5198_v3 }
0x1074   : > { %4080 = vmatprep.subr.bf16.mxu0 %v5203_v43  ;;  %v3843_v43 = vsel %vm1390_vm1, %v3839_v59, %v4943_v21  ;;  %v6873_v21 = vld [vmem:[#allocation26_spill] sm:$0xff] }
0x1077   : > { %4081 = vmatpush1.bf16.msra.mxu0 %v5201_v15  ;;  %v3844_v15 = vsel %vm1390_vm1, %v3840_v31, %v4944_v54 }
0x1078   : > { %4082 = vmatprep.subr.bf16.mxu0 %v5206_v14  ;;  %v3849_v58 = vsel %vm3847_vm2, %v3844_v15, %v4949_v8  ;;  %v6874_v8 = vld [vmem:[#allocation27_spill] sm:$0xff] }
0x107b   : > { %4083 = vmatpush1.bf16.msra.mxu0 %v5204_v17 }
0x107c   : > { %4084 = vmatprep.subr.bf16.mxu0 %v5209_v40  ;;  %v3856_v40 = vsel %vm1390_vm1, %v3852_v61, %v4938_v22 }
0x107f   : > { %4085 = vmatpush1.bf16.msra.mxu0 %v5207_v12 }
0x1080   : > { %4086 = vmatprep.subr.bf16.mxu0 %v5212_v13  ;;  %v4954_v13 = vunpack.i.h.bf16 %v4952_v2 }
0x1083   : > { %4087 = vmatpush1.bf16.msra.mxu0 %v5210_v29 }
0x1084   : > { %4088 = vmatprep.subr.bf16.mxu0 %v5215_v23  ;;  %v4953_v23 = vunpack.i.l.bf16 %v4952_v2 }
0x1087   : > { %4089 = vmatpush2.bf16.msra.mxu0 %v5213_v10  ;;  %v4959_v10 = vunpack.i.h.bf16 %v4957_v55 }
0x1088   : > { %4090 = vmatprep.subr.bf16.mxu0 %v5218_v6  ;;  %v4958_v6 = vunpack.i.l.bf16 %v4957_v55 }
0x108b   : > { %4091 = vmatpush2.bf16.msra.mxu0 %v5216_v0 }
0x108c   : > { %4092 = vmatprep.subr.bf16.mxu0 %v5221_v30 }
0x108f   : > { %4093 = vmatpush2.bf16.msra.mxu0 %v5219_v47 }
0x1090   : > { %4094 = vmatprep.subr.bf16.mxu0 %v5224_v48  ;;  %v4974_v48 = vunpack.i.h.bf16 %v4972_v38 }
0x1093   : > { %4095 = vmatpush2.bf16.msra.mxu0 %v5222_v52  ;;  %v4973_v52 = vunpack.i.l.bf16 %v4972_v38 }
0x1094   : > { %4096 = vmatprep.subr.bf16.mxu0 %v5227_v57  ;;  %v4984_v57 = vunpack.i.h.bf16 %v4982_v44 }
0x1097   : > { %4097 = vmatpush2.bf16.msra.mxu0 %v5225_v19  ;;  %v4983_v19 = vunpack.i.l.bf16 %v4982_v44  ;;  %v6880_v44 = vld [vmem:[#allocation32_spill] sm:$0xff] }
0x1098   : > { %4098 = vmatprep.subr.bf16.mxu0 %v5230_v62 }
0x109b   : > { %4099 = vmatpush2.bf16.msra.mxu0 %v5228_v53 }
0x109c   : > { %4100 = vmatprep.subr.bf16.mxu0 %v5233_v42  ;;  %v3855_v42 = vsel %vm757_vm0, %v6418_v11, %v4954_v13 }
0x109f   : > { %4101 = vmatpush2.bf16.msra.mxu0 %v5231_v56  ;;  %v3854_v56 = vsel %vm757_vm0, %v6410_v25, %v4953_v23 }
0x10a0   : > { %4102 = vmatprep.subr.bf16.mxu0 %v5236_v46  ;;  %v3841_v46 = vsel %vm757_vm0, %v6564_v26, %v4958_v6 }
0x10a3   : > { %4103 = vmatpush2.bf16.msra.mxu0 %v5234_v49  ;;  %v3842_v49 = vsel %vm757_vm0, %v6568_v34, %v4959_v10 }
0x1126   : > { %v4802_v41 = vpop.f32.mrf.mxu0 }
0x1128   : > { %v3728_v20 = vpop.f32.mrf.mxu0 }
0x112a   : > { %v4803_v5 = vpop.f32.mrf.mxu0 }
0x112b   : > { %v4975_v32 = vpack.i.bf16 %v4803_v5, %v4802_v41  ;;  %v3846_v5 = vsel %vm1390_vm1, %v3842_v49, %v4974_v48 }
0x112c   : > { %v3731_v27 = vpop.f32.mrf.mxu0  ;;  %v3851_v25 = vsel %vm3847_vm2, %v3846_v5, %v4984_v57 }
0x112d   : > { %v4960_v45 = vpack.i.bf16 %v3731_v27, %v3728_v20  ;;  %v3845_v20 = vsel %vm1390_vm1, %v3841_v46, %v4973_v52 }
0x112e   : > { %v3850_v35 = vsel %vm3847_vm2, %v3845_v20, %v4983_v19 }
0x112f   : > { %4961 = vrot.lane.b32.xlu1 %v4960_v45, %s5652_s28  ;;  %v3866_v51 = vpack.c.bf16 %v3851_v25, %v3850_v35 }
0x1133   : > { %4966 = vrot.lane.b32.xlu1 %v4965_v4, %s5653_s20  ;;  %v4948_v4 = vunpack.i.l.bf16 %v4947_v36  ;;  %v3900_v36 = vld [vmem:[%s6802_s15] sm:$0x3] }
0x1134   : > { %v3905_v39 = vrot.slane %v3900_v36, %v6030_v63  ;;  %v3909_v55 = vrot.slane %v3900_v36, %v6036_v1  ;;  %v6875_v1 = vld [vmem:[#allocation28_spill] sm:$0xff] }
0x1135   : > { %v3848_v12 = vsel %vm3847_vm2, %v3843_v43, %v4948_v4 }
0x1136   : > { %v3864_v47 = vpack.c.bf16 %v3849_v58, %v3848_v12  ;;  %v6878_v12 = vld [vmem:[#allocation30_spill] sm:$0xff] }
0x1137   : > { %4976 = vrot.lane.b32.xlu1 %v4975_v32, %s5652_s28  ;;  %s5565_s28 = scalar_lea.vmem %s5564_s17, 2048 }
0x1138   : > { %p5567_p1 = scmp.lt.s32.totalorder %s5565_s28, %s5559_s0 }
0x113a   : > { %p5568_p5 = por %p5567_p1, %p5566_p6 }
0x113c   : > { %p5569_p8 = pnand %p5568_p5, %p5562_p4 }
0x11a1   : > { %v4962_v3 = vpop.permute.xlu1 %4961 }
0x11a2   : > { %v4964_v14 = vunpack.i.h.bf16 %v4962_v3  ;;  %v4963_v17 = vunpack.i.l.bf16 %v4962_v3 }
0x11a4   : > { %v3860_v29 = vsel %vm3847_vm2, %v3856_v40, %v4963_v17  ;;  %v3861_v33 = vsel %vm3847_vm2, %v3857_v18, %v4964_v14  ;;  %v6877_v14 = vld [vmem:[#allocation29_spill] sm:$0xff] }
0x11a5   : > { %v4967_v0 = vpop.permute.xlu1 %4966  ;;  %v3865_v30 = vpack.c.bf16 %v3861_v33, %v3860_v29 }
0x11a6   : > { %v4969_v62 = vunpack.i.h.bf16 %v4967_v0  ;;  %v4968_v53 = vunpack.i.l.bf16 %v4967_v0 }
0x11a7   : > { %4104 = vmatprep.mubr.bf16.mxu0 %v3865_v30 }
0x11a8   : > { %4105 = vmatmul.mubr.bf16.vlgmr.msra.gmra.mxu0 %v3864_v47  ;;  %v3859_v32 = vsel %vm1390_vm1, %v3855_v42, %v4969_v62  ;;  %v3858_v11 = vsel %vm1390_vm1, %v3854_v56, %v4968_v53 }
0x11a9   : > { %v4977_v41 = vpop.permute.xlu1 %4976 }
0x11aa   : > { %v4979_v27 = vunpack.i.h.bf16 %v4977_v41  ;;  %v4978_v45 = vunpack.i.l.bf16 %v4977_v41 }
0x11ac   : > { %v3862_v34 = vsel %vm3847_vm2, %v3858_v11, %v4978_v45  ;;  %v3863_v26 = vsel %vm3847_vm2, %v3859_v32, %v4979_v27 }
0x11ad   : > { %v3867_v60 = vpack.c.bf16 %v3863_v26, %v3862_v34 }
0x11af   : > { %4114 = vmatprep.mubr.bf16.mxu0 %v3867_v60 }
0x11b0   : > { %4115 = vmatmul.mubr.bf16.gmra.mxu0 %v3866_v51 }
0x1268   : > { %v4106_v37 = vpop.f32.mrf.mxu0 }
0x1269   : > { %v4107_v50 = vadd.f32 %v4106_v37, %v3905_v39 }
0x126a   : > { %v4108_v24 = vpop.f32.mrf.mxu0 }
0x126b   : > { %v4125_v28 = vadd.f32 %v4107_v50, %v6138_v16  ;;  %v4109_v2 = vadd.f32 %v4108_v24, %v3909_v55  ;;  %v6876_v16 = vld [vmem:[#allocation31_spill] sm:$0xff] }
0x126c   : > { %v4110_v54 = vpop.f32.mrf.mxu0 }
0x126d   : > { %4133 = vst [vmem:[%s684_s30] sm:$0xff] %v4125_v28  ;;  %v4126_v38 = vadd.f32 %v4109_v2, %v6873_v21  ;;  %v4111_v9 = vadd.f32 %v4110_v54, %v3905_v39 }
0x126e   : > { %v4112_v22 = vpop.f32.mrf.mxu0 }
0x126f   : > { %4134 = vst [vmem:[%s684_s30 + $0x8] sm:$0xff] %v4126_v38  ;;  %v4127_v4 = vadd.f32 %v4111_v9, %v6874_v8  ;;  %v4113_v63 = vadd.f32 %v4112_v22, %v3909_v55 }
0x1270   : > { %v4116_v7 = vpop.f32.mrf.mxu0 }
0x1271   : > { %4135 = vst [vmem:[%s684_s30 + $0x10] sm:$0xff] %v4127_v4  ;;  %v4128_v61 = vadd.f32 %v4113_v63, %v6875_v1  ;;  %v4117_v31 = vadd.f32 %v4116_v7, %v3905_v39 }
0x1272   : > { %v4118_v59 = vpop.f32.mrf.mxu0 }
0x1273   : > { %4136 = vst [vmem:[%s684_s30 + $0x18] sm:$0xff] %v4128_v61  ;;  %v4129_v3 = vadd.f32 %v4117_v31, %v6876_v16  ;;  %v4119_v43 = vadd.f32 %v4118_v59, %v3909_v55 }
0x1274   : > { %v4120_v15 = vpop.f32.mrf.mxu0 }
0x1275   : > { %4137 = vst [vmem:[%s684_s30 + $0x20] sm:$0xff] %v4129_v3  ;;  %v4130_v17 = vadd.f32 %v4119_v43, %v6877_v14  ;;  %v4121_v40 = vadd.f32 %v4120_v15, %v3905_v39 }
0x1276   : > { %v4122_v18 = vpop.f32.mrf.mxu0 }
0x1277   : > { %4138 = vst [vmem:[%s684_s30 + $0x28] sm:$0xff] %v4130_v17  ;;  %v4131_v58 = vadd.f32 %v4121_v40, %v6878_v12  ;;  %v4123_v13 = vadd.f32 %v4122_v18, %v3909_v55 }
0x1279   : > { %4139 = vst [vmem:[%s684_s30 + $0x30] sm:$0xff] %v4131_v58  ;;  %v4132_v29 = vadd.f32 %v4123_v13, %v6880_v44 }
0x127b   : > { %4140 = vst [vmem:[%s684_s30 + $0x38] sm:$0xff] %v4132_v29 }
0x127c   : > { %5572 = shalt.err (!%p5569_p8)
}
0x127d   : > { %s5573_s20 = scalar_lea.hbm %s6743_s16, 1024  ;;  %s5577_s27 = scalar_lea.hbm %s6879_s14, 2048 }
0x127e   : > { %p5574_p11 = scmp.ne.s32.totalorder %s6743_s16, %s5573_s20  ;;  %p5578_p7 = scmp.lt.s32.totalorder %s6743_s16, %s6879_s14 }
0x127f   : > { %p5579_p9 = scmp.lt.s32.totalorder %s5577_s27, %s5573_s20 }
0x1280   : > { %p5575_p13 = pnand %p5574_p11, %p6881_p3 }
0x1281   : > { %p5580_p0 = por %p5579_p9, %p5578_p7 }
0x1282   : > { %p5576_p12 = pneg %p5575_p13 }
0x1284   : > { %p5581_p10 = pnand %p5580_p0, %p5576_p12 }
0x1286   : > { %5584 = shalt.err (!%p5581_p10)
}
0x1287   : > { %s5656_s30 = smov 256   ;;  %s5657_s19 = smov 16  }
0x1288   : > { %4840 = dma.vmem_to_hbm [thread:$0]  (%p6881_p3), %s6737_s5, 1024, %s6743_s16, %s4142_s9, %s5656_s30, %s5656_s30, %s5657_s19  }
0x1289 PF: > { %s6882_s22 = sld [smem:[#allocation21_spill]]  ;;  %p6885_p4 = scmp.ge.s32.totalorder %s5639_s26, 2 }
0x128a   : > { %s6883_s18 = sld [smem:[#allocation23_spill]] }
0x128f   : > { %s4170_s0 = sand.u32 1, %s6882_s22  }
0x1290   : > { %p6884_p2 = scmp.ne.s32.totalorder %s6883_s18, 0  ;;  %s4171_s10 = scalar_lea.sflag [#allocation5], %s4170_s0 }
0x1292   : > { %p4863_p6 = pnand %p6885_p4, %p6884_p2 }
0x1294   : > { %p4864_p1 = pneg %p4863_p6 }
0x1296   : > { %5622 = dma.done.wait (%p4864_p1), %s4171_s10, 1024  }
0x1297   : > { %5624 = vsyncadd (%p4864_p1), %s4171_s10, 4294966272  ;;  %s6886_s26 = sld [smem:[#allocation24_spill]]  ;;  %s6889_s23 = smov %s5631_s24 }
0x1298   : > { %s6887_s17 = sld [smem:[#allocation22_spill]] }
0x1299   : > { %s6888_s25 = sld [smem:[#allocation25_spill]] }
0x129d   : > { %p36_p5 = scmp.ge.s32.totalorder %s6886_s26, 4  }
0x129e   : > { %s6890_s24 = smov %s6887_s17 }
0x129f   :  { %38 = sbr.rel (!%p36_p5) target bundleno = 17 (0x11), region = 167 }
0x12a4   :  { %4176 = vsyncpa [#allocation4], 1 }
0x12a5   :  { %4178 = vsyncpa [#allocation4 + $0x1], 1 }
0x12a6   :  { %4179 = vsyncpa [#allocation7], 1 }
0x12a7   :  { %4181 = vsyncpa [#allocation7 + $0x1], 1 }
0x12a8   :  { %4182 = vsyncpa [#allocation10], 1 }
0x12a9   :  { %4183 = vsyncpa [#allocation13], 1 }
0x12aa   :  { %4184 = vsyncpa [#allocation5], 1 }
0x12ab   :  { %4186 = vsyncpa [#allocation5 + $0x1], 1 }

</bundles_post_ra>
